<compile_context>
chip_gen: v7x
topology: tpu7x:2x2x1
jax: 0.10.0
libtpu: 0.0.40
codegen_flags: <defaults>
</compile_context>

<pallas_src>
import math

import jax
import jax.numpy as jnp
from jax.experimental import pallas as pl
from jax.experimental.pallas import tpu as pltpu

# ---- Hopper-v2 dimensions from the reference script -----------------------
STATE_DIM = 11
ACTION_DIM = 3
HIDDEN = 256
BATCH = 256          # minibatch_size in the reference; amortizes launch + weight DMA

_HALF_LOG_2PI = 0.9189385332046727    # 0.5 * log(2*pi)
_LOG_2 = 0.6931471805599453
_LOG_EPS = math.log(1e-8)             # reference clamp floor


def sac_actor_kernel(xn_ref, w1_ref, b1_ref, w2_ref, b2_ref, wh_ref, bh_ref,
                     out_ref):
    f32 = jnp.float32
    bf16 = jnp.bfloat16

    xn = xn_ref[...]                       # (B, STATE_DIM + ACTION_DIM), f32
    x = xn[:, :STATE_DIM]
    noise = xn[:, STATE_DIM:]

    # fc1 + ReLU   (bf16 x bf16 -> f32 accumulate: native full-rate MXU path)
    h1 = jnp.dot(x.astype(bf16), w1_ref[...].astype(bf16),
                 preferred_element_type=f32)
    h1 = jnp.maximum(h1 + b1_ref[...], 0.0)

    # fc2 + ReLU
    h2 = jnp.dot(h1.astype(bf16), w2_ref[...].astype(bf16),
                 preferred_element_type=f32)
    h2 = jnp.maximum(h2 + b2_ref[...], 0.0)

    # fused mean | log_stdev head (one MXU pass instead of two)
    heads = jnp.dot(h2.astype(bf16), wh_ref[...].astype(bf16),
                    preferred_element_type=f32)
    heads = heads + bh_ref[...]
    mean = heads[:, :ACTION_DIM]
    log_std = jnp.clip(heads[:, ACTION_DIM:], -2.0, 20.0)   # reference: min=-2, max=20
    std = jnp.exp(log_std)

    # reparameterized sample + tanh squash
    u = mean + noise * std
    squashed = jnp.tanh(u)

    # Normal(mean, std).log_prob(u): (u - mean)^2 / (2 std^2) == 0.5 * noise^2 exactly
    log_prob = -0.5 * noise * noise - log_std - _HALF_LOG_2PI

    # tanh correction, summed over the action dim and broadcast back over columns.
    # log(1 - tanh(u)^2) = 2*(log2 - u - softplus(-2u)); the reference's
    # log(clamp(1 - tanh^2, min=1e-8)) == max(log(1 - tanh^2), log(1e-8)).
    z = -2.0 * u
    softplus_z = jnp.maximum(z, 0.0) + jnp.log(1.0 + jnp.exp(-jnp.abs(z)))
    log1m_t2 = jnp.maximum(2.0 * (_LOG_2 - u - softplus_z), _LOG_EPS)
    corr = jnp.sum(log1m_t2, axis=1, keepdims=True)
    logp = log_prob - corr

    # single packed lane-contiguous store: [squashed_action | log_prob]
    out_ref[...] = jnp.concatenate([squashed, logp], axis=1)


def sac_actor_forward(x, params, noise):
    """x: (B, STATE_DIM); noise: (B, ACTION_DIM); params: dict (see init_params).

    Returns (squashed_action, log_prob_squashed_a), each (B, ACTION_DIM) f32.
    """
    w1, b1, w2, b2, wh, bh = (params["w1"], params["b1"], params["w2"],
                              params["b2"], params["wh"], params["bh"])
    B = x.shape[0]

    # One wide input DMA: [x | noise] packed along the lane dimension.
    xn = jnp.concatenate([x.astype(jnp.float32), noise.astype(jnp.float32)],
                         axis=1)

    def full_spec(arr):
        # full-array block, constant index_map -> weights resident in VMEM
        return pl.BlockSpec(arr.shape, lambda i: (0, 0))

    in_specs = [
        pl.BlockSpec((B, STATE_DIM + ACTION_DIM), lambda i: (0, 0)),   # [x|noise]
        full_spec(w1), full_spec(b1),
        full_spec(w2), full_spec(b2),
        full_spec(wh), full_spec(bh),
    ]
    out_specs = pl.BlockSpec((B, 2 * ACTION_DIM), lambda i: (0, 0))
    out_shape = jax.ShapeDtypeStruct((B, 2 * ACTION_DIM), jnp.float32)

    param_bytes = sum(int(p.size) * p.dtype.itemsize
                      for p in (w1, b1, w2, b2, wh, bh))
    cost = pl.CostEstimate(
        flops=2 * B * (STATE_DIM * HIDDEN + HIDDEN * HIDDEN
                       + HIDDEN * 2 * ACTION_DIM),
        transcendentals=4 * B * ACTION_DIM,
        bytes_accessed=param_bytes + 4 * B * (STATE_DIM + 3 * ACTION_DIM),
    )

    # Whole minibatch in one block: launch/step-overhead bound workload, so a
    # single grid step (B=256 rows -> full MXU M on v6e/v7x) is the fast path.
    # TODO(synk): if params are reused across many rollout calls, keep weights
    # resident across pallas_calls (cross-call prefetch / semaphore futures).
    packed = pl.pallas_call(
        sac_actor_kernel,
        out_shape=out_shape,
        grid=(1,),
        in_specs=in_specs,
        out_specs=out_specs,
        compiler_params=pltpu.CompilerParams(
            dimension_semantics=("arbitrary",)),
        cost_estimate=cost,
    )(xn, w1, b1, w2, b2, wh, bh)

    return packed[:, :ACTION_DIM], packed[:, ACTION_DIM:]


def sac_actor_reference(x, params, noise):
    """Pure-JAX f32 reference (weights upcast to f32) for correctness checks."""
    f32 = jnp.float32
    w1 = params["w1"].astype(f32); b1 = params["b1"].astype(f32)
    w2 = params["w2"].astype(f32); b2 = params["b2"].astype(f32)
    wh = params["wh"].astype(f32); bh = params["bh"].astype(f32)
    h1 = jnp.maximum(x @ w1 + b1, 0.0)
    h2 = jnp.maximum(h1 @ w2 + b2, 0.0)
    heads = h2 @ wh + bh
    mean = heads[:, :ACTION_DIM]
    log_std = jnp.clip(heads[:, ACTION_DIM:], -2.0, 20.0)
    std = jnp.exp(log_std)
    u = mean + noise * std
    a = jnp.tanh(u)
    logp = (-0.5 * ((u - mean) / std) ** 2 - log_std - _HALF_LOG_2PI
            - jnp.sum(jnp.log(jnp.clip(1.0 - a * a, 1e-8, None)),
                      axis=1, keepdims=True))
    return a, logp


def init_params(key, weight_dtype=jnp.bfloat16):
    """Deterministic init (uniform, like nn.Linear default), heads pre-fused.

    Weights default to bf16 (native MXU input dtype, half the HBM->VMEM DMA);
    biases stay f32 since the bias add / pointwise math runs in f32.
    """
    def linear(k, fan_in, fan_out):
        kw, kb = jax.random.split(k)
        bound = 1.0 / math.sqrt(fan_in)
        w = jax.random.uniform(kw, (fan_in, fan_out), jnp.float32, -bound, bound)
        b = jax.random.uniform(kb, (1, fan_out), jnp.float32, -bound, bound)
        return w, b

    k1, k2, k3, k4 = jax.random.split(key, 4)
    w1, b1 = linear(k1, STATE_DIM, HIDDEN)
    w2, b2 = linear(k2, HIDDEN, HIDDEN)
    wm, bm = linear(k3, HIDDEN, ACTION_DIM)
    wl, bl = linear(k4, HIDDEN, ACTION_DIM)
    wh = jnp.concatenate([wm, wl], axis=1)   # fused mean|log_stdev head
    bh = jnp.concatenate([bm, bl], axis=1)
    return {"w1": w1.astype(weight_dtype), "b1": b1,
            "w2": w2.astype(weight_dtype), "b2": b2,
            "wh": wh.astype(weight_dtype), "bh": bh}


if __name__ == "__main__":
    key = jax.random.PRNGKey(0)
    k_params, k_x, k_noise = jax.random.split(key, 3)

    params = init_params(k_params)                        # bf16 weights, f32 biases
    x = jax.random.normal(k_x, (BATCH, STATE_DIM), jnp.float32)
    noise = jax.random.normal(k_noise, (BATCH, ACTION_DIM), jnp.float32)

    squashed_action, log_prob = sac_actor_forward(x, params, noise)
    jax.block_until_ready((squashed_action, log_prob))

    assert squashed_action.shape == (BATCH, ACTION_DIM)
    assert log_prob.shape == (BATCH, ACTION_DIM)
    assert bool(jnp.all(jnp.isfinite(squashed_action)))
    assert bool(jnp.all(jnp.isfinite(log_prob)))

    # Loose-tolerance check vs. an f32 reference (kernel rounds activations to
    # bf16 before each MXU dot, so exact equality is not expected).
    a_ref, lp_ref = sac_actor_reference(x, params, noise)
    assert bool(jnp.max(jnp.abs(squashed_action - a_ref)) < 5e-2)
    assert bool(jnp.max(jnp.abs(log_prob - lp_ref)) < 5e-1)

    print("KERNEL_OK")
</pallas_src>

<mosaic_0001>
module attributes {stable_mosaic.version = 11 : i64} {
  func.func @sac_actor_kernel(%arg0: i32, %arg1: memref<256x14xf32, #tpu.memory_space<vmem>>, %arg2: memref<11x256xbf16, #tpu.memory_space<vmem>>, %arg3: memref<1x256xf32, #tpu.memory_space<vmem>>, %arg4: memref<256x256xbf16, #tpu.memory_space<vmem>>, %arg5: memref<1x256xf32, #tpu.memory_space<vmem>>, %arg6: memref<256x6xbf16, #tpu.memory_space<vmem>>, %arg7: memref<1x6xf32, #tpu.memory_space<vmem>>, %arg8: memref<256x6xf32, #tpu.memory_space<vmem>>) attributes {dimension_semantics = [#tpu.dimension_semantics<arbitrary>], iteration_bounds = array<i64: 1>, scalar_prefetch = 0 : i64, scratch_operands = 0 : i64, tpu.core_type = #tpu.core_type<tc>, window_params = [{pipeline_mode = #tpu.pipeline_mode<synchronous>, transform_indices = @transform_0, window_bounds = array<i64: 256, 14>}, {pipeline_mode = #tpu.pipeline_mode<synchronous>, transform_indices = @transform_1, window_bounds = array<i64: 11, 256>}, {pipeline_mode = #tpu.pipeline_mode<synchronous>, transform_indices = @transform_2, window_bounds = array<i64: 1, 256>}, {pipeline_mode = #tpu.pipeline_mode<synchronous>, transform_indices = @transform_3, window_bounds = array<i64: 256, 256>}, {pipeline_mode = #tpu.pipeline_mode<synchronous>, transform_indices = @transform_4, window_bounds = array<i64: 1, 256>}, {pipeline_mode = #tpu.pipeline_mode<synchronous>, transform_indices = @transform_5, window_bounds = array<i64: 256, 6>}, {pipeline_mode = #tpu.pipeline_mode<synchronous>, transform_indices = @transform_6, window_bounds = array<i64: 1, 6>}, {pipeline_mode = #tpu.pipeline_mode<synchronous>, transform_indices = @transform_7, window_bounds = array<i64: 256, 6>}]} {
    %c0 = arith.constant 0 : index
    %c0_0 = arith.constant 0 : index
    %0 = vector.load %arg1[%c0, %c0_0] : memref<256x14xf32, #tpu.memory_space<vmem>>, vector<256x14xf32>
    %1 = vector.extract_strided_slice %0 {offsets = [0, 0], sizes = [256, 11], strides = [1, 1]} : vector<256x14xf32> to vector<256x11xf32>
    %2 = vector.extract_strided_slice %0 {offsets = [0, 11], sizes = [256, 3], strides = [1, 1]} : vector<256x14xf32> to vector<256x3xf32>
    %3 = arith.truncf %1 : vector<256x11xf32> to vector<256x11xbf16>
    %c0_1 = arith.constant 0 : index
    %c0_2 = arith.constant 0 : index
    %4 = vector.load %arg2[%c0_1, %c0_2] : memref<11x256xbf16, #tpu.memory_space<vmem>>, vector<11x256xbf16>
    %cst = arith.constant dense<0.000000e+00> : vector<256x256xf32>
    %5 = tpu.matmul %3, %4, %cst {dimension_numbers = #tpu.dot_dimension_numbers<[1], [0], [0], [1], [0, 0, 1, 1], [], []>} : vector<256x11xbf16>, vector<11x256xbf16>, vector<256x256xf32> -> vector<256x256xf32>
    %c0_3 = arith.constant 0 : index
    %c0_4 = arith.constant 0 : index
    %6 = vector.load %arg3[%c0_3, %c0_4] : memref<1x256xf32, #tpu.memory_space<vmem>>, vector<1x256xf32>
    %7 = vector.broadcast %6 : vector<1x256xf32> to vector<256x256xf32>
    %8 = arith.addf %5, %7 : vector<256x256xf32>
    %cst_5 = arith.constant 0.000000e+00 : f32
    %9 = vector.broadcast %cst_5 : f32 to vector<256x256xf32>
    %10 = arith.maximumf %8, %9 : vector<256x256xf32>
    %11 = arith.truncf %10 : vector<256x256xf32> to vector<256x256xbf16>
    %c0_6 = arith.constant 0 : index
    %c0_7 = arith.constant 0 : index
    %12 = vector.load %arg4[%c0_6, %c0_7] : memref<256x256xbf16, #tpu.memory_space<vmem>>, vector<256x256xbf16>
    %cst_8 = arith.constant dense<0.000000e+00> : vector<256x256xf32>
    %13 = tpu.matmul %11, %12, %cst_8 {dimension_numbers = #tpu.dot_dimension_numbers<[1], [0], [0], [1], [0, 0, 1, 1], [], []>} : vector<256x256xbf16>, vector<256x256xbf16>, vector<256x256xf32> -> vector<256x256xf32>
    %c0_9 = arith.constant 0 : index
    %c0_10 = arith.constant 0 : index
    %14 = vector.load %arg5[%c0_9, %c0_10] : memref<1x256xf32, #tpu.memory_space<vmem>>, vector<1x256xf32>
    %15 = vector.broadcast %14 : vector<1x256xf32> to vector<256x256xf32>
    %16 = arith.addf %13, %15 : vector<256x256xf32>
    %cst_11 = arith.constant 0.000000e+00 : f32
    %17 = vector.broadcast %cst_11 : f32 to vector<256x256xf32>
    %18 = arith.maximumf %16, %17 : vector<256x256xf32>
    %19 = arith.truncf %18 : vector<256x256xf32> to vector<256x256xbf16>
    %c0_12 = arith.constant 0 : index
    %c0_13 = arith.constant 0 : index
    %20 = vector.load %arg6[%c0_12, %c0_13] : memref<256x6xbf16, #tpu.memory_space<vmem>>, vector<256x6xbf16>
    %cst_14 = arith.constant dense<0.000000e+00> : vector<256x6xf32>
    %21 = tpu.matmul %19, %20, %cst_14 {dimension_numbers = #tpu.dot_dimension_numbers<[1], [0], [0], [1], [0, 0, 1, 1], [], []>} : vector<256x256xbf16>, vector<256x6xbf16>, vector<256x6xf32> -> vector<256x6xf32>
    %c0_15 = arith.constant 0 : index
    %c0_16 = arith.constant 0 : index
    %22 = vector.load %arg7[%c0_15, %c0_16] : memref<1x6xf32, #tpu.memory_space<vmem>>, vector<1x6xf32>
    %23 = vector.broadcast %22 : vector<1x6xf32> to vector<256x6xf32>
    %24 = arith.addf %21, %23 : vector<256x6xf32>
    %25 = vector.extract_strided_slice %24 {offsets = [0, 0], sizes = [256, 3], strides = [1, 1]} : vector<256x6xf32> to vector<256x3xf32>
    %26 = vector.extract_strided_slice %24 {offsets = [0, 3], sizes = [256, 3], strides = [1, 1]} : vector<256x6xf32> to vector<256x3xf32>
    %cst_17 = arith.constant -2.000000e+00 : f32
    %cst_18 = arith.constant 2.000000e+01 : f32
    %27 = vector.broadcast %cst_17 : f32 to vector<256x3xf32>
    %28 = arith.maximumf %27, %26 : vector<256x3xf32>
    %29 = vector.broadcast %cst_18 : f32 to vector<256x3xf32>
    %30 = arith.minimumf %29, %28 : vector<256x3xf32>
    %31 = math.exp %30 : vector<256x3xf32>
    %32 = arith.mulf %2, %31 : vector<256x3xf32>
    %33 = arith.addf %25, %32 : vector<256x3xf32>
    %34 = math.tanh %33 : vector<256x3xf32>
    %cst_19 = arith.constant -5.000000e-01 : f32
    %35 = vector.broadcast %cst_19 : f32 to vector<256x3xf32>
    %36 = arith.mulf %35, %2 : vector<256x3xf32>
    %37 = arith.mulf %36, %2 : vector<256x3xf32>
    %38 = arith.subf %37, %30 : vector<256x3xf32>
    %cst_20 = arith.constant 0.918938517 : f32
    %39 = vector.broadcast %cst_20 : f32 to vector<256x3xf32>
    %40 = arith.subf %38, %39 : vector<256x3xf32>
    %cst_21 = arith.constant -2.000000e+00 : f32
    %41 = vector.broadcast %cst_21 : f32 to vector<256x3xf32>
    %42 = arith.mulf %41, %33 : vector<256x3xf32>
    %cst_22 = arith.constant 0.000000e+00 : f32
    %43 = vector.broadcast %cst_22 : f32 to vector<256x3xf32>
    %44 = arith.maximumf %42, %43 : vector<256x3xf32>
    %45 = math.absf %42 : vector<256x3xf32>
    %cst_23 = arith.constant 0.000000e+00 : f32
    %46 = vector.broadcast %cst_23 : f32 to vector<256x3xf32>
    %47 = arith.subf %46, %45 : vector<256x3xf32>
    %48 = math.exp %47 : vector<256x3xf32>
    %cst_24 = arith.constant 1.000000e+00 : f32
    %49 = vector.broadcast %cst_24 : f32 to vector<256x3xf32>
    %50 = arith.addf %49, %48 : vector<256x3xf32>
    %51 = math.log %50 : vector<256x3xf32>
    %52 = arith.addf %44, %51 : vector<256x3xf32>
    %cst_25 = arith.constant 0.693147182 : f32
    %53 = vector.broadcast %cst_25 : f32 to vector<256x3xf32>
    %54 = arith.subf %53, %33 : vector<256x3xf32>
    %55 = arith.subf %54, %52 : vector<256x3xf32>
    %cst_26 = arith.constant 2.000000e+00 : f32
    %56 = vector.broadcast %cst_26 : f32 to vector<256x3xf32>
    %57 = arith.mulf %56, %55 : vector<256x3xf32>
    %cst_27 = arith.constant -18.420681 : f32
    %58 = vector.broadcast %cst_27 : f32 to vector<256x3xf32>
    %59 = arith.maximumf %57, %58 : vector<256x3xf32>
    %cst_28 = arith.constant dense<0.000000e+00> : vector<256xf32>
    %60 = vector.multi_reduction <add>, %59, %cst_28 [1] : vector<256x3xf32> to vector<256xf32>
    %61 = vector.shape_cast %60 : vector<256xf32> to vector<256x1xf32>
    %62 = vector.broadcast %61 : vector<256x1xf32> to vector<256x3xf32>
    %63 = arith.subf %40, %62 : vector<256x3xf32>
    %64 = tpu.concatenate %34, %63 in 1 : vector<256x3xf32>, vector<256x3xf32> -> vector<256x6xf32>
    %c0_29 = arith.constant 0 : index
    %c0_30 = arith.constant 0 : index
    %65 = vector.load %arg8[%c0_29, %c0_30] : memref<256x6xf32, #tpu.memory_space<vmem>>, vector<256x6xf32>
    tpu.vector_store %arg8[%c0_29, %c0_30], %64 {strides = array<i32>} : memref<256x6xf32, #tpu.memory_space<vmem>>, vector<256x6xf32>,
    return
  }
  func.func @transform_0(%arg0: i32) -> (i32, i32) {
    %c0_i32 = arith.constant 0 : i32
    %c0_i32_0 = arith.constant 0 : i32
    %c0_i32_1 = arith.constant 0 : i32
    return %c0_i32, %c0_i32_0 : i32, i32
  }
  func.func @transform_1(%arg0: i32) -> (i32, i32) {
    %c0_i32 = arith.constant 0 : i32
    %c0_i32_0 = arith.constant 0 : i32
    %c0_i32_1 = arith.constant 0 : i32
    return %c0_i32, %c0_i32_0 : i32, i32
  }
  func.func @transform_2(%arg0: i32) -> (i32, i32) {
    %c0_i32 = arith.constant 0 : i32
    %c0_i32_0 = arith.constant 0 : i32
    %c0_i32_1 = arith.constant 0 : i32
    return %c0_i32, %c0_i32_0 : i32, i32
  }
  func.func @transform_3(%arg0: i32) -> (i32, i32) {
    %c0_i32 = arith.constant 0 : i32
    %c0_i32_0 = arith.constant 0 : i32
    %c0_i32_1 = arith.constant 0 : i32
    return %c0_i32, %c0_i32_0 : i32, i32
  }
  func.func @transform_4(%arg0: i32) -> (i32, i32) {
    %c0_i32 = arith.constant 0 : i32
    %c0_i32_0 = arith.constant 0 : i32
    %c0_i32_1 = arith.constant 0 : i32
    return %c0_i32, %c0_i32_0 : i32, i32
  }
  func.func @transform_5(%arg0: i32) -> (i32, i32) {
    %c0_i32 = arith.constant 0 : i32
    %c0_i32_0 = arith.constant 0 : i32
    %c0_i32_1 = arith.constant 0 : i32
    return %c0_i32, %c0_i32_0 : i32, i32
  }
  func.func @transform_6(%arg0: i32) -> (i32, i32) {
    %c0_i32 = arith.constant 0 : i32
    %c0_i32_0 = arith.constant 0 : i32
    %c0_i32_1 = arith.constant 0 : i32
    return %c0_i32, %c0_i32_0 : i32, i32
  }
  func.func @transform_7(%arg0: i32) -> (i32, i32) {
    %c0_i32 = arith.constant 0 : i32
    %c0_i32_0 = arith.constant 0 : i32
    %c0_i32_1 = arith.constant 0 : i32
    return %c0_i32, %c0_i32_0 : i32, i32
  }
}

</mosaic_0001>

<bundles_post_ra>
// kernel: tpu_custom_call.1
= control target key start
LH: loop header
LB: loop body
LE: loop exit
PB: predicated region body
PF: predicated region fallthrough
CT: control target
= control target key end

     0   :  { %vm146_vm0 = vcmask 1044480   ;;  %vm147_vm1 = vcmask 1045504   ;;  %v3349_v1 = vmov 0   ;;  %v3350_v2 = vmov 65535   ;;  %s3352_s22 = smov 117   ;;  %s3353_s13 = smov 120   ;;  %s4933_s1 = inlined_call_operand.vmem [shape: bf16[11,256], index: 1, kind: input, shape index: {}]   ;;  %s4934_s0 = inlined_call_operand.vmem [shape: f32[256,14], index: 0, kind: input, shape index: {}]   ;;  %s4935_s3 = inlined_call_operand.vmem [shape: bf16[256,256], index: 3, kind: input, shape index: {}]   ;;  %s4936_s2 = inlined_call_operand.vmem [shape: f32[1,256], index: 2, kind: input, shape index: {}]   ;;  %s4937_s5 = inlined_call_operand.vmem [shape: bf16[256,6], index: 5, kind: input, shape index: {}]   ;;  %s4938_s4 = inlined_call_operand.vmem [shape: f32[1,256], index: 4, kind: input, shape index: {}]   ;;  %s4939_s6 = inlined_call_operand.vmem [shape: f32[1,6], index: 6, kind: input, shape index: {}]   ;;  %s4940_s7 = inlined_call_operand.vmem [shape: f32[256,6], index: 7, kind: output, shape index: {}]  }
   0x1   :  { %v2962_v0 = vld [vmem:[%s4933_s1 + $0x4] ss:$8 sps:$4 sm:$0x3f]   ;;  %188 = vmatprep.mubr.bf16.mxu0 %v3349_v1  ;;  %268 = vmatprep.mubr.bf16.mxu1 %v3349_v1  ;;  %v148_v3 = vsel %vm146_vm0, 4294967295, %v3350_v2  ;;  %vm97_vm2 = vcmask 89088   ;;  %v29_v14 = vld [vmem:[%s4934_s0 + $0x10] sm:$0xff] }
   0x2   :  { %v2964_v4 = vld [vmem:[%s4933_s1] ss:$8 sps:$4 sm:$0x3f]   ;;  %v149_v5 = vsel %vm147_vm1, %v148_v3, 0  ;;  %v30_v15 = vld [vmem:[%s4934_s0 + $0x18] sm:$0xff]  ;;  %v45_v16 = vld [vmem:[%s4934_s0 + $0x90] sm:$0xff] }
   0x3   :  { %v27_v6 = vld [vmem:[%s4934_s0] sm:$0xff]  ;;  %v28_v7 = vld [vmem:[%s4934_s0 + $0x8] sm:$0xff]  ;;  %v154_v8 = vand.u32 %v2962_v0, %v149_v5  ;;  %v151_v9 = vand.u32 %v2964_v4, %v149_v5  ;;  %v46_v17 = vld [vmem:[%s4934_s0 + $0x98] sm:$0xff]  ;;  %v60_v19 = vpack.c.bf16 %v30_v15, %v29_v14  ;;  %vm2418_vm3 = vcmask 23552  }
   0x4   :  { %v59_v10 = vpack.c.bf16 %v28_v7, %v27_v6  ;;  %v43_v11 = vld [vmem:[%s4934_s0 + $0x80] sm:$0xff]  ;;  %v44_v12 = vld [vmem:[%s4934_s0 + $0x88] sm:$0xff]  ;;  %v68_v21 = vpack.c.bf16 %v46_v17, %v45_v16  ;;  %v2970_v22 = vld [vmem:[%s4935_s3 + $0x14] ss:$8 sps:$4 sm:$0xff]   ;;  %vm2707_vm4 = vcmask 48128  }
   0x5   :  { %156 = vmatprep.subr.bf16.mxu0 %v154_v8  ;;  %2955 = vmatprep.subr.bf16.mxu1 %v154_v8  ;;  %v67_v13 = vpack.c.bf16 %v44_v12, %v43_v11  ;;  %v2965_v18 = vld [vmem:[%s4935_s3] ss:$8 sps:$4 sm:$0xff]   ;;  %v2967_v20 = vld [vmem:[%s4935_s3 + $0x4] ss:$8 sps:$4 sm:$0xff]   ;;  %v2968_v23 = vld [vmem:[%s4935_s3 + $0x10] ss:$8 sps:$4 sm:$0xff]  }
   0x6   :  { %157 = vmatpush1.bf16.msra.mxu0 %v151_v9  ;;  %2956 = vmatpush1.bf16.msra.mxu1 %v151_v9  ;;  %v2973_v24 = vld [vmem:[%s4935_s3 + $0x24] ss:$8 sps:$4 sm:$0xff]   ;;  %v2971_v29 = vld [vmem:[%s4935_s3 + $0x20] ss:$8 sps:$4 sm:$0xff]   ;;  %v2976_v31 = vld [vmem:[%s4935_s3 + $0x34] ss:$8 sps:$4 sm:$0xff]  }
   0x7   :  { %649 = vmatprep.subr.bf16.mxu1 %v2967_v20  ;;  %v31_v25 = vld [vmem:[%s4934_s0 + $0x20] sm:$0xff]  ;;  %v32_v26 = vld [vmem:[%s4934_s0 + $0x28] sm:$0xff]  ;;  %v2974_v33 = vld [vmem:[%s4935_s3 + $0x30] ss:$8 sps:$4 sm:$0xff]  }
   0x8   :  { %v47_v27 = vld [vmem:[%s4934_s0 + $0xa0] sm:$0xff]  ;;  %v48_v28 = vld [vmem:[%s4934_s0 + $0xa8] sm:$0xff]  ;;  %v61_v30 = vpack.c.bf16 %v32_v26, %v31_v25  ;;  %v33_v35 = vld [vmem:[%s4934_s0 + $0x30] sm:$0xff] }
   0x9   :  { %2746 = vmatmul.mubr.msk.bf16.vlgmr.msra.gmra.mrb[0].mxu0 %vm97_vm2, %v59_v10  ;;  %2754 = vmatmul.mubr.msk.bf16.vlgmr.msra.gmra.mrb[0].mxu1 %vm97_vm2, %v67_v13  ;;  %v69_v32 = vpack.c.bf16 %v48_v28, %v47_v27  ;;  %v2979_v34 = vld [vmem:[%s4935_s3 + $0x44] ss:$8 sps:$4 sm:$0xff]   ;;  %v34_v36 = vld [vmem:[%s4934_s0 + $0x38] sm:$0xff]  ;;  %v49_v37 = vld [vmem:[%s4934_s0 + $0xb0] sm:$0xff] }
   0xa   :  { %198 = vmatprep.mubr.bf16.mxu0 %v3349_v1  ;;  %278 = vmatprep.mubr.bf16.mxu1 %v3349_v1  ;;  %v50_v38 = vld [vmem:[%s4934_s0 + $0xb8] sm:$0xff]  ;;  %v2977_v39 = vld [vmem:[%s4935_s3 + $0x40] ss:$8 sps:$4 sm:$0xff]   ;;  %v62_v40 = vpack.c.bf16 %v34_v36, %v33_v35  ;;  %v2985_v44 = vld [vmem:[%s4935_s3 + $0x64] ss:$8 sps:$4 sm:$0xff]  }
   0xb   :  { %650 = vmatpush1.bf16.msra.mxu1 %v2965_v18  ;;  %v2982_v41 = vld [vmem:[%s4935_s3 + $0x54] ss:$8 sps:$4 sm:$0xff]   ;;  %v70_v42 = vpack.c.bf16 %v50_v38, %v49_v37  ;;  %v2980_v43 = vld [vmem:[%s4935_s3 + $0x50] ss:$8 sps:$4 sm:$0xff]   ;;  %v35_v45 = vld [vmem:[%s4934_s0 + $0x40] sm:$0xff] }
   0xc   :  { %651 = vmatprep.subr.bf16.mxu1 %v2970_v22  ;;  %v36_v46 = vld [vmem:[%s4934_s0 + $0x48] sm:$0xff]  ;;  %v51_v47 = vld [vmem:[%s4934_s0 + $0xc0] sm:$0xff]  ;;  %v2988_v51 = vld [vmem:[%s4935_s3 + $0x74] ss:$8 sps:$4 sm:$0xff]  }
   0xd   :  { %v52_v48 = vld [vmem:[%s4934_s0 + $0xc8] sm:$0xff]  ;;  %v63_v50 = vpack.c.bf16 %v36_v46, %v35_v45  ;;  %v2986_v53 = vld [vmem:[%s4935_s3 + $0x70] ss:$8 sps:$4 sm:$0xff]   ;;  %v2994_v61 = vld [vmem:[%s4935_s3 + $0x94] ss:$8 sps:$4 sm:$0xff]  }
   0xe   :  { %v2983_v49 = vld [vmem:[%s4935_s3 + $0x60] ss:$8 sps:$4 sm:$0xff]   ;;  %v71_v52 = vpack.c.bf16 %v52_v48, %v51_v47  ;;  %v2991_v54 = vld [vmem:[%s4935_s3 + $0x84] ss:$8 sps:$4 sm:$0xff]   ;;  %v37_v55 = vld [vmem:[%s4934_s0 + $0x50] sm:$0xff] }
   0xf   :  { %652 = vmatpush1.bf16.msra.mxu1 %v2968_v23  ;;  %v38_v56 = vld [vmem:[%s4934_s0 + $0x58] sm:$0xff]  ;;  %v53_v57 = vld [vmem:[%s4934_s0 + $0xd0] sm:$0xff]  ;;  %v2989_v59 = vld [vmem:[%s4935_s3 + $0x80] ss:$8 sps:$4 sm:$0xff]  }
  0x10   :  { %653 = vmatprep.subr.bf16.mxu1 %v2973_v24  ;;  %v54_v58 = vld [vmem:[%s4934_s0 + $0xd8] sm:$0xff]  ;;  %v64_v60 = vpack.c.bf16 %v38_v56, %v37_v55  ;;  %v2997_v0 = vld [vmem:[%s4935_s3 + $0xa4] ss:$8 sps:$4 sm:$0xff]   ;;  %v2995_v6 = vld [vmem:[%s4935_s3 + $0xa0] ss:$8 sps:$4 sm:$0xff]   ;;  %v79_v24 = vlaneseq }
  0x11   :  { %2747 = vmatmul.mubr.msk.bf16.gmra.mrb[4].mxu0 %vm97_vm2, %v60_v19  ;;  %2755 = vmatmul.mubr.msk.bf16.gmra.mrb[4].mxu1 %vm97_vm2, %v68_v21  ;;  %v72_v62 = vpack.c.bf16 %v54_v58, %v53_v57  ;;  %v2992_v63 = vld [vmem:[%s4935_s3 + $0x90] ss:$8 sps:$4 sm:$0xff]   ;;  %v39_v2 = vld [vmem:[%s4934_s0 + $0x60] sm:$0xff]  ;;  %v40_v3 = vld [vmem:[%s4934_s0 + $0x68] sm:$0xff] }
  0x12   :  { %208 = vmatprep.mubr.bf16.mxu0 %v3349_v1  ;;  %288 = vmatprep.mubr.bf16.mxu1 %v3349_v1  ;;  %v55_v4 = vld [vmem:[%s4934_s0 + $0xe0] sm:$0xff]  ;;  %v56_v5 = vld [vmem:[%s4934_s0 + $0xe8] sm:$0xff]  ;;  %v65_v7 = vpack.c.bf16 %v40_v3, %v39_v2  ;;  %v3000_v8 = vld [vmem:[%s4935_s3 + $0xb4] ss:$8 sps:$4 sm:$0xff]   ;;  %v3624_v25 = vshrl.u32 %v79_v24, 7 }
  0x13   :  { %654 = vmatpush1.bf16.msra.mxu1 %v2971_v29  ;;  %v73_v9 = vpack.c.bf16 %v56_v5, %v55_v4  ;;  %v2998_v10 = vld [vmem:[%s4935_s3 + $0xb0] ss:$8 sps:$4 sm:$0xff]   ;;  %v3003_v11 = vld [vmem:[%s4935_s3 + $0xc4] ss:$8 sps:$4 sm:$0xff]   ;;  %v3001_v16 = vld [vmem:[%s4935_s3 + $0xc0] ss:$8 sps:$4 sm:$0xff]  }
  0x14   :  { %655 = vmatprep.subr.bf16.mxu1 %v2976_v31  ;;  %v41_v12 = vld [vmem:[%s4934_s0 + $0x70] sm:$0xff]  ;;  %v42_v13 = vld [vmem:[%s4934_s0 + $0x78] sm:$0xff]  ;;  %v3009_v20 = vld [vmem:[%s4935_s3 + $0xe4] ss:$8 sps:$4 sm:$0xff]   ;;  %v81_v26 = vsub.s32 0, %v3624_v25  ;;  %v85_v28 = vsub.s32 1, %v3624_v25 }
  0x15   :  { %v57_v14 = vld [vmem:[%s4934_s0 + $0xf0] sm:$0xff]  ;;  %v58_v15 = vld [vmem:[%s4934_s0 + $0xf8] sm:$0xff]  ;;  %v66_v17 = vpack.c.bf16 %v42_v13, %v41_v12  ;;  %v3007_v21 = vld [vmem:[%s4935_s3 + $0xe0] ss:$8 sps:$4 sm:$0xff]  }
  0x16   :  { %v3006_v18 = vld [vmem:[%s4935_s3 + $0xd4] ss:$8 sps:$4 sm:$0xff]   ;;  %v3004_v19 = vld [vmem:[%s4935_s3 + $0xd0] ss:$8 sps:$4 sm:$0xff]   ;;  %v77_v27 = vld [vmem:[%s4936_s2] sm:$0x3] }
  0x17   :  { %656 = vmatpush1.bf16.msra.mxu1 %v2974_v33  ;;  %v3012_v22 = vld [vmem:[%s4935_s3 + $0xf4] ss:$8 sps:$4 sm:$0xff]   ;;  %v3010_v23 = vld [vmem:[%s4935_s3 + $0xf0] ss:$8 sps:$4 sm:$0xff]   ;;  %v3633_v29 = vrot.slane %v77_v27, %v81_v26  ;;  %v3014_v55 = vld [vmem:[%s4937_s5] sm:$0xff]  }
  0x18   :  { %657 = vmatprep.subr.bf16.mxu1 %v2979_v34  ;;  %v3015_v56 = vld [vmem:[%s4937_s5 + $0x48] sm:$0xff]  }
  0x19   :  { %2748 = vmatmul.mubr.msk.bf16.gmra.mrb[8].mxu0 %vm97_vm2, %v61_v30  ;;  %2756 = vmatmul.mubr.msk.bf16.gmra.mrb[8].mxu1 %vm97_vm2, %v69_v32  ;;  %v3637_v30 = vrot.slane %v77_v27, %v85_v28 }
  0x1a   :  { %218 = vmatprep.mubr.bf16.mxu0 %v3349_v1  ;;  %298 = vmatprep.mubr.bf16.mxu1 %v3349_v1 }
  0x1b   :  { %658 = vmatpush1.bf16.msra.mxu1 %v2977_v39 }
  0x1c   :  { %659 = vmatprep.subr.bf16.mxu1 %v2982_v41 }
  0x1f   :  { %660 = vmatpush1.bf16.msra.mxu1 %v2980_v43 }
  0x20   :  { %661 = vmatprep.subr.bf16.mxu1 %v2985_v44 }
  0x21   :  { %2749 = vmatmul.mubr.msk.bf16.gmra.mrb[12].mxu0 %vm97_vm2, %v62_v40  ;;  %2757 = vmatmul.mubr.msk.bf16.gmra.mrb[12].mxu1 %vm97_vm2, %v70_v42 }
  0x22   :  { %228 = vmatprep.mubr.bf16.mxu0 %v3349_v1  ;;  %308 = vmatprep.mubr.bf16.mxu1 %v3349_v1 }
  0x23   :  { %662 = vmatpush1.bf16.msra.mxu1 %v2983_v49  ;;  %v3013_v49 = vld [vmem:[%s4937_s5 + $0x40] sm:$0xff]  }
  0x24   :  { %663 = vmatprep.subr.bf16.mxu1 %v2988_v51  ;;  %2843 = vmatprep.subr.bf16.mxu0 %v3013_v49 }
  0x25   :  { %2844 = vmatpush3.bf16.msra.mxu0 %v3014_v55 }
  0x26   :  { %2845 = vmatprep.subr.bf16.mxu0 %v3015_v56  ;;  %v3023_v56 = vld [vmem:[%s4937_s5 + $0x68] sm:$0xff]  }
  0x27   :  { %664 = vmatpush1.bf16.msra.mxu1 %v2986_v53 }
  0x28   :  { %665 = vmatprep.subr.bf16.mxu1 %v2991_v54 }
  0x29   :  { %2750 = vmatmul.mubr.msk.bf16.gmra.mrb[16].mxu0 %vm97_vm2, %v63_v50  ;;  %2758 = vmatmul.mubr.msk.bf16.gmra.mrb[16].mxu1 %vm97_vm2, %v71_v52 }
  0x2a   :  { %238 = vmatprep.mubr.bf16.mxu0 %v3349_v1  ;;  %318 = vmatprep.mubr.bf16.mxu1 %v3349_v1 }
  0x2b   :  { %666 = vmatpush1.bf16.msra.mxu1 %v2989_v59  ;;  %v3016_v59 = vld [vmem:[%s4937_s5 + $0x8] sm:$0xff]  }
  0x2c   :  { %667 = vmatprep.subr.bf16.mxu1 %v2994_v61  ;;  %2846 = vmatpush3.bf16.msra.mxu0 %v3016_v59 }
  0x2f   :  { %668 = vmatpush1.bf16.msra.mxu1 %v2992_v63  ;;  %v3017_v63 = vld [vmem:[%s4937_s5 + $0x50] sm:$0xff]  }
  0x30   :  { %669 = vmatprep.subr.bf16.mxu1 %v2997_v0  ;;  %2847 = vmatprep.subr.bf16.mxu0 %v3017_v63 }
  0x31   :  { %2751 = vmatmul.mubr.msk.bf16.gmra.mrb[20].mxu0 %vm97_vm2, %v64_v60  ;;  %2759 = vmatmul.mubr.msk.bf16.gmra.mrb[20].mxu1 %vm97_vm2, %v72_v62 }
  0x32   :  { %248 = vmatprep.mubr.bf16.mxu0 %v3349_v1  ;;  %328 = vmatprep.mubr.bf16.mxu1 %v3349_v1 }
  0x33   :  { %670 = vmatpush1.bf16.msra.mxu1 %v2995_v6 }
  0x34   :  { %671 = vmatprep.subr.bf16.mxu1 %v3000_v8 }
  0x37   :  { %672 = vmatpush1.bf16.msra.mxu1 %v2998_v10 }
  0x38   :  { %673 = vmatprep.subr.bf16.mxu1 %v3003_v11 }
  0x39   :  { %2752 = vmatmul.mubr.msk.bf16.gmra.mrb[24].mxu0 %vm97_vm2, %v65_v7  ;;  %2760 = vmatmul.mubr.msk.bf16.gmra.mrb[24].mxu1 %vm97_vm2, %v73_v9 }
  0x3a   :  { %258 = vmatprep.mubr.bf16.mxu0 %v3349_v1  ;;  %338 = vmatprep.mubr.bf16.mxu1 %v3349_v1  ;;  %v74_v1 = vpack.c.bf16 %v58_v15, %v57_v14 }
  0x3b   :  { %674 = vmatpush1.bf16.msra.mxu1 %v3001_v16 }
  0x3c   :  { %675 = vmatprep.subr.bf16.mxu1 %v3006_v18  ;;  %v3018_v18 = vld [vmem:[%s4937_s5 + $0x10] sm:$0xff]  }
  0x3d   :  { %2848 = vmatpush3.bf16.msra.mxu0 %v3018_v18 }
  0x3f   :  { %676 = vmatpush1.bf16.msra.mxu1 %v3004_v19 }
  0x40   :  { %677 = vmatprep.subr.bf16.mxu1 %v3009_v20 }
  0x41   :  { %2753 = vmatmul.mubr.msk.bf16.gmra.mrb[28].mxu0 %vm97_vm2, %v66_v17  ;;  %2761 = vmatmul.mubr.msk.bf16.gmra.mrb[28].mxu1 %vm97_vm2, %v74_v1  ;;  %v3019_v1 = vld [vmem:[%s4937_s5 + $0x58] sm:$0xff]  }
  0x42   :  { %2849 = vmatprep.subr.bf16.mxu0 %v3019_v1 }
  0x43   :  { %678 = vmatpush1.bf16.msra.mxu1 %v3007_v21 }
  0x44   :  { %679 = vmatprep.subr.bf16.mxu1 %v3012_v22 }
  0x47   :  { %680 = vmatpush1.bf16.msra.mxu1 %v3010_v23 }
  0xdc   :  { %v190_v31 = vpop.f32.mrb[0].mxu0  ;;  %v270_v34 = vpop.f32.mrb[0].mxu1 }
  0xdd   :  { %v191_v32 = vadd.f32 %v190_v31, %v3633_v29  ;;  %v192_v33 = vpop.f32.mrb[1].mxu0  ;;  %v271_v37 = vadd.f32 %v270_v34, %v3633_v29  ;;  %v272_v38 = vpop.f32.mrb[1].mxu1 }
  0xde   :  { %v193_v35 = vadd.f32 %v192_v33, %v3637_v30  ;;  %v194_v36 = vpop.f32.mrb[2].mxu0  ;;  %v273_v42 = vadd.f32 %v272_v38, %v3637_v30  ;;  %v274_v43 = vpop.f32.mrb[2].mxu1 }
  0xdf   :  { %v349_v39 = vmax.f32 %v191_v32, 0.0  ;;  %v195_v40 = vadd.f32 %v194_v36, %v3633_v29  ;;  %v196_v41 = vpop.f32.mrb[3].mxu0  ;;  %v381_v46 = vmax.f32 %v271_v37, 0.0  ;;  %v275_v47 = vadd.f32 %v274_v43, %v3633_v29  ;;  %v276_v48 = vpop.f32.mrb[3].mxu1  ;;  %v3020_v32 = vld [vmem:[%s4937_s5 + $0x18] sm:$0xff]   ;;  %v3021_v36 = vld [vmem:[%s4937_s5 + $0x60] sm:$0xff]  }
  0xe0   :  { %v350_v44 = vmax.f32 %v193_v35, 0.0  ;;  %v197_v45 = vadd.f32 %v196_v41, %v3637_v30  ;;  %v382_v51 = vmax.f32 %v273_v42, 0.0  ;;  %v277_v52 = vadd.f32 %v276_v48, %v3637_v30  ;;  %2850 = vmatpush3.bf16.msra.mxu0 %v3020_v32 }
  0xe1   :  { %v351_v50 = vmax.f32 %v195_v40, 0.0  ;;  %v383_v54 = vmax.f32 %v275_v47, 0.0  ;;  %2851 = vmatprep.subr.bf16.mxu0 %v3021_v36 }
  0xe2   :  { %v352_v53 = vmax.f32 %v197_v45, 0.0  ;;  %v384_v58 = vmax.f32 %v277_v52, 0.0 }
  0xe3   :  { %v413_v57 = vpack.c.bf16 %v351_v50, %v349_v39  ;;  %v3659_v62 = vpack.c.bf16 %v383_v54, %v381_v46  ;;  %v3022_v50 = vld [vmem:[%s4937_s5 + $0x20] sm:$0xff]  }
  0xe4   :  { %v414_v60 = vpack.c.bf16 %v352_v53, %v350_v44  ;;  %v200_v61 = vpop.f32.mrb[4].mxu0  ;;  %v3665_v3 = vpack.c.bf16 %v384_v58, %v382_v51  ;;  %v280_v4 = vpop.f32.mrb[4].mxu1  ;;  %2852 = vmatpush3.bf16.msra.mxu0 %v3022_v50 }
  0xe5   :  { %v201_v0 = vadd.f32 %v200_v61, %v3633_v29  ;;  %v202_v2 = vpop.f32.mrb[5].mxu0  ;;  %v281_v7 = vadd.f32 %v280_v4, %v3633_v29  ;;  %v282_v8 = vpop.f32.mrb[5].mxu1  ;;  %2853 = vmatprep.subr.bf16.mxu0 %v3023_v56 }
  0xe6   :  { %v203_v5 = vadd.f32 %v202_v2, %v3637_v30  ;;  %v204_v6 = vpop.f32.mrb[6].mxu0  ;;  %681 = vmatprep.mubr.bf16.mxu1 %v414_v60  ;;  %v283_v12 = vadd.f32 %v282_v8, %v3637_v30  ;;  %v284_v13 = vpop.f32.mrb[6].mxu1 }
  0xe7   :  { %v353_v9 = vmax.f32 %v201_v0, 0.0  ;;  %v205_v10 = vadd.f32 %v204_v6, %v3633_v29  ;;  %v206_v11 = vpop.f32.mrb[7].mxu0  ;;  %682 = vmatmul.mubr.bf16.vlgmr.msra.gmra.mrb[32].mxu1 %v413_v57  ;;  %v385_v15 = vmax.f32 %v281_v7, 0.0  ;;  %v285_v16 = vadd.f32 %v284_v13, %v3633_v29  ;;  %v286_v17 = vpop.f32.mrb[7].mxu1  ;;  %v3024_v6 = vld [vmem:[%s4937_s5 + $0x28] sm:$0xff]  }
  0xe8   :  { %v207_v14 = vadd.f32 %v206_v11, %v3637_v30  ;;  %v386_v20 = vmax.f32 %v283_v12, 0.0  ;;  %v287_v21 = vadd.f32 %v286_v17, %v3637_v30  ;;  %v354_v22 = vmax.f32 %v203_v5, 0.0  ;;  %v3025_v11 = vld [vmem:[%s4937_s5 + $0x70] sm:$0xff]   ;;  %2854 = vmatpush3.bf16.msra.mxu0 %v3024_v6 }
  0xe9   :  { %v355_v19 = vmax.f32 %v205_v10, 0.0  ;;  %v387_v24 = vmax.f32 %v285_v16, 0.0  ;;  %2855 = vmatprep.subr.bf16.mxu0 %v3025_v11 }
  0xea   :  { %v356_v23 = vmax.f32 %v207_v14, 0.0  ;;  %v388_v31 = vmax.f32 %v287_v21, 0.0 }
  0xeb   :  { %v415_v27 = vpack.c.bf16 %v355_v19, %v353_v9  ;;  %v3683_v35 = vpack.c.bf16 %v387_v24, %v385_v15 }
  0xec   :  { %v416_v33 = vpack.c.bf16 %v356_v23, %v354_v22  ;;  %v210_v34 = vpop.f32.mrb[8].mxu0  ;;  %v3689_v39 = vpack.c.bf16 %v388_v31, %v386_v20  ;;  %v290_v40 = vpop.f32.mrb[8].mxu1 }
  0xed   :  { %v211_v37 = vadd.f32 %v210_v34, %v3633_v29  ;;  %v212_v38 = vpop.f32.mrb[9].mxu0  ;;  %v291_v43 = vadd.f32 %v290_v40, %v3633_v29  ;;  %v292_v44 = vpop.f32.mrb[9].mxu1 }
  0xee   :  { %v213_v41 = vadd.f32 %v212_v38, %v3637_v30  ;;  %v214_v42 = vpop.f32.mrb[10].mxu0  ;;  %691 = vmatprep.mubr.bf16.mxu1 %v416_v33  ;;  %v293_v48 = vadd.f32 %v292_v44, %v3637_v30  ;;  %v294_v49 = vpop.f32.mrb[10].mxu1 }
  0xef   :  { %v357_v45 = vmax.f32 %v211_v37, 0.0  ;;  %v215_v46 = vadd.f32 %v214_v42, %v3633_v29  ;;  %v216_v47 = vpop.f32.mrb[11].mxu0  ;;  %692 = vmatmul.mubr.bf16.gmra.mrb[36].mxu1 %v415_v27  ;;  %v389_v53 = vmax.f32 %v291_v43, 0.0  ;;  %v295_v54 = vadd.f32 %v294_v49, %v3633_v29  ;;  %v296_v55 = vpop.f32.mrb[11].mxu1  ;;  %v3026_v27 = vld [vmem:[%s4937_s5 + $0x30] sm:$0xff]  }
  0xf0   :  { %v358_v51 = vmax.f32 %v213_v41, 0.0  ;;  %v217_v52 = vadd.f32 %v216_v47, %v3637_v30  ;;  %v390_v58 = vmax.f32 %v293_v48, 0.0  ;;  %v297_v59 = vadd.f32 %v296_v55, %v3637_v30  ;;  %2856 = vmatpush3.bf16.msra.mxu0 %v3026_v27 }
  0xf1   :  { %v359_v57 = vmax.f32 %v215_v46, 0.0  ;;  %v391_v61 = vmax.f32 %v295_v54, 0.0 }
  0xf2   :  { %v360_v60 = vmax.f32 %v217_v52, 0.0  ;;  %v392_v0 = vmax.f32 %v297_v59, 0.0 }
  0xf3   :  { %v417_v63 = vpack.c.bf16 %v359_v57, %v357_v45  ;;  %v3704_v5 = vpack.c.bf16 %v391_v61, %v389_v53 }
  0xf4   :  { %v418_v2 = vpack.c.bf16 %v360_v60, %v358_v51  ;;  %v220_v4 = vpop.f32.mrb[12].mxu0  ;;  %v3710_v9 = vpack.c.bf16 %v392_v0, %v390_v58  ;;  %v300_v10 = vpop.f32.mrb[12].mxu1 }
  0xf5   :  { %v221_v7 = vadd.f32 %v220_v4, %v3633_v29  ;;  %v222_v8 = vpop.f32.mrb[13].mxu0  ;;  %v301_v14 = vadd.f32 %v300_v10, %v3633_v29  ;;  %v302_v15 = vpop.f32.mrb[13].mxu1 }
  0xf6   :  { %v223_v12 = vadd.f32 %v222_v8, %v3637_v30  ;;  %v224_v13 = vpop.f32.mrb[14].mxu0  ;;  %701 = vmatprep.mubr.bf16.mxu1 %v418_v2  ;;  %v303_v1 = vadd.f32 %v302_v15, %v3637_v30  ;;  %v304_v19 = vpop.f32.mrb[14].mxu1 }
  0xf7   :  { %v361_v16 = vmax.f32 %v221_v7, 0.0  ;;  %v225_v17 = vadd.f32 %v224_v13, %v3633_v29  ;;  %v226_v18 = vpop.f32.mrb[15].mxu0  ;;  %702 = vmatmul.mubr.bf16.gmra.mrb[40].mxu1 %v417_v63  ;;  %v393_v22 = vmax.f32 %v301_v14, 0.0  ;;  %v305_v23 = vadd.f32 %v304_v19, %v3633_v29  ;;  %v306_v24 = vpop.f32.mrb[15].mxu1 }
  0xf8   :  { %v362_v20 = vmax.f32 %v223_v12, 0.0  ;;  %v227_v21 = vadd.f32 %v226_v18, %v3637_v30  ;;  %v394_v32 = vmax.f32 %v303_v1, 0.0  ;;  %v307_v33 = vadd.f32 %v306_v24, %v3637_v30 }
  0xf9   :  { %v363_v31 = vmax.f32 %v225_v17, 0.0  ;;  %v395_v36 = vmax.f32 %v305_v23, 0.0 }
  0xfa   :  { %v364_v34 = vmax.f32 %v227_v21, 0.0  ;;  %v396_v38 = vmax.f32 %v307_v33, 0.0 }
  0xfb   :  { %v419_v37 = vpack.c.bf16 %v363_v31, %v361_v16  ;;  %v3725_v42 = vpack.c.bf16 %v395_v36, %v393_v22 }
  0xfc   :  { %v420_v40 = vpack.c.bf16 %v364_v34, %v362_v20  ;;  %v230_v41 = vpop.f32.mrb[16].mxu0  ;;  %v3728_v45 = vpack.c.bf16 %v396_v38, %v394_v32  ;;  %v310_v46 = vpop.f32.mrb[16].mxu1 }
  0xfd   :  { %v231_v43 = vadd.f32 %v230_v41, %v3633_v29  ;;  %v232_v44 = vpop.f32.mrb[17].mxu0  ;;  %v311_v49 = vadd.f32 %v310_v46, %v3633_v29  ;;  %v312_v50 = vpop.f32.mrb[17].mxu1 }
  0xfe   :  { %v233_v47 = vadd.f32 %v232_v44, %v3637_v30  ;;  %v234_v48 = vpop.f32.mrb[18].mxu0  ;;  %711 = vmatprep.mubr.bf16.mxu1 %v420_v40  ;;  %v313_v54 = vadd.f32 %v312_v50, %v3637_v30  ;;  %v314_v55 = vpop.f32.mrb[18].mxu1 }
  0xff   :  { %v365_v51 = vmax.f32 %v231_v43, 0.0  ;;  %v235_v52 = vadd.f32 %v234_v48, %v3633_v29  ;;  %v236_v53 = vpop.f32.mrb[19].mxu0  ;;  %712 = vmatmul.mubr.bf16.gmra.mrb[44].mxu1 %v419_v37  ;;  %v397_v58 = vmax.f32 %v311_v49, 0.0  ;;  %v315_v59 = vadd.f32 %v314_v55, %v3633_v29  ;;  %v316_v60 = vpop.f32.mrb[19].mxu1 }
 0x100   :  { %v366_v56 = vmax.f32 %v233_v47, 0.0  ;;  %v237_v57 = vadd.f32 %v236_v53, %v3637_v30  ;;  %v398_v63 = vmax.f32 %v313_v54, 0.0  ;;  %v317_v0 = vadd.f32 %v316_v60, %v3637_v30 }
 0x101   :  { %v367_v61 = vmax.f32 %v235_v52, 0.0  ;;  %v399_v4 = vmax.f32 %v315_v59, 0.0 }
 0x102   :  { %v368_v2 = vmax.f32 %v237_v57, 0.0  ;;  %v400_v7 = vmax.f32 %v317_v0, 0.0 }
 0x103   :  { %v421_v6 = vpack.c.bf16 %v367_v61, %v365_v51  ;;  %v3737_v11 = vpack.c.bf16 %v399_v4, %v397_v58 }
 0x104   :  { %v422_v8 = vpack.c.bf16 %v368_v2, %v366_v56  ;;  %v240_v10 = vpop.f32.mrb[20].mxu0  ;;  %v3740_v14 = vpack.c.bf16 %v400_v7, %v398_v63  ;;  %v320_v15 = vpop.f32.mrb[20].mxu1 }
 0x105   :  { %v241_v12 = vadd.f32 %v240_v10, %v3633_v29  ;;  %v242_v13 = vpop.f32.mrb[21].mxu0  ;;  %v321_v18 = vadd.f32 %v320_v15, %v3633_v29  ;;  %v322_v1 = vpop.f32.mrb[21].mxu1 }
 0x106   :  { %v243_v16 = vadd.f32 %v242_v13, %v3637_v30  ;;  %v244_v17 = vpop.f32.mrb[22].mxu0  ;;  %721 = vmatprep.mubr.bf16.mxu1 %v422_v8  ;;  %v323_v22 = vadd.f32 %v322_v1, %v3637_v30  ;;  %v324_v23 = vpop.f32.mrb[22].mxu1 }
 0x107   :  { %v369_v19 = vmax.f32 %v241_v12, 0.0  ;;  %v245_v20 = vadd.f32 %v244_v17, %v3633_v29  ;;  %v246_v21 = vpop.f32.mrb[23].mxu0  ;;  %722 = vmatmul.mubr.bf16.gmra.mrb[48].mxu1 %v421_v6  ;;  %v401_v31 = vmax.f32 %v321_v18, 0.0  ;;  %v325_v32 = vadd.f32 %v324_v23, %v3633_v29  ;;  %v326_v33 = vpop.f32.mrb[23].mxu1 }
 0x108   :  { %v370_v24 = vmax.f32 %v243_v16, 0.0  ;;  %v247_v27 = vadd.f32 %v246_v21, %v3637_v30  ;;  %v402_v36 = vmax.f32 %v323_v22, 0.0  ;;  %v327_v37 = vadd.f32 %v326_v33, %v3637_v30 }
 0x109   :  { %v371_v34 = vmax.f32 %v245_v20, 0.0  ;;  %v403_v40 = vmax.f32 %v325_v32, 0.0 }
 0x10a   :  { %v372_v38 = vmax.f32 %v247_v27, 0.0  ;;  %v404_v43 = vmax.f32 %v327_v37, 0.0 }
 0x10b   :  { %v423_v41 = vpack.c.bf16 %v371_v34, %v369_v19  ;;  %v3749_v47 = vpack.c.bf16 %v403_v40, %v401_v31 }
 0x10c   :  { %v424_v44 = vpack.c.bf16 %v372_v38, %v370_v24  ;;  %v250_v46 = vpop.f32.mrb[24].mxu0  ;;  %v3752_v50 = vpack.c.bf16 %v404_v43, %v402_v36  ;;  %v330_v51 = vpop.f32.mrb[24].mxu1 }
 0x10d   :  { %v251_v48 = vadd.f32 %v250_v46, %v3633_v29  ;;  %v252_v49 = vpop.f32.mrb[25].mxu0  ;;  %v331_v54 = vadd.f32 %v330_v51, %v3633_v29  ;;  %v332_v55 = vpop.f32.mrb[25].mxu1 }
 0x10e   :  { %v253_v52 = vadd.f32 %v252_v49, %v3637_v30  ;;  %v254_v53 = vpop.f32.mrb[26].mxu0  ;;  %731 = vmatprep.mubr.bf16.mxu1 %v424_v44  ;;  %v333_v59 = vadd.f32 %v332_v55, %v3637_v30  ;;  %v334_v60 = vpop.f32.mrb[26].mxu1 }
 0x10f   :  { %v373_v56 = vmax.f32 %v251_v48, 0.0  ;;  %v255_v57 = vadd.f32 %v254_v53, %v3633_v29  ;;  %v256_v58 = vpop.f32.mrb[27].mxu0  ;;  %732 = vmatmul.mubr.bf16.gmra.mrb[52].mxu1 %v423_v41  ;;  %v405_v0 = vmax.f32 %v331_v54, 0.0  ;;  %v335_v2 = vadd.f32 %v334_v60, %v3633_v29  ;;  %v336_v4 = vpop.f32.mrb[27].mxu1 }
 0x110   :  { %v374_v61 = vmax.f32 %v253_v52, 0.0  ;;  %v257_v63 = vadd.f32 %v256_v58, %v3637_v30  ;;  %v406_v7 = vmax.f32 %v333_v59, 0.0  ;;  %v337_v8 = vadd.f32 %v336_v4, %v3637_v30 }
 0x111   :  { %v375_v6 = vmax.f32 %v255_v57, 0.0  ;;  %v407_v12 = vmax.f32 %v335_v2, 0.0 }
 0x112   :  { %v376_v10 = vmax.f32 %v257_v63, 0.0  ;;  %v408_v15 = vmax.f32 %v337_v8, 0.0 }
 0x113   :  { %v425_v13 = vpack.c.bf16 %v375_v6, %v373_v56  ;;  %v441_v18 = vpack.c.bf16 %v407_v12, %v405_v0 }
 0x114   :  { %v426_v16 = vpack.c.bf16 %v376_v10, %v374_v61  ;;  %v260_v17 = vpop.f32.mrb[28].mxu0  ;;  %v442_v20 = vpack.c.bf16 %v408_v15, %v406_v7  ;;  %v340_v21 = vpop.f32.mrb[28].mxu1 }
 0x115   :  { %v261_v1 = vadd.f32 %v260_v17, %v3633_v29  ;;  %v262_v19 = vpop.f32.mrb[29].mxu0  ;;  %v341_v24 = vadd.f32 %v340_v21, %v3633_v29  ;;  %v342_v27 = vpop.f32.mrb[29].mxu1 }
 0x116   :  { %v263_v22 = vadd.f32 %v262_v19, %v3637_v30  ;;  %v264_v23 = vpop.f32.mrb[30].mxu0  ;;  %741 = vmatprep.mubr.bf16.mxu1 %v426_v16  ;;  %v343_v34 = vadd.f32 %v342_v27, %v3637_v30  ;;  %v344_v36 = vpop.f32.mrb[30].mxu1 }
 0x117   :  { %v377_v31 = vmax.f32 %v261_v1, 0.0  ;;  %v265_v32 = vadd.f32 %v264_v23, %v3633_v29  ;;  %v266_v33 = vpop.f32.mrb[31].mxu0  ;;  %742 = vmatmul.mubr.bf16.gmra.mrb[56].mxu1 %v425_v13  ;;  %v409_v40 = vmax.f32 %v341_v24, 0.0  ;;  %v345_v41 = vadd.f32 %v344_v36, %v3633_v29  ;;  %v346_v43 = vpop.f32.mrb[31].mxu1  ;;  %v3027_v29 = vld [vmem:[%s4937_s5 + $0x78] sm:$0xff]  }
 0x118   :  { %v378_v37 = vmax.f32 %v263_v22, 0.0  ;;  %v267_v38 = vadd.f32 %v266_v33, %v3637_v30  ;;  %v410_v46 = vmax.f32 %v343_v34, 0.0  ;;  %v347_v48 = vadd.f32 %v346_v43, %v3637_v30  ;;  %v3028_v30 = vld [vmem:[%s4937_s5 + $0x38] sm:$0xff]   ;;  %2857 = vmatprep.subr.bf16.mxu0 %v3027_v29 }
 0x119   :  { %v379_v44 = vmax.f32 %v265_v32, 0.0  ;;  %v411_v51 = vmax.f32 %v345_v41, 0.0  ;;  %2858 = vmatpush3.bf16.msra.mxu0 %v3028_v30 }
 0x11a   :  { %v380_v49 = vmax.f32 %v267_v38, 0.0  ;;  %v412_v53 = vmax.f32 %v347_v48, 0.0 }
 0x11b   :  { %v427_v52 = vpack.c.bf16 %v379_v44, %v377_v31  ;;  %v443_v55 = vpack.c.bf16 %v411_v51, %v409_v40 }
 0x11c   :  { %v428_v54 = vpack.c.bf16 %v380_v49, %v378_v37  ;;  %v444_v56 = vpack.c.bf16 %v412_v53, %v410_v46 }
 0x11e   :  { %751 = vmatprep.mubr.bf16.mxu1 %v428_v54 }
 0x11f   :  { %752 = vmatmul.mubr.bf16.gmra.mrb[60].mxu1 %v427_v52 }
 0x120   :  { %761 = vmatprep.mubr.bf16.mxu1 %v3665_v3 }
 0x127   :  { %762 = vmatmul.mubr.bf16.gmra.mrb[64].mxu1 %v3659_v62  ;;  %v477_v62 = vld [vmem:[%s4938_s4] sm:$0x3] }
 0x128   :  { %771 = vmatprep.mubr.bf16.mxu1 %v3689_v39  ;;  %v3792_v3 = vrot.slane %v477_v62, %v81_v26 }
 0x12f   :  { %772 = vmatmul.mubr.bf16.gmra.mrb[68].mxu1 %v3683_v35  ;;  %v3796_v35 = vrot.slane %v477_v62, %v85_v28 }
 0x130   :  { %781 = vmatprep.mubr.bf16.mxu1 %v3710_v9 }
 0x137   :  { %782 = vmatmul.mubr.bf16.gmra.mrb[72].mxu1 %v3704_v5 }
 0x138   :  { %791 = vmatprep.mubr.bf16.mxu1 %v3728_v45 }
 0x13f   :  { %792 = vmatmul.mubr.bf16.gmra.mrb[76].mxu1 %v3725_v42 }
 0x140   :  { %801 = vmatprep.mubr.bf16.mxu1 %v3740_v14 }
 0x147   :  { %802 = vmatmul.mubr.bf16.gmra.mrb[80].mxu1 %v3737_v11 }
 0x148   :  { %811 = vmatprep.mubr.bf16.mxu1 %v3752_v50 }
 0x14f   :  { %812 = vmatmul.mubr.bf16.gmra.mrb[84].mxu1 %v3749_v47 }
 0x150   :  { %821 = vmatprep.mubr.bf16.mxu1 %v442_v20 }
 0x157   :  { %822 = vmatmul.mubr.bf16.gmra.mrb[88].mxu1 %v441_v18 }
 0x158   :  { %831 = vmatprep.mubr.bf16.mxu1 %v444_v56 }
 0x15f   :  { %832 = vmatmul.mubr.bf16.gmra.mrb[92].mxu1 %v443_v55 }
 0x1ba   :  { %v683_v39 = vpop.f32.mrb[32].mxu1 }
 0x1bb   :  { %v684_v5 = vadd.f32 %v683_v39, %v3792_v3  ;;  %v685_v9 = vpop.f32.mrb[33].mxu1 }
 0x1bc   :  { %v686_v42 = vadd.f32 %v685_v9, %v3796_v35  ;;  %v687_v45 = vpop.f32.mrb[34].mxu1 }
 0x1bd   :  { %v688_v11 = vadd.f32 %v687_v45, %v3792_v3  ;;  %v689_v14 = vpop.f32.mrb[35].mxu1  ;;  %v842_v50 = vmax.f32 %v684_v5, 0.0 }
 0x1be   :  { %v690_v47 = vadd.f32 %v689_v14, %v3796_v35  ;;  %v843_v26 = vmax.f32 %v686_v42, 0.0 }
 0x1bf   :  { %v844_v57 = vmax.f32 %v688_v11, 0.0 }
 0x1c0   :  { %v845_v58 = vmax.f32 %v690_v47, 0.0 }
 0x1c1   :  { %v906_v59 = vpack.c.bf16 %v844_v57, %v842_v50 }
 0x1c2   :  { %v907_v25 = vpack.c.bf16 %v845_v58, %v843_v26  ;;  %v693_v28 = vpop.f32.mrb[36].mxu1 }
 0x1c3   :  { %v694_v60 = vadd.f32 %v693_v28, %v3792_v3  ;;  %v695_v61 = vpop.f32.mrb[37].mxu1 }
 0x1c4   :  { %v696_v63 = vadd.f32 %v695_v61, %v3796_v35  ;;  %v697_v0 = vpop.f32.mrb[38].mxu1  ;;  %1105 = vmatprep.mubr.bf16.mxu0 %v907_v25 }
 0x1c5   :  { %v698_v2 = vadd.f32 %v697_v0, %v3792_v3  ;;  %v699_v4 = vpop.f32.mrb[39].mxu1  ;;  %1106 = vmatmul.mubr.bf16.vlgmr.msra.gmra.mrb[32].mxu0 %v906_v59  ;;  %v846_v7 = vmax.f32 %v694_v60, 0.0 }
 0x1c6   :  { %v700_v6 = vadd.f32 %v699_v4, %v3796_v35  ;;  %v847_v10 = vmax.f32 %v696_v63, 0.0 }
 0x1c7   :  { %v848_v8 = vmax.f32 %v698_v2, 0.0 }
 0x1c8   :  { %v849_v12 = vmax.f32 %v700_v6, 0.0 }
 0x1c9   :  { %v908_v13 = vpack.c.bf16 %v848_v8, %v846_v7 }
 0x1ca   :  { %v909_v15 = vpack.c.bf16 %v849_v12, %v847_v10  ;;  %v703_v16 = vpop.f32.mrb[40].mxu1 }
 0x1cb   :  { %v704_v17 = vadd.f32 %v703_v16, %v3792_v3  ;;  %v705_v18 = vpop.f32.mrb[41].mxu1 }
 0x1cc   :  { %v706_v1 = vadd.f32 %v705_v18, %v3796_v35  ;;  %v707_v19 = vpop.f32.mrb[42].mxu1  ;;  %1113 = vmatprep.mubr.bf16.mxu0 %v909_v15 }
 0x1cd   :  { %v708_v20 = vadd.f32 %v707_v19, %v3792_v3  ;;  %v709_v21 = vpop.f32.mrb[43].mxu1  ;;  %1114 = vmatmul.mubr.bf16.gmra.mrb[36].mxu0 %v908_v13  ;;  %v850_v23 = vmax.f32 %v704_v17, 0.0 }
 0x1ce   :  { %v710_v22 = vadd.f32 %v709_v21, %v3796_v35  ;;  %v851_v27 = vmax.f32 %v706_v1, 0.0 }
 0x1cf   :  { %v852_v24 = vmax.f32 %v708_v20, 0.0 }
 0x1d0   :  { %v853_v31 = vmax.f32 %v710_v22, 0.0 }
 0x1d1   :  { %v910_v32 = vpack.c.bf16 %v852_v24, %v850_v23 }
 0x1d2   :  { %v911_v33 = vpack.c.bf16 %v853_v31, %v851_v27  ;;  %v713_v34 = vpop.f32.mrb[44].mxu1 }
 0x1d3   :  { %v714_v36 = vadd.f32 %v713_v34, %v3792_v3  ;;  %v715_v37 = vpop.f32.mrb[45].mxu1 }
 0x1d4   :  { %v716_v38 = vadd.f32 %v715_v37, %v3796_v35  ;;  %v717_v40 = vpop.f32.mrb[46].mxu1  ;;  %1121 = vmatprep.mubr.bf16.mxu0 %v911_v33 }
 0x1d5   :  { %v718_v41 = vadd.f32 %v717_v40, %v3792_v3  ;;  %v719_v43 = vpop.f32.mrb[47].mxu1  ;;  %1122 = vmatmul.mubr.bf16.gmra.mrb[40].mxu0 %v910_v32  ;;  %v854_v46 = vmax.f32 %v714_v36, 0.0 }
 0x1d6   :  { %v720_v44 = vadd.f32 %v719_v43, %v3796_v35  ;;  %v855_v49 = vmax.f32 %v716_v38, 0.0 }
 0x1d7   :  { %v856_v48 = vmax.f32 %v718_v41, 0.0 }
 0x1d8   :  { %v857_v51 = vmax.f32 %v720_v44, 0.0 }
 0x1d9   :  { %v912_v52 = vpack.c.bf16 %v856_v48, %v854_v46 }
 0x1da   :  { %v913_v53 = vpack.c.bf16 %v857_v51, %v855_v49  ;;  %v723_v54 = vpop.f32.mrb[48].mxu1 }
 0x1db   :  { %v724_v55 = vadd.f32 %v723_v54, %v3792_v3  ;;  %v725_v56 = vpop.f32.mrb[49].mxu1 }
 0x1dc   :  { %v726_v29 = vadd.f32 %v725_v56, %v3796_v35  ;;  %v727_v30 = vpop.f32.mrb[50].mxu1  ;;  %1129 = vmatprep.mubr.bf16.mxu0 %v913_v53 }
 0x1dd   :  { %v728_v62 = vadd.f32 %v727_v30, %v3792_v3  ;;  %v729_v39 = vpop.f32.mrb[51].mxu1  ;;  %1130 = vmatmul.mubr.bf16.gmra.mrb[44].mxu0 %v912_v52  ;;  %v858_v9 = vmax.f32 %v724_v55, 0.0 }
 0x1de   :  { %v730_v5 = vadd.f32 %v729_v39, %v3796_v35  ;;  %v859_v45 = vmax.f32 %v726_v29, 0.0 }
 0x1df   :  { %v860_v42 = vmax.f32 %v728_v62, 0.0 }
 0x1e0   :  { %v861_v11 = vmax.f32 %v730_v5, 0.0 }
 0x1e1   :  { %v914_v14 = vpack.c.bf16 %v860_v42, %v858_v9 }
 0x1e2   :  { %v915_v47 = vpack.c.bf16 %v861_v11, %v859_v45  ;;  %v733_v50 = vpop.f32.mrb[52].mxu1 }
 0x1e3   :  { %v734_v57 = vadd.f32 %v733_v50, %v3792_v3  ;;  %v735_v26 = vpop.f32.mrb[53].mxu1 }
 0x1e4   :  { %v736_v58 = vadd.f32 %v735_v26, %v3796_v35  ;;  %v737_v59 = vpop.f32.mrb[54].mxu1  ;;  %1137 = vmatprep.mubr.bf16.mxu0 %v915_v47 }
 0x1e5   :  { %v738_v25 = vadd.f32 %v737_v59, %v3792_v3  ;;  %v739_v28 = vpop.f32.mrb[55].mxu1  ;;  %1138 = vmatmul.mubr.bf16.gmra.mrb[48].mxu0 %v914_v14  ;;  %v862_v61 = vmax.f32 %v734_v57, 0.0 }
 0x1e6   :  { %v740_v60 = vadd.f32 %v739_v28, %v3796_v35  ;;  %v863_v0 = vmax.f32 %v736_v58, 0.0 }
 0x1e7   :  { %v864_v63 = vmax.f32 %v738_v25, 0.0 }
 0x1e8   :  { %v865_v2 = vmax.f32 %v740_v60, 0.0 }
 0x1e9   :  { %v916_v4 = vpack.c.bf16 %v864_v63, %v862_v61 }
 0x1ea   :  { %v917_v6 = vpack.c.bf16 %v865_v2, %v863_v0  ;;  %v743_v7 = vpop.f32.mrb[56].mxu1 }
 0x1eb   :  { %v744_v8 = vadd.f32 %v743_v7, %v3792_v3  ;;  %v745_v10 = vpop.f32.mrb[57].mxu1 }
 0x1ec   :  { %v746_v12 = vadd.f32 %v745_v10, %v3796_v35  ;;  %v747_v13 = vpop.f32.mrb[58].mxu1  ;;  %1145 = vmatprep.mubr.bf16.mxu0 %v917_v6 }
 0x1ed   :  { %v748_v15 = vadd.f32 %v747_v13, %v3792_v3  ;;  %v749_v16 = vpop.f32.mrb[59].mxu1  ;;  %1146 = vmatmul.mubr.bf16.gmra.mrb[52].mxu0 %v916_v4  ;;  %v866_v18 = vmax.f32 %v744_v8, 0.0 }
 0x1ee   :  { %v750_v17 = vadd.f32 %v749_v16, %v3796_v35  ;;  %v867_v19 = vmax.f32 %v746_v12, 0.0 }
 0x1ef   :  { %v868_v1 = vmax.f32 %v748_v15, 0.0 }
 0x1f0   :  { %v869_v20 = vmax.f32 %v750_v17, 0.0 }
 0x1f1   :  { %v918_v21 = vpack.c.bf16 %v868_v1, %v866_v18 }
 0x1f2   :  { %v919_v22 = vpack.c.bf16 %v869_v20, %v867_v19  ;;  %v753_v23 = vpop.f32.mrb[60].mxu1 }
 0x1f3   :  { %v754_v24 = vadd.f32 %v753_v23, %v3792_v3  ;;  %v755_v27 = vpop.f32.mrb[61].mxu1 }
 0x1f4   :  { %v756_v31 = vadd.f32 %v755_v27, %v3796_v35  ;;  %v757_v32 = vpop.f32.mrb[62].mxu1  ;;  %1153 = vmatprep.mubr.bf16.mxu0 %v919_v22 }
 0x1f5   :  { %v758_v33 = vadd.f32 %v757_v32, %v3792_v3  ;;  %v759_v34 = vpop.f32.mrb[63].mxu1  ;;  %1154 = vmatmul.mubr.bf16.gmra.mrb[56].mxu0 %v918_v21  ;;  %v870_v37 = vmax.f32 %v754_v24, 0.0 }
 0x1f6   :  { %v760_v36 = vadd.f32 %v759_v34, %v3796_v35  ;;  %v871_v40 = vmax.f32 %v756_v31, 0.0 }
 0x1f7   :  { %v872_v38 = vmax.f32 %v758_v33, 0.0 }
 0x1f8   :  { %v873_v41 = vmax.f32 %v760_v36, 0.0 }
 0x1f9   :  { %v920_v43 = vpack.c.bf16 %v872_v38, %v870_v37 }
 0x1fa   :  { %v921_v44 = vpack.c.bf16 %v873_v41, %v871_v40  ;;  %v763_v46 = vpop.f32.mrb[64].mxu1 }
 0x1fb   :  { %v764_v48 = vadd.f32 %v763_v46, %v3792_v3  ;;  %v765_v49 = vpop.f32.mrb[65].mxu1 }
 0x1fc   :  { %v766_v51 = vadd.f32 %v765_v49, %v3796_v35  ;;  %v767_v52 = vpop.f32.mrb[66].mxu1  ;;  %1161 = vmatprep.mubr.bf16.mxu0 %v921_v44 }
 0x1fd   :  { %v768_v53 = vadd.f32 %v767_v52, %v3792_v3  ;;  %v769_v54 = vpop.f32.mrb[67].mxu1  ;;  %1162 = vmatmul.mubr.bf16.gmra.mrb[60].mxu0 %v920_v43  ;;  %v874_v56 = vmax.f32 %v764_v48, 0.0 }
 0x1fe   :  { %v770_v55 = vadd.f32 %v769_v54, %v3796_v35  ;;  %v875_v30 = vmax.f32 %v766_v51, 0.0 }
 0x1ff   :  { %v876_v29 = vmax.f32 %v768_v53, 0.0 }
 0x200   :  { %v877_v62 = vmax.f32 %v770_v55, 0.0 }
 0x201   :  { %v922_v39 = vpack.c.bf16 %v876_v29, %v874_v56 }
 0x202   :  { %v923_v5 = vpack.c.bf16 %v877_v62, %v875_v30  ;;  %v773_v9 = vpop.f32.mrb[68].mxu1 }
 0x203   :  { %v774_v42 = vadd.f32 %v773_v9, %v3792_v3  ;;  %v775_v45 = vpop.f32.mrb[69].mxu1 }
 0x204   :  { %v776_v11 = vadd.f32 %v775_v45, %v3796_v35  ;;  %v777_v14 = vpop.f32.mrb[70].mxu1  ;;  %1169 = vmatprep.mubr.bf16.mxu0 %v923_v5 }
 0x205   :  { %v778_v47 = vadd.f32 %v777_v14, %v3792_v3  ;;  %v779_v50 = vpop.f32.mrb[71].mxu1  ;;  %1170 = vmatmul.mubr.bf16.gmra.mrb[64].mxu0 %v922_v39  ;;  %v878_v26 = vmax.f32 %v774_v42, 0.0 }
 0x206   :  { %v780_v57 = vadd.f32 %v779_v50, %v3796_v35  ;;  %v879_v59 = vmax.f32 %v776_v11, 0.0 }
 0x207   :  { %v880_v58 = vmax.f32 %v778_v47, 0.0 }
 0x208   :  { %v881_v25 = vmax.f32 %v780_v57, 0.0 }
 0x209   :  { %v924_v28 = vpack.c.bf16 %v880_v58, %v878_v26 }
 0x20a   :  { %v925_v60 = vpack.c.bf16 %v881_v25, %v879_v59  ;;  %v783_v61 = vpop.f32.mrb[72].mxu1 }
 0x20b   :  { %v784_v63 = vadd.f32 %v783_v61, %v3792_v3  ;;  %v785_v0 = vpop.f32.mrb[73].mxu1 }
 0x20c   :  { %v786_v2 = vadd.f32 %v785_v0, %v3796_v35  ;;  %v787_v4 = vpop.f32.mrb[74].mxu1  ;;  %1177 = vmatprep.mubr.bf16.mxu0 %v925_v60 }
 0x20d   :  { %v788_v6 = vadd.f32 %v787_v4, %v3792_v3  ;;  %v789_v7 = vpop.f32.mrb[75].mxu1  ;;  %1178 = vmatmul.mubr.bf16.gmra.mrb[68].mxu0 %v924_v28  ;;  %v882_v10 = vmax.f32 %v784_v63, 0.0 }
 0x20e   :  { %v790_v8 = vadd.f32 %v789_v7, %v3796_v35  ;;  %v883_v13 = vmax.f32 %v786_v2, 0.0 }
 0x20f   :  { %v884_v12 = vmax.f32 %v788_v6, 0.0 }
 0x210   :  { %v885_v15 = vmax.f32 %v790_v8, 0.0 }
 0x211   :  { %v926_v16 = vpack.c.bf16 %v884_v12, %v882_v10 }
 0x212   :  { %v927_v17 = vpack.c.bf16 %v885_v15, %v883_v13  ;;  %v793_v18 = vpop.f32.mrb[76].mxu1 }
 0x213   :  { %v794_v1 = vadd.f32 %v793_v18, %v3792_v3  ;;  %v795_v19 = vpop.f32.mrb[77].mxu1 }
 0x214   :  { %v796_v20 = vadd.f32 %v795_v19, %v3796_v35  ;;  %v797_v21 = vpop.f32.mrb[78].mxu1  ;;  %1185 = vmatprep.mubr.bf16.mxu0 %v927_v17 }
 0x215   :  { %v798_v22 = vadd.f32 %v797_v21, %v3792_v3  ;;  %v799_v23 = vpop.f32.mrb[79].mxu1  ;;  %1186 = vmatmul.mubr.bf16.gmra.mrb[72].mxu0 %v926_v16  ;;  %v886_v27 = vmax.f32 %v794_v1, 0.0 }
 0x216   :  { %v800_v24 = vadd.f32 %v799_v23, %v3796_v35  ;;  %v887_v32 = vmax.f32 %v796_v20, 0.0 }
 0x217   :  { %v888_v31 = vmax.f32 %v798_v22, 0.0 }
 0x218   :  { %v889_v33 = vmax.f32 %v800_v24, 0.0 }
 0x219   :  { %v928_v34 = vpack.c.bf16 %v888_v31, %v886_v27  ;;  %v3865_v31 = vld [vmem:[%s4939_s6] ss:$0 sm:$0xff]  ;;  %s3351_s6 = smov 8  }
 0x21a   :  { %v929_v36 = vpack.c.bf16 %v889_v33, %v887_v32  ;;  %v803_v37 = vpop.f32.mrb[80].mxu1 }
 0x21b   :  { %v804_v38 = vadd.f32 %v803_v37, %v3792_v3  ;;  %v805_v40 = vpop.f32.mrb[81].mxu1 }
 0x21c   :  { %v806_v41 = vadd.f32 %v805_v40, %v3796_v35  ;;  %v807_v43 = vpop.f32.mrb[82].mxu1  ;;  %1193 = vmatprep.mubr.bf16.mxu0 %v929_v36 }
 0x21d   :  { %v808_v44 = vadd.f32 %v807_v43, %v3792_v3  ;;  %v809_v46 = vpop.f32.mrb[83].mxu1  ;;  %1194 = vmatmul.mubr.bf16.gmra.mrb[76].mxu0 %v928_v34  ;;  %v890_v49 = vmax.f32 %v804_v38, 0.0 }
 0x21e   :  { %v810_v48 = vadd.f32 %v809_v46, %v3796_v35  ;;  %v891_v52 = vmax.f32 %v806_v41, 0.0 }
 0x21f   :  { %v892_v51 = vmax.f32 %v808_v44, 0.0 }
 0x220   :  { %v893_v53 = vmax.f32 %v810_v48, 0.0 }
 0x221   :  { %v930_v54 = vpack.c.bf16 %v892_v51, %v890_v49 }
 0x222   :  { %v931_v55 = vpack.c.bf16 %v893_v53, %v891_v52  ;;  %v813_v56 = vpop.f32.mrb[84].mxu1 }
 0x223   :  { %v814_v29 = vadd.f32 %v813_v56, %v3792_v3  ;;  %v815_v30 = vpop.f32.mrb[85].mxu1 }
 0x224   :  { %v816_v62 = vadd.f32 %v815_v30, %v3796_v35  ;;  %v817_v39 = vpop.f32.mrb[86].mxu1  ;;  %1201 = vmatprep.mubr.bf16.mxu0 %v931_v55 }
 0x225   :  { %v818_v5 = vadd.f32 %v817_v39, %v3792_v3  ;;  %v819_v9 = vpop.f32.mrb[87].mxu1  ;;  %1202 = vmatmul.mubr.bf16.gmra.mrb[80].mxu0 %v930_v54  ;;  %v894_v45 = vmax.f32 %v814_v29, 0.0 }
 0x226   :  { %v820_v42 = vadd.f32 %v819_v9, %v3796_v35  ;;  %v895_v14 = vmax.f32 %v816_v62, 0.0 }
 0x227   :  { %v896_v11 = vmax.f32 %v818_v5, 0.0 }
 0x228   :  { %v897_v47 = vmax.f32 %v820_v42, 0.0 }
 0x229   :  { %v932_v50 = vpack.c.bf16 %v896_v11, %v894_v45 }
 0x22a   :  { %v933_v57 = vpack.c.bf16 %v897_v47, %v895_v14  ;;  %v823_v26 = vpop.f32.mrb[88].mxu1 }
 0x22b   :  { %v824_v58 = vadd.f32 %v823_v26, %v3792_v3  ;;  %v825_v59 = vpop.f32.mrb[89].mxu1 }
 0x22c   :  { %v826_v25 = vadd.f32 %v825_v59, %v3796_v35  ;;  %v827_v28 = vpop.f32.mrb[90].mxu1  ;;  %1209 = vmatprep.mubr.bf16.mxu0 %v933_v57 }
 0x22d   :  { %v828_v60 = vadd.f32 %v827_v28, %v3792_v3  ;;  %v829_v61 = vpop.f32.mrb[91].mxu1  ;;  %1210 = vmatmul.mubr.bf16.gmra.mrb[84].mxu0 %v932_v50  ;;  %v898_v0 = vmax.f32 %v824_v58, 0.0 }
 0x22e   :  { %v830_v63 = vadd.f32 %v829_v61, %v3796_v35  ;;  %v899_v4 = vmax.f32 %v826_v25, 0.0 }
 0x22f   :  { %v900_v2 = vmax.f32 %v828_v60, 0.0 }
 0x230   :  { %v901_v6 = vmax.f32 %v830_v63, 0.0 }
 0x231   :  { %v934_v7 = vpack.c.bf16 %v900_v2, %v898_v0 }
 0x232   :  { %v935_v8 = vpack.c.bf16 %v901_v6, %v899_v4  ;;  %v833_v10 = vpop.f32.mrb[92].mxu1 }
 0x233   :  { %v834_v12 = vadd.f32 %v833_v10, %v3792_v3  ;;  %v835_v13 = vpop.f32.mrb[93].mxu1 }
 0x234   :  { %v836_v15 = vadd.f32 %v835_v13, %v3796_v35  ;;  %v837_v16 = vpop.f32.mrb[94].mxu1  ;;  %1217 = vmatprep.mubr.bf16.mxu0 %v935_v8 }
 0x235   :  { %v838_v17 = vadd.f32 %v837_v16, %v3792_v3  ;;  %v839_v18 = vpop.f32.mrb[95].mxu1  ;;  %1218 = vmatmul.mubr.bf16.gmra.mrb[88].mxu0 %v934_v7  ;;  %v902_v19 = vmax.f32 %v834_v12, 0.0 }
 0x236   :  { %v840_v1 = vadd.f32 %v839_v18, %v3796_v35  ;;  %v903_v21 = vmax.f32 %v836_v15, 0.0 }
 0x237   :  { %v904_v20 = vmax.f32 %v838_v17, 0.0 }
 0x238   :  { %v905_v22 = vmax.f32 %v840_v1, 0.0 }
 0x239   :  { %v936_v23 = vpack.c.bf16 %v904_v20, %v902_v19 }
 0x23a   :  { %v937_v24 = vpack.c.bf16 %v905_v22, %v903_v21 }
 0x23c   :  { %1225 = vmatprep.mubr.bf16.mxu0 %v937_v24 }
 0x23d   :  { %1226 = vmatmul.mubr.bf16.gmra.mrb[92].mxu0 %v936_v23 }
 0x298   :  { %v2859_v27 = vpop.f32.mrb[32].mxu0 }
 0x299   :  { %v2860_v32 = vpop.f32.mrb[33].mxu0 }
 0x29a   :  { %v2861_v3 = vadd.f32 %v2860_v32, %v2859_v27  ;;  %v2862_v33 = vpop.f32.mrb[34].mxu0 }
 0x29b   :  { %v2863_v34 = vpop.f32.mrb[35].mxu0 }
 0x29c   :  { %v3868_v35 = vadd.f32 %v2861_v3, %v3865_v31  ;;  %v2864_v36 = vadd.f32 %v2863_v34, %v2862_v33 }
 0x29e   :  { %v3871_v37 = vadd.f32 %v2864_v36, %v3865_v31  ;;  %v1234_v38 = vmax.f32 %v3868_v35, -2.0 }
 0x2a0   :  { %v2865_v40 = vpop.f32.mrb[36].mxu0  ;;  %v1266_v41 = vmin.f32 %v1234_v38, 20.0  ;;  %v1235_v43 = vmax.f32 %v3871_v37, -2.0 }
 0x2a1   :  { %v2866_v44 = vpop.f32.mrb[37].mxu0 }
 0x2a2   :  { %v2867_v46 = vadd.f32 %v2866_v44, %v2865_v40  ;;  %v2868_v48 = vpop.f32.mrb[38].mxu0  ;;  %1810 = vrot.lane.b32.xlu0 %v1266_v41, %s3351_s6  ;;  %v1298_v49 = vmul.f32 1.442695, %v1266_v41  ;;  %v1267_v51 = vmin.f32 %v1235_v43, 20.0 }
 0x2a3   :  { %v2869_v52 = vpop.f32.mrb[39].mxu0 }
 0x2a4   :  { %v3877_v53 = vadd.f32 %v2867_v46, %v3865_v31  ;;  %3029 = vpow2.f32 %v1298_v49  ;;  %v2870_v54 = vadd.f32 %v2869_v52, %v2868_v48  ;;  %1812 = vrot.lane.b32.xlu1 %v1267_v51, %s3351_s6  ;;  %v1300_v55 = vmul.f32 1.442695, %v1267_v51 }
 0x2a6   :  { %v3881_v56 = vadd.f32 %v2870_v54, %v3865_v31  ;;  %v1236_v29 = vmax.f32 %v3877_v53, -2.0  ;;  %3031 = vpow2.f32 %v1300_v55 }
 0x2a8   :  { %v2871_v30 = vpop.f32.mrb[40].mxu0  ;;  %v1268_v62 = vmin.f32 %v1236_v29, 20.0  ;;  %v1237_v39 = vmax.f32 %v3881_v56, -2.0 }
 0x2a9   :  { %v2872_v5 = vpop.f32.mrb[41].mxu0 }
 0x2aa   :  { %v2873_v9 = vadd.f32 %v2872_v5, %v2871_v30  ;;  %v2874_v42 = vpop.f32.mrb[42].mxu0  ;;  %v1302_v45 = vmul.f32 1.442695, %v1268_v62  ;;  %1814 = vrot.lane.b32.xlu0 %v1268_v62, %s3351_s6  ;;  %v1269_v11 = vmin.f32 %v1237_v39, 20.0 }
 0x2ab   :  { %v2875_v14 = vpop.f32.mrb[43].mxu0 }
 0x2ac   :  { %v3887_v47 = vadd.f32 %v2873_v9, %v3865_v31  ;;  %3033 = vpow2.f32 %v1302_v45  ;;  %v2876_v50 = vadd.f32 %v2875_v14, %v2874_v42  ;;  %1816 = vrot.lane.b32.xlu1 %v1269_v11, %s3351_s6  ;;  %v1304_v57 = vmul.f32 1.442695, %v1269_v11 }
 0x2ae   :  { %v3030_v26 = vpop.eup %3029  ;;  %v3891_v58 = vadd.f32 %v2876_v50, %v3865_v31  ;;  %v1238_v59 = vmax.f32 %v3887_v47, -2.0  ;;  %3035 = vpow2.f32 %v1304_v57 }
 0x2af   :  { %1394 = vrot.lane.b32.xlu0 %v3030_v26, %s3351_s6 }
 0x2b0   :  { %v2877_v25 = vpop.f32.mrb[44].mxu0  ;;  %v1239_v28 = vmax.f32 %v3891_v58, -2.0  ;;  %v1270_v60 = vmin.f32 %v1238_v59, 20.0  ;;  %v3032_v63 = vpop.eup %3031 }
 0x2b1   :  { %v2878_v61 = vpop.f32.mrb[45].mxu0 }
 0x2b2   :  { %v2879_v0 = vadd.f32 %v2878_v61, %v2877_v25  ;;  %v2880_v2 = vpop.f32.mrb[46].mxu0  ;;  %v1271_v4 = vmin.f32 %v1239_v28, 20.0  ;;  %v1306_v6 = vmul.f32 1.442695, %v1270_v60 }
 0x2b3   :  { %v2881_v7 = vpop.f32.mrb[47].mxu0  ;;  %1396 = vrot.lane.b32.xlu0 %v3032_v63, %s3351_s6 }
 0x2b4   :  { %v3898_v8 = vadd.f32 %v2879_v0, %v3865_v31  ;;  %v2882_v10 = vadd.f32 %v2881_v7, %v2880_v2  ;;  %1820 = vrot.lane.b32.xlu1 %v1271_v4, %s3351_s6  ;;  %3037 = vpow2.f32 %v1306_v6  ;;  %v1308_v12 = vmul.f32 1.442695, %v1271_v4 }
 0x2b6   :  { %v3034_v13 = vpop.eup %3033  ;;  %v3902_v15 = vadd.f32 %v2882_v10, %v3865_v31  ;;  %v1240_v16 = vmax.f32 %v3898_v8, -2.0  ;;  %3039 = vpow2.f32 %v1308_v12 }
 0x2b7   :  { %1818 = vrot.lane.b32.xlu0 %v1270_v60, %s3351_s6 }
 0x2b8   :  { %v2883_v17 = vpop.f32.mrb[48].mxu0  ;;  %1398 = vrot.lane.b32.xlu1 %v3034_v13, %s3351_s6  ;;  %v1272_v18 = vmin.f32 %v1240_v16, 20.0  ;;  %v1241_v1 = vmax.f32 %v3902_v15, -2.0  ;;  %v3036_v24 = vpop.eup %3035 }
 0x2b9   :  { %v2884_v19 = vpop.f32.mrb[49].mxu0 }
 0x2ba   :  { %v2885_v20 = vadd.f32 %v2884_v19, %v2883_v17  ;;  %v2886_v21 = vpop.f32.mrb[50].mxu0  ;;  %v1310_v22 = vmul.f32 1.442695, %v1272_v18  ;;  %v1273_v23 = vmin.f32 %v1241_v1, 20.0 }
 0x2bb   :  { %v2887_v27 = vpop.f32.mrb[51].mxu0  ;;  %1822 = vrot.lane.b32.xlu0 %v1272_v18, %s3351_s6 }
 0x2bc   :  { %v3910_v32 = vadd.f32 %v2885_v20, %v3865_v31  ;;  %v2888_v3 = vadd.f32 %v2887_v27, %v2886_v21  ;;  %3041 = vpow2.f32 %v1310_v22  ;;  %1400 = vrot.lane.b32.xlu1 %v3036_v24, %s3351_s6  ;;  %v1312_v33 = vmul.f32 1.442695, %v1273_v23 }
 0x2be   :  { %v3038_v34 = vpop.eup %3037  ;;  %v3914_v36 = vadd.f32 %v2888_v3, %v3865_v31  ;;  %v1242_v38 = vmax.f32 %v3910_v32, -2.0  ;;  %3043 = vpow2.f32 %v1312_v33 }
 0x2bf   :  { %1402 = vrot.lane.b32.xlu0 %v3038_v34, %s3351_s6 }
 0x2c0   :  { %v2889_v40 = vpop.f32.mrb[52].mxu0  ;;  %1824 = vrot.lane.b32.xlu1 %v1273_v23, %s3351_s6  ;;  %v1274_v41 = vmin.f32 %v1242_v38, 20.0  ;;  %v1243_v43 = vmax.f32 %v3914_v36, -2.0  ;;  %v3040_v52 = vpop.eup %3039 }
 0x2c1   :  { %v2890_v44 = vpop.f32.mrb[53].mxu0 }
 0x2c2   :  { %v2891_v46 = vadd.f32 %v2890_v44, %v2889_v40  ;;  %v2892_v48 = vpop.f32.mrb[54].mxu0  ;;  %v1314_v49 = vmul.f32 1.442695, %v1274_v41  ;;  %v1275_v51 = vmin.f32 %v1243_v43, 20.0 }
 0x2c3   :  { %v2893_v54 = vpop.f32.mrb[55].mxu0  ;;  %1826 = vrot.lane.b32.xlu0 %v1274_v41, %s3351_s6 }
 0x2c4   :  { %v3922_v55 = vadd.f32 %v2891_v46, %v3865_v31  ;;  %v2894_v29 = vadd.f32 %v2893_v54, %v2892_v48  ;;  %3045 = vpow2.f32 %v1314_v49  ;;  %1404 = vrot.lane.b32.xlu1 %v3040_v52, %s3351_s6  ;;  %v1316_v30 = vmul.f32 1.442695, %v1275_v51 }
 0x2c6   :  { %v3042_v62 = vpop.eup %3041  ;;  %v3926_v39 = vadd.f32 %v2894_v29, %v3865_v31  ;;  %v1244_v5 = vmax.f32 %v3922_v55, -2.0  ;;  %3047 = vpow2.f32 %v1316_v30 }
 0x2c7   :  { %1406 = vrot.lane.b32.xlu0 %v3042_v62, %s3351_s6 }
 0x2c8   :  { %v2895_v9 = vpop.f32.mrb[56].mxu0  ;;  %1828 = vrot.lane.b32.xlu1 %v1275_v51, %s3351_s6  ;;  %v1276_v42 = vmin.f32 %v1244_v5, 20.0  ;;  %v1245_v45 = vmax.f32 %v3926_v39, -2.0  ;;  %v3044_v59 = vpop.eup %3043 }
 0x2c9   :  { %v2896_v11 = vpop.f32.mrb[57].mxu0 }
 0x2ca   :  { %v2897_v14 = vadd.f32 %v2896_v11, %v2895_v9  ;;  %v2898_v50 = vpop.f32.mrb[58].mxu0  ;;  %v1318_v57 = vmul.f32 1.442695, %v1276_v42  ;;  %v1277_v26 = vmin.f32 %v1245_v45, 20.0 }
 0x2cb   :  { %v2899_v25 = vpop.f32.mrb[59].mxu0  ;;  %1830 = vrot.lane.b32.xlu0 %v1276_v42, %s3351_s6 }
 0x2cc   :  { %v3934_v28 = vadd.f32 %v2897_v14, %v3865_v31  ;;  %v2900_v60 = vadd.f32 %v2899_v25, %v2898_v50  ;;  %3049 = vpow2.f32 %v1318_v57  ;;  %1408 = vrot.lane.b32.xlu1 %v3044_v59, %s3351_s6  ;;  %v1320_v61 = vmul.f32 1.442695, %v1277_v26 }
 0x2ce   :  { %v3046_v63 = vpop.eup %3045  ;;  %v3938_v0 = vadd.f32 %v2900_v60, %v3865_v31  ;;  %v1246_v2 = vmax.f32 %v3934_v28, -2.0  ;;  %3051 = vpow2.f32 %v1320_v61 }
 0x2cf   :  { %1410 = vrot.lane.b32.xlu0 %v3046_v63, %s3351_s6 }
 0x2d0   :  { %v2901_v4 = vpop.f32.mrb[60].mxu0  ;;  %1832 = vrot.lane.b32.xlu1 %v1277_v26, %s3351_s6  ;;  %v1278_v6 = vmin.f32 %v1246_v2, 20.0  ;;  %v1247_v7 = vmax.f32 %v3938_v0, -2.0  ;;  %v3048_v18 = vpop.eup %3047 }
 0x2d1   :  { %v2902_v10 = vpop.f32.mrb[61].mxu0 }
 0x2d2   :  { %v2903_v12 = vadd.f32 %v2902_v10, %v2901_v4  ;;  %v2904_v13 = vpop.f32.mrb[62].mxu0  ;;  %v1322_v16 = vmul.f32 1.442695, %v1278_v6  ;;  %v1279_v17 = vmin.f32 %v1247_v7, 20.0 }
 0x2d3   :  { %v2905_v1 = vpop.f32.mrb[63].mxu0  ;;  %1834 = vrot.lane.b32.xlu0 %v1278_v6, %s3351_s6 }
 0x2d4   :  { %v3946_v19 = vadd.f32 %v2903_v12, %v3865_v31  ;;  %v2906_v20 = vadd.f32 %v2905_v1, %v2904_v13  ;;  %3053 = vpow2.f32 %v1322_v16  ;;  %1412 = vrot.lane.b32.xlu1 %v3048_v18, %s3351_s6  ;;  %v1324_v21 = vmul.f32 1.442695, %v1279_v17 }
 0x2d6   :  { %v3050_v22 = vpop.eup %3049  ;;  %v3950_v23 = vadd.f32 %v2906_v20, %v3865_v31  ;;  %v1248_v24 = vmax.f32 %v3946_v19, -2.0  ;;  %3055 = vpow2.f32 %v1324_v21 }
 0x2d7   :  { %1414 = vrot.lane.b32.xlu0 %v3050_v22, %s3351_s6 }
 0x2d8   :  { %v2907_v27 = vpop.f32.mrb[64].mxu0  ;;  %1836 = vrot.lane.b32.xlu1 %v1279_v17, %s3351_s6  ;;  %v1280_v3 = vmin.f32 %v1248_v24, 20.0  ;;  %v1249_v33 = vmax.f32 %v3950_v23, -2.0  ;;  %v3052_v44 = vpop.eup %3051 }
 0x2d9   :  { %v2908_v34 = vpop.f32.mrb[65].mxu0 }
 0x2da   :  { %v2909_v38 = vadd.f32 %v2908_v34, %v2907_v27  ;;  %v2910_v40 = vpop.f32.mrb[66].mxu0  ;;  %v1326_v41 = vmul.f32 1.442695, %v1280_v3  ;;  %v1281_v43 = vmin.f32 %v1249_v33, 20.0 }
 0x2db   :  { %v2911_v46 = vpop.f32.mrb[67].mxu0  ;;  %1838 = vrot.lane.b32.xlu0 %v1280_v3, %s3351_s6 }
 0x2dc   :  { %v3958_v48 = vadd.f32 %v2909_v38, %v3865_v31  ;;  %v2912_v49 = vadd.f32 %v2911_v46, %v2910_v40  ;;  %3057 = vpow2.f32 %v1326_v41  ;;  %1416 = vrot.lane.b32.xlu1 %v3052_v44, %s3351_s6  ;;  %v1328_v51 = vmul.f32 1.442695, %v1281_v43 }
 0x2de   :  { %v3054_v52 = vpop.eup %3053  ;;  %v3962_v54 = vadd.f32 %v2912_v49, %v3865_v31  ;;  %v1250_v29 = vmax.f32 %v3958_v48, -2.0  ;;  %3059 = vpow2.f32 %v1328_v51 }
 0x2df   :  { %1418 = vrot.lane.b32.xlu0 %v3054_v52, %s3351_s6 }
 0x2e0   :  { %v2913_v30 = vpop.f32.mrb[68].mxu0  ;;  %1840 = vrot.lane.b32.xlu1 %v1281_v43, %s3351_s6  ;;  %v1282_v62 = vmin.f32 %v1250_v29, 20.0  ;;  %v1251_v5 = vmax.f32 %v3962_v54, -2.0  ;;  %v3056_v50 = vpop.eup %3055 }
 0x2e1   :  { %v2914_v9 = vpop.f32.mrb[69].mxu0 }
 0x2e2   :  { %v2915_v42 = vadd.f32 %v2914_v9, %v2913_v30  ;;  %v2916_v45 = vpop.f32.mrb[70].mxu0  ;;  %v1330_v11 = vmul.f32 1.442695, %v1282_v62  ;;  %v1283_v14 = vmin.f32 %v1251_v5, 20.0 }
 0x2e3   :  { %v2917_v57 = vpop.f32.mrb[71].mxu0  ;;  %1842 = vrot.lane.b32.xlu0 %v1282_v62, %s3351_s6 }
 0x2e4   :  { %v3970_v26 = vadd.f32 %v2915_v42, %v3865_v31  ;;  %v2918_v59 = vadd.f32 %v2917_v57, %v2916_v45  ;;  %3061 = vpow2.f32 %v1330_v11  ;;  %1420 = vrot.lane.b32.xlu1 %v3056_v50, %s3351_s6  ;;  %v1332_v25 = vmul.f32 1.442695, %v1283_v14 }
 0x2e6   :  { %v3058_v60 = vpop.eup %3057  ;;  %v3974_v61 = vadd.f32 %v2918_v59, %v3865_v31  ;;  %v1252_v63 = vmax.f32 %v3970_v26, -2.0  ;;  %3063 = vpow2.f32 %v1332_v25 }
 0x2e7   :  { %1422 = vrot.lane.b32.xlu0 %v3058_v60, %s3351_s6 }
 0x2e8   :  { %v2919_v2 = vpop.f32.mrb[72].mxu0  ;;  %1844 = vrot.lane.b32.xlu1 %v1283_v14, %s3351_s6  ;;  %v1284_v4 = vmin.f32 %v1252_v63, 20.0  ;;  %v1253_v6 = vmax.f32 %v3974_v61, -2.0  ;;  %v3060_v17 = vpop.eup %3059 }
 0x2e9   :  { %v2920_v7 = vpop.f32.mrb[73].mxu0 }
 0x2ea   :  { %v2921_v10 = vadd.f32 %v2920_v7, %v2919_v2  ;;  %v2922_v12 = vpop.f32.mrb[74].mxu0  ;;  %v1334_v13 = vmul.f32 1.442695, %v1284_v4  ;;  %v1285_v16 = vmin.f32 %v1253_v6, 20.0 }
 0x2eb   :  { %v2923_v18 = vpop.f32.mrb[75].mxu0  ;;  %1846 = vrot.lane.b32.xlu0 %v1284_v4, %s3351_s6 }
 0x2ec   :  { %v3982_v1 = vadd.f32 %v2921_v10, %v3865_v31  ;;  %v2924_v20 = vadd.f32 %v2923_v18, %v2922_v12  ;;  %3065 = vpow2.f32 %v1334_v13  ;;  %1424 = vrot.lane.b32.xlu1 %v3060_v17, %s3351_s6  ;;  %v1336_v21 = vmul.f32 1.442695, %v1285_v16 }
 0x2ee   :  { %v3062_v22 = vpop.eup %3061  ;;  %v3986_v24 = vadd.f32 %v2924_v20, %v3865_v31  ;;  %v1254_v27 = vmax.f32 %v3982_v1, -2.0  ;;  %3067 = vpow2.f32 %v1336_v21 }
 0x2ef   :  { %1426 = vrot.lane.b32.xlu0 %v3062_v22, %s3351_s6 }
 0x2f0   :  { %v2925_v3 = vpop.f32.mrb[76].mxu0  ;;  %1848 = vrot.lane.b32.xlu1 %v1285_v16, %s3351_s6  ;;  %v1286_v33 = vmin.f32 %v1254_v27, 20.0  ;;  %v1255_v34 = vmax.f32 %v3986_v24, -2.0  ;;  %v3064_v46 = vpop.eup %3063 }
 0x2f1   :  { %v2926_v38 = vpop.f32.mrb[77].mxu0 }
 0x2f2   :  { %v2927_v40 = vadd.f32 %v2926_v38, %v2925_v3  ;;  %v2928_v41 = vpop.f32.mrb[78].mxu0  ;;  %v1338_v43 = vmul.f32 1.442695, %v1286_v33  ;;  %v1287_v44 = vmin.f32 %v1255_v34, 20.0 }
 0x2f3   :  { %v2929_v49 = vpop.f32.mrb[79].mxu0  ;;  %1850 = vrot.lane.b32.xlu0 %v1286_v33, %s3351_s6 }
 0x2f4   :  { %v3994_v51 = vadd.f32 %v2927_v40, %v3865_v31  ;;  %v2930_v52 = vadd.f32 %v2929_v49, %v2928_v41  ;;  %3069 = vpow2.f32 %v1338_v43  ;;  %1428 = vrot.lane.b32.xlu1 %v3064_v46, %s3351_s6  ;;  %v1340_v29 = vmul.f32 1.442695, %v1287_v44 }
 0x2f6   :  { %v3066_v30 = vpop.eup %3065  ;;  %v3998_v62 = vadd.f32 %v2930_v52, %v3865_v31  ;;  %v1256_v5 = vmax.f32 %v3994_v51, -2.0  ;;  %3071 = vpow2.f32 %v1340_v29 }
 0x2f7   :  { %1430 = vrot.lane.b32.xlu0 %v3066_v30, %s3351_s6 }
 0x2f8   :  { %v2931_v9 = vpop.f32.mrb[80].mxu0  ;;  %1852 = vrot.lane.b32.xlu1 %v1287_v44, %s3351_s6  ;;  %v1288_v42 = vmin.f32 %v1256_v5, 20.0  ;;  %v1257_v45 = vmax.f32 %v3998_v62, -2.0  ;;  %v3068_v25 = vpop.eup %3067 }
 0x2f9   :  { %v2932_v11 = vpop.f32.mrb[81].mxu0 }
 0x2fa   :  { %v2933_v14 = vadd.f32 %v2932_v11, %v2931_v9  ;;  %v2934_v50 = vpop.f32.mrb[82].mxu0  ;;  %v1342_v57 = vmul.f32 1.442695, %v1288_v42  ;;  %v1289_v59 = vmin.f32 %v1257_v45, 20.0 }
 0x2fb   :  { %v2935_v60 = vpop.f32.mrb[83].mxu0  ;;  %1854 = vrot.lane.b32.xlu0 %v1288_v42, %s3351_s6 }
 0x2fc   :  { %v4006_v63 = vadd.f32 %v2933_v14, %v3865_v31  ;;  %v2936_v2 = vadd.f32 %v2935_v60, %v2934_v50  ;;  %3073 = vpow2.f32 %v1342_v57  ;;  %1432 = vrot.lane.b32.xlu1 %v3068_v25, %s3351_s6  ;;  %v1344_v4 = vmul.f32 1.442695, %v1289_v59 }
 0x2fe   :  { %v3070_v6 = vpop.eup %3069  ;;  %v4010_v7 = vadd.f32 %v2936_v2, %v3865_v31  ;;  %v1258_v10 = vmax.f32 %v4006_v63, -2.0  ;;  %3075 = vpow2.f32 %v1344_v4 }
 0x2ff   :  { %1434 = vrot.lane.b32.xlu0 %v3070_v6, %s3351_s6 }
 0x300   :  { %v2937_v12 = vpop.f32.mrb[84].mxu0  ;;  %1856 = vrot.lane.b32.xlu1 %v1289_v59, %s3351_s6  ;;  %v1290_v13 = vmin.f32 %v1258_v10, 20.0  ;;  %v1259_v16 = vmax.f32 %v4010_v7, -2.0  ;;  %v3072_v27 = vpop.eup %3071 }
 0x301   :  { %v2938_v17 = vpop.f32.mrb[85].mxu0 }
 0x302   :  { %v2939_v18 = vadd.f32 %v2938_v17, %v2937_v12  ;;  %v2940_v20 = vpop.f32.mrb[86].mxu0  ;;  %v1346_v21 = vmul.f32 1.442695, %v1290_v13  ;;  %v1291_v22 = vmin.f32 %v1259_v16, 20.0 }
 0x303   :  { %v2941_v3 = vpop.f32.mrb[87].mxu0  ;;  %1858 = vrot.lane.b32.xlu0 %v1290_v13, %s3351_s6 }
 0x304   :  { %v4018_v33 = vadd.f32 %v2939_v18, %v3865_v31  ;;  %v2942_v34 = vadd.f32 %v2941_v3, %v2940_v20  ;;  %3077 = vpow2.f32 %v1346_v21  ;;  %1436 = vrot.lane.b32.xlu1 %v3072_v27, %s3351_s6  ;;  %v1348_v38 = vmul.f32 1.442695, %v1291_v22 }
 0x306   :  { %v3074_v40 = vpop.eup %3073  ;;  %v4022_v41 = vadd.f32 %v2942_v34, %v3865_v31  ;;  %v1260_v43 = vmax.f32 %v4018_v33, -2.0  ;;  %3079 = vpow2.f32 %v1348_v38 }
 0x307   :  { %1438 = vrot.lane.b32.xlu0 %v3074_v40, %s3351_s6 }
 0x308   :  { %v2943_v44 = vpop.f32.mrb[88].mxu0  ;;  %1860 = vrot.lane.b32.xlu1 %v1291_v22, %s3351_s6  ;;  %v1292_v46 = vmin.f32 %v1260_v43, 20.0  ;;  %v1261_v49 = vmax.f32 %v4022_v41, -2.0  ;;  %v3076_v42 = vpop.eup %3075 }
 0x309   :  { %v2944_v52 = vpop.f32.mrb[89].mxu0 }
 0x30a   :  { %v2945_v29 = vadd.f32 %v2944_v52, %v2943_v44  ;;  %v2946_v30 = vpop.f32.mrb[90].mxu0  ;;  %v1350_v5 = vmul.f32 1.442695, %v1292_v46  ;;  %v1293_v9 = vmin.f32 %v1261_v49, 20.0 }
 0x30b   :  { %v2947_v45 = vpop.f32.mrb[91].mxu0  ;;  %1862 = vrot.lane.b32.xlu0 %v1292_v46, %s3351_s6 }
 0x30c   :  { %v4030_v11 = vadd.f32 %v2945_v29, %v3865_v31  ;;  %v2948_v14 = vadd.f32 %v2947_v45, %v2946_v30  ;;  %3081 = vpow2.f32 %v1350_v5  ;;  %1440 = vrot.lane.b32.xlu1 %v3076_v42, %s3351_s6  ;;  %v1352_v50 = vmul.f32 1.442695, %v1293_v9  ;;  %v3285_v45 = vld [vmem:[%s4934_s0] sm:$0xff] }
 0x30e   :  { %v3078_v57 = vpop.eup %3077  ;;  %v4034_v59 = vadd.f32 %v2948_v14, %v3865_v31  ;;  %v1262_v25 = vmax.f32 %v4030_v11, -2.0  ;;  %3083 = vpow2.f32 %v1352_v50 }
 0x30f   :  { %1442 = vrot.lane.b32.xlu0 %v3078_v57, %s3351_s6 }
 0x310   :  { %v2949_v60 = vpop.f32.mrb[92].mxu0  ;;  %1864 = vrot.lane.b32.xlu1 %v1293_v9, %s3351_s6  ;;  %v1294_v2 = vmin.f32 %v1262_v25, 20.0  ;;  %v1263_v4 = vmax.f32 %v4034_v59, -2.0  ;;  %v3080_v17 = vpop.eup %3079  ;;  %v3286_v25 = vld [vmem:[%s4934_s0 + $0x8] sm:$0xff] }
 0x311   :  { %v2950_v6 = vpop.f32.mrb[93].mxu0 }
 0x312   :  { %v2951_v10 = vadd.f32 %v2950_v6, %v2949_v60  ;;  %v2952_v12 = vpop.f32.mrb[94].mxu0  ;;  %v1354_v13 = vmul.f32 1.442695, %v1294_v2  ;;  %v1295_v16 = vmin.f32 %v1263_v4, 20.0 }
 0x313   :  { %v2953_v18 = vpop.f32.mrb[95].mxu0  ;;  %1866 = vrot.lane.b32.xlu0 %v1294_v2, %s3351_s6 }
 0x314   :  { %v4042_v20 = vadd.f32 %v2951_v10, %v3865_v31  ;;  %v2954_v21 = vadd.f32 %v2953_v18, %v2952_v12  ;;  %3085 = vpow2.f32 %v1354_v13  ;;  %1444 = vrot.lane.b32.xlu1 %v3080_v17, %s3351_s6  ;;  %v1356_v22 = vmul.f32 1.442695, %v1295_v16  ;;  %v4053_v43 = vpop.permute.xlu0 %1810  ;;  %v3287_v12 = vld [vmem:[%s4934_s0 + $0x10] sm:$0xff]  ;;  %v3288_v18 = vld [vmem:[%s4934_s0 + $0x18] sm:$0xff] }
 0x316   :  { %v3082_v27 = vpop.eup %3081  ;;  %v1264_v3 = vmax.f32 %v4042_v20, -2.0  ;;  %v4047_v34 = vadd.f32 %v2954_v21, %v3865_v31  ;;  %3087 = vpow2.f32 %v1356_v22  ;;  %v4063_v30 = vpop.permute.xlu1 %1812 }
 0x317   :  { %1446 = vrot.lane.b32.xlu0 %v3082_v27, %s3351_s6  ;;  %v3289_v27 = vld [vmem:[%s4934_s0 + $0x20] sm:$0xff] }
 0x318   :  { %v4050_v38 = vmin.f32 %v1264_v3, 20.0  ;;  %v1265_v40 = vmax.f32 %v4047_v34, -2.0  ;;  %1868 = vrot.lane.b32.xlu1 %v1295_v16, %s3351_s6  ;;  %v3084_v49 = vpop.eup %3083 }
 0x31a   :  { %v1358_v44 = vmul.f32 1.442695, %v4050_v38  ;;  %v4057_v46 = vmin.f32 %v1265_v40, 20.0 }
 0x31c   :  { %3089 = vpow2.f32 %v1358_v44  ;;  %1448 = vrot.lane.b32.xlu1 %v3084_v49, %s3351_s6  ;;  %v4060_v31 = vpop.permute.xlu0 %1814  ;;  %v1360_v52 = vmul.f32 1.442695, %v4057_v46 }
 0x31e   :  { %v3086_v29 = vpop.eup %3085  ;;  %3091 = vpow2.f32 %v1360_v52  ;;  %v4067_v42 = vpop.permute.xlu1 %1816  ;;  %v3290_v52 = vld [vmem:[%s4934_s0 + $0x28] sm:$0xff] }
 0x31f   :  { %1450 = vrot.lane.b32.xlu0 %v3086_v29, %s3351_s6 }
 0x320   :  { %v3088_v5 = vpop.eup %3087 }
 0x321   :  { %1452 = vrot.lane.b32.xlu1 %v3088_v5, %s3351_s6  ;;  %v1395_v9 = vpop.permute.xlu0 %1394 }
 0x322   :  { %v1490_v14 = vmul.f32 %v3285_v45, %v1395_v9  ;;  %v3291_v9 = vld [vmem:[%s4934_s0 + $0x30] sm:$0xff] }
 0x324   :  { %1554 = vrot.lane.b32.xlu0 %v1490_v14, %s3352_s22 }
 0x325   :  { %v1397_v50 = vpop.permute.xlu0 %1396 }
 0x326   :  { %v3090_v57 = vpop.eup %3089  ;;  %v1491_v60 = vmul.f32 %v3286_v25, %v1397_v50  ;;  %v4076_v2 = vpop.permute.xlu1 %1820  ;;  %v3292_v25 = vld [vmem:[%s4934_s0 + $0x38] sm:$0xff] }
 0x327   :  { %4954 = vst [vmem:[#allocation2_spill] sm:$0xff] %v4076_v2 }
 0x328   :  { %1454 = vrot.lane.b32.xlu0 %v3090_v57, %s3351_s6  ;;  %1556 = vrot.lane.b32.xlu1 %v1491_v60, %s3352_s22  ;;  %v3092_v10 = vpop.eup %3091 }
 0x329   :  { %v4080_v4 = vpop.permute.xlu0 %1818 }
 0x32a   :  { %4955 = vst [vmem:[#allocation3_spill] sm:$0xff] %v4080_v4  ;;  %v1399_v6 = vpop.permute.xlu1 %1398 }
 0x32b   :  { %v1492_v13 = vmul.f32 %v3287_v12, %v1399_v6 }
 0x32c   :  { %1456 = vrot.lane.b32.xlu1 %v3092_v10, %s3351_s6  ;;  %v3293_v10 = vld [vmem:[%s4934_s0 + $0x40] sm:$0xff] }
 0x32d   :  { %1558 = vrot.lane.b32.xlu0 %v1492_v13, %s3352_s22  ;;  %v4087_v16 = vpop.permute.xlu0 %1822 }
 0x32e   :  { %4956 = vst [vmem:[#allocation4_spill] sm:$0xff] %v4087_v16  ;;  %v1401_v17 = vpop.permute.xlu1 %1400 }
 0x32f   :  { %v1493_v21 = vmul.f32 %v3288_v18, %v1401_v17 }
 0x331   :  { %1560 = vrot.lane.b32.xlu1 %v1493_v21, %s3352_s22  ;;  %v1403_v22 = vpop.permute.xlu0 %1402  ;;  %v3294_v21 = vld [vmem:[%s4934_s0 + $0x48] sm:$0xff] }
 0x332   :  { %v1494_v3 = vmul.f32 %v3289_v27, %v1403_v22  ;;  %v4096_v40 = vpop.permute.xlu1 %1824 }
 0x333   :  { %4957 = vst [vmem:[#allocation5_spill] sm:$0xff] %v4096_v40 }
 0x334   :  { %1562 = vrot.lane.b32.xlu0 %v1494_v3, %s3352_s22  ;;  %v3295_v3 = vld [vmem:[%s4934_s0 + $0x50] sm:$0xff] }
 0x335   :  { %v4099_v44 = vpop.permute.xlu0 %1826 }
 0x336   :  { %4958 = vst [vmem:[#allocation6_spill] sm:$0xff] %v4099_v44  ;;  %v1405_v49 = vpop.permute.xlu1 %1404 }
 0x337   :  { %v1495_v29 = vmul.f32 %v3290_v52, %v1405_v49 }
 0x339   :  { %1564 = vrot.lane.b32.xlu1 %v1495_v29, %s3352_s22  ;;  %v1407_v5 = vpop.permute.xlu0 %1406 }
 0x33a   :  { %v1496_v45 = vmul.f32 %v3291_v9, %v1407_v5  ;;  %v4108_v14 = vpop.permute.xlu1 %1828  ;;  %v3296_v9 = vld [vmem:[%s4934_s0 + $0x58] sm:$0xff] }
 0x33b   :  { %4959 = vst [vmem:[#allocation7_spill] sm:$0xff] %v4108_v14 }
 0x33c   :  { %1566 = vrot.lane.b32.xlu0 %v1496_v45, %s3352_s22 }
 0x33d   :  { %v4111_v50 = vpop.permute.xlu0 %1830 }
 0x33e   :  { %4960 = vst [vmem:[#allocation8_spill] sm:$0xff] %v4111_v50  ;;  %v1409_v57 = vpop.permute.xlu1 %1408 }
 0x33f   :  { %v1497_v60 = vmul.f32 %v3292_v25, %v1409_v57  ;;  %v3297_v25 = vld [vmem:[%s4934_s0 + $0x60] sm:$0xff] }
 0x341   :  { %1568 = vrot.lane.b32.xlu1 %v1497_v60, %s3352_s22  ;;  %v1411_v6 = vpop.permute.xlu0 %1410 }
 0x342   :  { %v1498_v12 = vmul.f32 %v3293_v10, %v1411_v6  ;;  %v4120_v13 = vpop.permute.xlu1 %1832 }
 0x343   :  { %4961 = vst [vmem:[#allocation9_spill] sm:$0xff] %v4120_v13 }
 0x344   :  { %1570 = vrot.lane.b32.xlu0 %v1498_v12, %s3352_s22 }
 0x345   :  { %v4123_v17 = vpop.permute.xlu0 %1834 }
 0x346   :  { %4962 = vst [vmem:[#allocation10_spill] sm:$0xff] %v4123_v17  ;;  %v1413_v18 = vpop.permute.xlu1 %1412 }
 0x347   :  { %v1499_v22 = vmul.f32 %v3294_v21, %v1413_v18  ;;  %v3298_v18 = vld [vmem:[%s4934_s0 + $0x68] sm:$0xff] }
 0x349   :  { %1572 = vrot.lane.b32.xlu1 %v1499_v22, %s3352_s22  ;;  %v1415_v27 = vpop.permute.xlu0 %1414 }
 0x34a   :  { %v1500_v49 = vmul.f32 %v3295_v3, %v1415_v27  ;;  %v4132_v52 = vpop.permute.xlu1 %1836  ;;  %v3299_v27 = vld [vmem:[%s4934_s0 + $0x70] sm:$0xff] }
 0x34b   :  { %4963 = vst [vmem:[#allocation11_spill] sm:$0xff] %v4132_v52 }
 0x34c   :  { %1574 = vrot.lane.b32.xlu0 %v1500_v49, %s3352_s22 }
 0x34d   :  { %v4135_v29 = vpop.permute.xlu0 %1838 }
 0x34e   :  { %4964 = vst [vmem:[#allocation12_spill] sm:$0xff] %v4135_v29  ;;  %v1417_v5 = vpop.permute.xlu1 %1416 }
 0x34f   :  { %v1501_v45 = vmul.f32 %v3296_v9, %v1417_v5 }
 0x351   :  { %1576 = vrot.lane.b32.xlu1 %v1501_v45, %s3352_s22  ;;  %v1419_v57 = vpop.permute.xlu0 %1418  ;;  %v3300_v45 = vld [vmem:[%s4934_s0 + $0x78] sm:$0xff] }
 0x352   :  { %v1502_v60 = vmul.f32 %v3297_v25, %v1419_v57  ;;  %v4144_v6 = vpop.permute.xlu1 %1840 }
 0x353   :  { %4965 = vst [vmem:[#allocation13_spill] sm:$0xff] %v4144_v6 }
 0x354   :  { %1578 = vrot.lane.b32.xlu0 %v1502_v60, %s3352_s22  ;;  %v3301_v60 = vld [vmem:[%s4934_s0 + $0x80] sm:$0xff] }
 0x355   :  { %v4147_v10 = vpop.permute.xlu0 %1842 }
 0x356   :  { %4966 = vst [vmem:[#allocation14_spill] sm:$0xff] %v4147_v10  ;;  %v1421_v12 = vpop.permute.xlu1 %1420 }
 0x357   :  { %v1503_v21 = vmul.f32 %v3298_v18, %v1421_v12 }
 0x359   :  { %1580 = vrot.lane.b32.xlu1 %v1503_v21, %s3352_s22  ;;  %v1423_v22 = vpop.permute.xlu0 %1422 }
 0x35a   :  { %v1504_v3 = vmul.f32 %v3299_v27, %v1423_v22  ;;  %v4156_v49 = vpop.permute.xlu1 %1844  ;;  %v3302_v27 = vld [vmem:[%s4934_s0 + $0x88] sm:$0xff] }
 0x35b   :  { %4967 = vst [vmem:[#allocation15_spill] sm:$0xff] %v4156_v49 }
 0x35c   :  { %1582 = vrot.lane.b32.xlu0 %v1504_v3, %s3352_s22 }
 0x35d   :  { %v4159_v5 = vpop.permute.xlu0 %1846 }
 0x35e   :  { %4968 = vst [vmem:[#allocation16_spill] sm:$0xff] %v4159_v5  ;;  %v1425_v9 = vpop.permute.xlu1 %1424 }
 0x35f   :  { %v1505_v57 = vmul.f32 %v3300_v45, %v1425_v9  ;;  %v3303_v45 = vld [vmem:[%s4934_s0 + $0x90] sm:$0xff] }
 0x361   :  { %1584 = vrot.lane.b32.xlu1 %v1505_v57, %s3352_s22  ;;  %v1427_v25 = vpop.permute.xlu0 %1426 }
 0x362   :  { %v1506_v12 = vmul.f32 %v3301_v60, %v1427_v25  ;;  %v4168_v18 = vpop.permute.xlu1 %1848 }
 0x363   :  { %4969 = vst [vmem:[#allocation17_spill] sm:$0xff] %v4168_v18 }
 0x364   :  { %1586 = vrot.lane.b32.xlu0 %v1506_v12, %s3352_s22 }
 0x365   :  { %v4171_v21 = vpop.permute.xlu0 %1850 }
 0x366   :  { %4970 = vst [vmem:[#allocation18_spill] sm:$0xff] %v4171_v21  ;;  %v1429_v22 = vpop.permute.xlu1 %1428  ;;  %v3304_v21 = vld [vmem:[%s4934_s0 + $0x98] sm:$0xff] }
 0x367   :  { %v1507_v3 = vmul.f32 %v3302_v27, %v1429_v22 }
 0x369   :  { %1588 = vrot.lane.b32.xlu1 %v1507_v3, %s3352_s22  ;;  %v1431_v9 = vpop.permute.xlu0 %1430  ;;  %v3305_v3 = vld [vmem:[%s4934_s0 + $0xa0] sm:$0xff] }
 0x36a   :  { %v1508_v57 = vmul.f32 %v3303_v45, %v1431_v9  ;;  %v4180_v25 = vpop.permute.xlu1 %1852 }
 0x36b   :  { %4971 = vst [vmem:[#allocation19_spill] sm:$0xff] %v4180_v25  ;;  %v3306_v25 = vld [vmem:[%s4934_s0 + $0xa8] sm:$0xff] }
 0x36c   :  { %1590 = vrot.lane.b32.xlu0 %v1508_v57, %s3352_s22 }
 0x36d   :  { %v4183_v60 = vpop.permute.xlu0 %1854 }
 0x36e   :  { %4972 = vst [vmem:[#allocation20_spill] sm:$0xff] %v4183_v60  ;;  %v1433_v12 = vpop.permute.xlu1 %1432 }
 0x36f   :  { %v1509_v22 = vmul.f32 %v3304_v21, %v1433_v12 }
 0x371   :  { %1592 = vrot.lane.b32.xlu1 %v1509_v22, %s3352_s22  ;;  %v1435_v27 = vpop.permute.xlu0 %1434  ;;  %v3307_v22 = vld [vmem:[%s4934_s0 + $0xb0] sm:$0xff] }
 0x372   :  { %v1510_v9 = vmul.f32 %v3305_v3, %v1435_v27  ;;  %v4192_v45 = vpop.permute.xlu1 %1856 }
 0x373   :  { %4973 = vst [vmem:[#allocation21_spill] sm:$0xff] %v4192_v45  ;;  %v3308_v45 = vld [vmem:[%s4934_s0 + $0xb8] sm:$0xff] }
 0x374   :  { %1594 = vrot.lane.b32.xlu0 %v1510_v9, %s3352_s22 }
 0x375   :  { %v4195_v57 = vpop.permute.xlu0 %1858 }
 0x376   :  { %4974 = vst [vmem:[#allocation22_spill] sm:$0xff] %v4195_v57  ;;  %v1437_v60 = vpop.permute.xlu1 %1436 }
 0x377   :  { %v1511_v21 = vmul.f32 %v3306_v25, %v1437_v60 }
 0x379   :  { %1596 = vrot.lane.b32.xlu1 %v1511_v21, %s3352_s22  ;;  %v1439_v12 = vpop.permute.xlu0 %1438  ;;  %v3309_v21 = vld [vmem:[%s4934_s0 + $0xc0] sm:$0xff] }
 0x37a   :  { %v1512_v27 = vmul.f32 %v3307_v22, %v1439_v12  ;;  %v4204_v3 = vpop.permute.xlu1 %1860 }
 0x37b   :  { %4975 = vst [vmem:[#allocation23_spill] sm:$0xff] %v4204_v3  ;;  %v3310_v3 = vld [vmem:[%s4934_s0 + $0xc8] sm:$0xff] }
 0x37c   :  { %1598 = vrot.lane.b32.xlu0 %v1512_v27, %s3352_s22 }
 0x37d   :  { %v4207_v9 = vpop.permute.xlu0 %1862 }
 0x37e   :  { %4976 = vst [vmem:[#allocation24_spill] sm:$0xff] %v4207_v9  ;;  %v1441_v57 = vpop.permute.xlu1 %1440 }
 0x37f   :  { %v1513_v25 = vmul.f32 %v3308_v45, %v1441_v57 }
 0x381   :  { %1600 = vrot.lane.b32.xlu1 %v1513_v25, %s3352_s22  ;;  %v1443_v60 = vpop.permute.xlu0 %1442  ;;  %v3311_v25 = vld [vmem:[%s4934_s0 + $0xd0] sm:$0xff] }
 0x382   :  { %v1514_v12 = vmul.f32 %v3309_v21, %v1443_v60  ;;  %v4216_v22 = vpop.permute.xlu1 %1864 }
 0x383   :  { %4977 = vst [vmem:[#allocation25_spill] sm:$0xff] %v4216_v22 }
 0x384   :  { %1602 = vrot.lane.b32.xlu0 %v1514_v12, %s3352_s22 }
 0x385   :  { %v4219_v27 = vpop.permute.xlu0 %1866 }
 0x386   :  { %4978 = vst [vmem:[#allocation26_spill] sm:$0xff] %v4219_v27  ;;  %v1445_v9 = vpop.permute.xlu1 %1444  ;;  %v3312_v27 = vld [vmem:[%s4934_s0 + $0xd8] sm:$0xff] }
 0x387   :  { %v1515_v45 = vmul.f32 %v3310_v3, %v1445_v9  ;;  %v3313_v9 = vld [vmem:[%s4934_s0 + $0xe0] sm:$0xff] }
 0x389   :  { %1604 = vrot.lane.b32.xlu1 %v1515_v45, %s3352_s22  ;;  %v1447_v57 = vpop.permute.xlu0 %1446 }
 0x38a   :  { %v1516_v60 = vmul.f32 %v3311_v25, %v1447_v57  ;;  %v4228_v21 = vpop.permute.xlu1 %1868  ;;  %v3314_v57 = vld [vmem:[%s4934_s0 + $0xe8] sm:$0xff] }
 0x38b   :  { %4979 = vst [vmem:[#allocation27_spill] sm:$0xff] %v4228_v21 }
 0x38c   :  { %1606 = vrot.lane.b32.xlu0 %v1516_v60, %s3352_s22 }
 0x38e   :  { %v1449_v12 = vpop.permute.xlu1 %1448 }
 0x38f   :  { %v1517_v22 = vmul.f32 %v3312_v27, %v1449_v12 }
 0x391   :  { %1608 = vrot.lane.b32.xlu1 %v1517_v22, %s3352_s22  ;;  %v1451_v3 = vpop.permute.xlu0 %1450 }
 0x392   :  { %v1518_v45 = vmul.f32 %v3313_v9, %v1451_v3 }
 0x393   :  { %v1453_v18 = vpop.permute.xlu1 %1452 }
 0x394   :  { %v1519_v25 = vmul.f32 %v3314_v57, %v1453_v18  ;;  %1610 = vrot.lane.b32.xlu0 %v1518_v45, %s3352_s22  ;;  %v3315_v18 = vld [vmem:[%s4934_s0 + $0xf0] sm:$0xff] }
 0x396   :  { %1612 = vrot.lane.b32.xlu1 %v1519_v25, %s3352_s22  ;;  %v1555_v60 = vpop.permute.xlu0 %1554 }
 0x397   :  { %v4244_v27 = vadd.f32 %v1555_v60, %v3868_v35 }
 0x399   :  { %4980 = vst [vmem:[#allocation28_spill] sm:$0xff] %v4244_v27  ;;  %v4247_v22 = vmul.f32 -2.0, %v4244_v27  ;;  %v2290_v40 = vsub.f32 0.6931472, %v4244_v27 }
 0x39a   :  { %v1557_v12 = vpop.permute.xlu1 %1556  ;;  %v1455_v21 = vpop.permute.xlu0 %1454 }
 0x39b   :  { %v2034_v3 = vand.u32 2147483647, %v4247_v22  ;;  %v4251_v9 = vadd.f32 %v1557_v12, %v3871_v37  ;;  %v1520_v45 = vmul.f32 %v3315_v18, %v1455_v21  ;;  %v3316_v37 = vld [vmem:[%s4934_s0 + $0xf8] sm:$0xff]  ;;  %v2002_v14 = vmax.f32 %v4247_v22, 0.0 }
 0x39d   :  { %4981 = vst [vmem:[#allocation29_spill] sm:$0xff] %v4251_v9  ;;  %v2066_v57 = vsub.f32 0.0, %v2034_v3  ;;  %v4257_v25 = vmul.f32 -2.0, %v4251_v9  ;;  %1614 = vrot.lane.b32.xlu0 %v1520_v45, %s3352_s22 }
 0x39e   :  { %v1457_v35 = vpop.permute.xlu1 %1456 }
 0x39f   :  { %v2098_v60 = vmul.f32 1.442695, %v2066_v57  ;;  %v2035_v5 = vand.u32 2147483647, %v4257_v25  ;;  %v1521_v12 = vmul.f32 %v3316_v37, %v1457_v35  ;;  %v1559_v49 = vpop.permute.xlu0 %1558  ;;  %v2003_v4 = vmax.f32 %v4257_v25, 0.0 }
 0x3a0   :  { %v4265_v10 = vadd.f32 %v1559_v49, %v3877_v53 }
 0x3a1   :  { %3093 = vpow2.f32 %v2098_v60  ;;  %v2067_v21 = vsub.f32 0.0, %v2035_v5  ;;  %1616 = vrot.lane.b32.xlu1 %v1521_v12, %s3352_s22  ;;  %1870 = vrot.lane.b32.xlu0 %v4050_v38, %s3351_s6 }
 0x3a2   :  { %v4271_v3 = vmul.f32 -2.0, %v4265_v10 }
 0x3a3   :  { %v2100_v18 = vmul.f32 1.442695, %v2067_v21  ;;  %v1561_v45 = vpop.permute.xlu1 %1560 }
 0x3a4   :  { %v2036_v57 = vand.u32 2147483647, %v4271_v3  ;;  %v4275_v35 = vadd.f32 %v1561_v45, %v3881_v56 }
 0x3a5   :  { %3095 = vpow2.f32 %v2100_v18  ;;  %1872 = vrot.lane.b32.xlu1 %v4057_v46, %s3351_s6 }
 0x3a6   :  { %v2068_v53 = vsub.f32 0.0, %v2036_v57  ;;  %v4280_v49 = vmul.f32 -2.0, %v4275_v35  ;;  %v1563_v5 = vpop.permute.xlu0 %1562 }
 0x3a7   :  { %v4283_v38 = vadd.f32 %v1563_v5, %v3887_v47 }
 0x3a8   :  { %v2102_v60 = vmul.f32 1.442695, %v2068_v53  ;;  %v2037_v37 = vand.u32 2147483647, %v4280_v49 }
 0x3a9   :  { %4982 = vst [vmem:[#allocation30_spill] sm:$0xff] %v4283_v38  ;;  %v4287_v12 = vmul.f32 -2.0, %v4283_v38 }
 0x3aa   :  { %3097 = vpow2.f32 %v2102_v60  ;;  %v2069_v56 = vsub.f32 0.0, %v2037_v37 }
 0x3ab   :  { %v3094_v21 = vpop.eup %3093  ;;  %v2038_v18 = vand.u32 2147483647, %v4287_v12  ;;  %v1565_v46 = vpop.permute.xlu1 %1564 }
 0x3ac   :  { %v2104_v45 = vmul.f32 1.442695, %v2069_v56  ;;  %v4291_v57 = vadd.f32 %v1565_v46, %v3891_v58  ;;  %v2162_v6 = vadd.f32 1.0, %v3094_v21 }
 0x3ad   :  { %v2070_v29 = vsub.f32 0.0, %v2038_v18 }
 0x3ae   :  { %4983 = vst [vmem:[#allocation31_spill] sm:$0xff] %v4291_v57  ;;  %3099 = vpow2.f32 %v2104_v45  ;;  %v4294_v47 = vmul.f32 -2.0, %v4291_v57  ;;  %v1567_v53 = vpop.permute.xlu0 %1566 }
 0x3af   :  { %v3096_v5 = vpop.eup %3095  ;;  %v2106_v52 = vmul.f32 1.442695, %v2070_v29  ;;  %v4297_v60 = vadd.f32 %v1567_v53, %v3898_v8  ;;  %3101 = vlog2.f32 %v2162_v6 }
 0x3b0   :  { %v2039_v37 = vand.u32 2147483647, %v4294_v47  ;;  %v2163_v17 = vadd.f32 1.0, %v3096_v5 }
 0x3b1   :  { %4984 = vst [vmem:[#allocation32_spill] sm:$0xff] %v4297_v60  ;;  %3103 = vpow2.f32 %v2106_v52  ;;  %v4301_v58 = vmul.f32 -2.0, %v4297_v60 }
 0x3b2   :  { %v2071_v56 = vsub.f32 0.0, %v2039_v37  ;;  %3105 = vlog2.f32 %v2163_v17 }
 0x3b3   :  { %v2040_v21 = vand.u32 2147483647, %v4301_v58  ;;  %v1569_v18 = vpop.permute.xlu1 %1568 }
 0x3b4   :  { %v3098_v46 = vpop.eup %3097  ;;  %v2108_v45 = vmul.f32 1.442695, %v2071_v56  ;;  %v4305_v29 = vadd.f32 %v1569_v18, %v3902_v15 }
 0x3b5   :  { %v2164_v8 = vadd.f32 1.0, %v3098_v46  ;;  %v2072_v53 = vsub.f32 0.0, %v2040_v21 }
 0x3b6   :  { %4985 = vst [vmem:[#allocation33_spill] sm:$0xff] %v4305_v29  ;;  %3107 = vpow2.f32 %v2108_v45  ;;  %v4308_v6 = vmul.f32 -2.0, %v4305_v29  ;;  %v1571_v52 = vpop.permute.xlu0 %1570 }
 0x3b7   :  { %v4311_v5 = vadd.f32 %v1571_v52, %v3910_v32  ;;  %v2110_v13 = vmul.f32 1.442695, %v2072_v53  ;;  %3109 = vlog2.f32 %v2164_v8 }
 0x3b8   :  { %v3100_v37 = vpop.eup %3099  ;;  %v2041_v50 = vand.u32 2147483647, %v4308_v6 }
 0x3b9   :  { %v2165_v17 = vadd.f32 1.0, %v3100_v37  ;;  %v4315_v56 = vmul.f32 -2.0, %v4311_v5  ;;  %v3102_v15 = vpop.eup %3101 }
 0x3ba   :  { %v2073_v18 = vsub.f32 0.0, %v2041_v50  ;;  %v2195_v44 = vmul.f32 0.6931472, %v3102_v15 }
 0x3bb   :  { %v3104_v21 = vpop.eup %3103  ;;  %v2042_v46 = vand.u32 2147483647, %v4315_v56  ;;  %v1573_v45 = vpop.permute.xlu1 %1572  ;;  %3111 = vlog2.f32 %v2165_v17 }
 0x3bc   :  { %v2166_v32 = vadd.f32 1.0, %v3104_v21  ;;  %3113 = vpow2.f32 %v2110_v13  ;;  %v4320_v53 = vadd.f32 %v1573_v45, %v3914_v36  ;;  %v3106_v8 = vpop.eup %3105  ;;  %v2258_v37 = vadd.f32 %v2195_v44, %v2002_v14 }
 0x3bd   :  { %v2074_v52 = vsub.f32 0.0, %v2042_v46  ;;  %v2112_v16 = vmul.f32 1.442695, %v2073_v18  ;;  %v2197_v22 = vmul.f32 0.6931472, %v3106_v8 }
 0x3be   :  { %v4324_v50 = vmul.f32 -2.0, %v4320_v53  ;;  %v1575_v2 = vpop.permute.xlu0 %1574  ;;  %v2322_v13 = vsub.f32 %v2290_v40, %v2258_v37  ;;  %v2291_v36 = vsub.f32 0.6931472, %v4251_v9  ;;  %3115 = vlog2.f32 %v2166_v32 }
 0x3bf   :  { %v4328_v17 = vadd.f32 %v1575_v2, %v3922_v55  ;;  %v2114_v21 = vmul.f32 1.442695, %v2074_v52  ;;  %v2259_v14 = vadd.f32 %v2197_v22, %v2003_v4  ;;  %3117 = vpow2.f32 %v2112_v16 }
 0x3c0   :  { %v3108_v15 = vpop.eup %3107  ;;  %v2043_v44 = vand.u32 2147483647, %v4324_v50  ;;  %v2354_v8 = vmul.f32 2.0, %v2322_v13  ;;  %v2004_v2 = vmax.f32 %v4271_v3, 0.0  ;;  %v2292_v13 = vsub.f32 0.6931472, %v4265_v10 }
 0x3c1   :  { %v2167_v18 = vadd.f32 1.0, %v3108_v15  ;;  %v4333_v46 = vmul.f32 -2.0, %v4328_v17  ;;  %v3110_v45 = vpop.eup %3109  ;;  %v2323_v55 = vsub.f32 %v2291_v36, %v2259_v14 }
 0x3c2   :  { %v2075_v25 = vsub.f32 0.0, %v2043_v44  ;;  %v2199_v52 = vmul.f32 0.6931472, %v3110_v45  ;;  %v2386_v32 = vmax.f32 %v2354_v8, -18.420681 }
 0x3c3   :  { %v2044_v40 = vand.u32 2147483647, %v4333_v46  ;;  %v1577_v37 = vpop.permute.xlu1 %1576  ;;  %3119 = vlog2.f32 %v2167_v18  ;;  %v2355_v9 = vmul.f32 2.0, %v2323_v55  ;;  %v2005_v55 = vmax.f32 %v4280_v49, 0.0 }
 0x3c4   :  { %3121 = vpow2.f32 %v2114_v21  ;;  %v4338_v4 = vadd.f32 %v1577_v37, %v3926_v39  ;;  %v2260_v27 = vadd.f32 %v2199_v52, %v2004_v2  ;;  %v2116_v36 = vmul.f32 1.442695, %v2075_v25 }
 0x3c5   :  { %v3112_v22 = vpop.eup %3111  ;;  %v2076_v15 = vsub.f32 0.0, %v2044_v40  ;;  %v2419_v44 = vsel %vm2418_vm3, %v2386_v32, 0.0  ;;  %v2387_v21 = vmax.f32 %v2355_v9, -18.420681  ;;  %v2293_v32 = vsub.f32 0.6931472, %v4275_v35 }
 0x3c6   :  { %4986 = vst [vmem:[#allocation34_spill] sm:$0xff] %v4338_v4  ;;  %v3114_v16 = vpop.eup %3113  ;;  %v4342_v3 = vmul.f32 -2.0, %v4338_v4  ;;  %v1579_v14 = vpop.permute.xlu0 %1578  ;;  %2420 = vadd.xlane.f32.xlu0 %v2419_v44  ;;  %v2324_v45 = vsub.f32 %v2292_v13, %v2260_v27  ;;  %v2201_v8 = vmul.f32 0.6931472, %v3112_v22  ;;  %3123 = vpow2.f32 %v2116_v36 }
 0x3c7   :  { %v2118_v18 = vmul.f32 1.442695, %v2076_v15  ;;  %v4346_v39 = vadd.f32 %v1579_v14, %v3934_v28  ;;  %v2168_v2 = vadd.f32 1.0, %v3114_v16  ;;  %v2422_v37 = vsel %vm2418_vm3, %v2387_v21, 0.0 }
 0x3c8   :  { %v3116_v40 = vpop.eup %3115  ;;  %v2045_v25 = vand.u32 2147483647, %v4342_v3  ;;  %v2356_v52 = vmul.f32 2.0, %v2324_v45  ;;  %v2006_v9 = vmax.f32 %v4287_v12, 0.0  ;;  %v2261_v28 = vadd.f32 %v2201_v8, %v2005_v55 }
 0x3c9   :  { %4987 = vst [vmem:[#allocation35_spill] sm:$0xff] %v4346_v39  ;;  %2423 = vadd.xlane.f32.xlu1 %v2422_v37  ;;  %v2203_v44 = vmul.f32 0.6931472, %v3116_v40  ;;  %v3118_v27 = vpop.eup %3117  ;;  %3125 = vpow2.f32 %v2118_v18  ;;  %v4354_v49 = vmul.f32 -2.0, %v4346_v39  ;;  %v2294_v12 = vsub.f32 0.6931472, %v4283_v38 }
 0x3ca   :  { %v2388_v16 = vmax.f32 %v2356_v52, -18.420681  ;;  %v2325_v36 = vsub.f32 %v2293_v32, %v2261_v28  ;;  %3127 = vlog2.f32 %v2168_v2  ;;  %v2077_v45 = vsub.f32 0.0, %v2045_v25 }
 0x3cb   :  { %v1581_v15 = vpop.permute.xlu1 %1580  ;;  %v2262_v14 = vadd.f32 %v2203_v44, %v2006_v9  ;;  %v2169_v40 = vadd.f32 1.0, %v3118_v27  ;;  %v2046_v52 = vand.u32 2147483647, %v4354_v49  ;;  %v2007_v9 = vmax.f32 %v4294_v47, 0.0 }
 0x3cc   :  { %v4357_v22 = vadd.f32 %v1581_v15, %v3938_v0  ;;  %v2425_v8 = vsel %vm2418_vm3, %v2388_v16, 0.0  ;;  %v2357_v37 = vmul.f32 2.0, %v2325_v36  ;;  %v2120_v28 = vmul.f32 1.442695, %v2077_v45 }
 0x3cd   :  { %v3120_v13 = vpop.eup %3119  ;;  %2426 = vadd.xlane.f32.xlu0 %v2425_v8  ;;  %v2326_v32 = vsub.f32 %v2294_v12, %v2262_v14  ;;  %v2295_v16 = vsub.f32 0.6931472, %v4291_v57  ;;  %3129 = vlog2.f32 %v2169_v40  ;;  %v2078_v38 = vsub.f32 0.0, %v2046_v52 }
 0x3ce   :  { %4988 = vst [vmem:[#allocation36_spill] sm:$0xff] %v4357_v22  ;;  %v3122_v21 = vpop.eup %3121  ;;  %v1583_v55 = vpop.permute.xlu0 %1582  ;;  %v4362_v18 = vmul.f32 -2.0, %v4357_v22  ;;  %v2205_v2 = vmul.f32 0.6931472, %v3120_v13  ;;  %v2389_v44 = vmax.f32 %v2357_v37, -18.420681 }
 0x3cf   :  { %v4365_v0 = vadd.f32 %v1583_v55, %v3946_v19  ;;  %v2170_v15 = vadd.f32 1.0, %v3122_v21  ;;  %v2358_v27 = vmul.f32 2.0, %v2326_v32 }
 0x3d0   :  { %v2047_v8 = vand.u32 2147483647, %v4362_v18  ;;  %v2263_v55 = vadd.f32 %v2205_v2, %v2007_v9  ;;  %v3124_v36 = vpop.eup %3123  ;;  %v2428_v13 = vsel %vm2418_vm3, %v2389_v44, 0.0  ;;  %v2008_v44 = vmax.f32 %v4301_v58, 0.0 }
 0x3d1   :  { %4989 = vst [vmem:[#allocation37_spill] sm:$0xff] %v4365_v0  ;;  %v4370_v25 = vmul.f32 -2.0, %v4365_v0  ;;  %2429 = vadd.xlane.f32.xlu0 %v2428_v13  ;;  %v2390_v21 = vmax.f32 %v2358_v27, -18.420681  ;;  %3131 = vlog2.f32 %v2170_v15  ;;  %v2171_v2 = vadd.f32 1.0, %v3124_v36 }
 0x3d2   :  { %v2327_v12 = vsub.f32 %v2295_v16, %v2263_v55  ;;  %3133 = vpow2.f32 %v2120_v28  ;;  %v2079_v52 = vsub.f32 0.0, %v2047_v8 }
 0x3d3   :  { %v1585_v19 = vpop.permute.xlu1 %1584  ;;  %v2048_v14 = vand.u32 2147483647, %v4370_v25  ;;  %v3126_v45 = vpop.eup %3125  ;;  %v2431_v9 = vsel %vm2418_vm3, %v2390_v21, 0.0  ;;  %v2296_v21 = vsub.f32 0.6931472, %v4297_v60  ;;  %3135 = vlog2.f32 %v2171_v2 }
 0x3d4   :  { %v4376_v47 = vadd.f32 %v1585_v19, %v3950_v23  ;;  %v3128_v40 = vpop.eup %3127  ;;  %v2122_v19 = vmul.f32 1.442695, %v2078_v38  ;;  %2432 = vadd.xlane.f32.xlu1 %v2431_v9  ;;  %v2359_v27 = vmul.f32 2.0, %v2327_v12  ;;  %v2172_v55 = vadd.f32 1.0, %v3126_v45 }
 0x3d5   :  { %v2207_v15 = vmul.f32 0.6931472, %v3128_v40  ;;  %v2080_v16 = vsub.f32 0.0, %v2048_v14  ;;  %v2124_v57 = vmul.f32 1.442695, %v2079_v52  ;;  %v2009_v12 = vmax.f32 %v4308_v6, 0.0 }
 0x3d6   :  { %v4380_v37 = vmul.f32 -2.0, %v4376_v47  ;;  %v1587_v32 = vpop.permute.xlu0 %1586  ;;  %v2391_v36 = vmax.f32 %v2359_v27, -18.420681  ;;  %3137 = vpow2.f32 %v2122_v19  ;;  %v2297_v6 = vsub.f32 0.6931472, %v4305_v29 }
 0x3d7   :  { %v4384_v23 = vadd.f32 %v1587_v32, %v3958_v48  ;;  %v2264_v8 = vadd.f32 %v2207_v15, %v2008_v44  ;;  %v3130_v14 = vpop.eup %3129  ;;  %v2126_v45 = vmul.f32 1.442695, %v2080_v16  ;;  %3139 = vlog2.f32 %v2172_v55 }
 0x3d8   :  { %v2049_v28 = vand.u32 2147483647, %v4380_v37  ;;  %v2434_v38 = vsel %vm2418_vm3, %v2391_v36, 0.0  ;;  %v2209_v2 = vmul.f32 0.6931472, %v3130_v14  ;;  %3141 = vpow2.f32 %v2124_v57 }
 0x3d9   :  { %v4389_v13 = vmul.f32 -2.0, %v4384_v23  ;;  %2435 = vadd.xlane.f32.xlu0 %v2434_v38  ;;  %v2328_v40 = vsub.f32 %v2296_v21, %v2264_v8  ;;  %v2010_v8 = vmax.f32 %v4315_v56, 0.0  ;;  %3143 = vpow2.f32 %v2126_v45 }
 0x3da   :  { %v2081_v32 = vsub.f32 0.0, %v2049_v28  ;;  %v2265_v28 = vadd.f32 %v2209_v2, %v2009_v12 }
 0x3db   :  { %v1589_v48 = vpop.permute.xlu1 %1588  ;;  %v2050_v9 = vand.u32 2147483647, %v4389_v13  ;;  %v3132_v19 = vpop.eup %3131  ;;  %v2360_v27 = vmul.f32 2.0, %v2328_v40 }
 0x3dc   :  { %v4394_v58 = vadd.f32 %v1589_v48, %v3962_v54  ;;  %v3134_v15 = vpop.eup %3133  ;;  %v2211_v36 = vmul.f32 0.6931472, %v3132_v19  ;;  %v2128_v21 = vmul.f32 1.442695, %v2081_v32  ;;  %v2329_v57 = vsub.f32 %v2297_v6, %v2265_v28 }
 0x3dd   :  { %v2392_v48 = vmax.f32 %v2360_v27, -18.420681  ;;  %v2082_v38 = vsub.f32 0.0, %v2050_v9  ;;  %v2173_v14 = vadd.f32 1.0, %v3134_v15  ;;  %v3136_v2 = vpop.eup %3135  ;;  %v2011_v28 = vmax.f32 %v4324_v50, 0.0 }
 0x3de   :  { %v4399_v44 = vmul.f32 -2.0, %v4394_v58  ;;  %v1591_v52 = vpop.permute.xlu0 %1590  ;;  %v2266_v29 = vadd.f32 %v2211_v36, %v2010_v8  ;;  %v2361_v12 = vmul.f32 2.0, %v2329_v57  ;;  %3145 = vpow2.f32 %v2128_v21 }
 0x3df   :  { %v4402_v54 = vadd.f32 %v1591_v52, %v3970_v26  ;;  %v2298_v26 = vsub.f32 0.6931472, %v4311_v5  ;;  %v2437_v40 = vsel %vm2418_vm3, %v2392_v48, 0.0  ;;  %v2130_v45 = vmul.f32 1.442695, %v2082_v38 }
 0x3e0   :  { %v2051_v16 = vand.u32 2147483647, %v4399_v44  ;;  %2438 = vadd.xlane.f32.xlu1 %v2437_v40  ;;  %v3138_v32 = vpop.eup %3137  ;;  %v2393_v19 = vmax.f32 %v2361_v12, -18.420681  ;;  %3147 = vlog2.f32 %v2173_v14  ;;  %v2213_v8 = vmul.f32 0.6931472, %v3136_v2 }
 0x3e1   :  { %v4408_v55 = vmul.f32 -2.0, %v4402_v54  ;;  %v2330_v56 = vsub.f32 %v2298_v26, %v2266_v29  ;;  %v3140_v15 = vpop.eup %3139  ;;  %v2299_v29 = vsub.f32 0.6931472, %v4320_v53  ;;  %v2174_v21 = vadd.f32 1.0, %v3138_v32 }
 0x3e2   :  { %v2083_v60 = vsub.f32 0.0, %v2051_v16  ;;  %v2440_v16 = vsel %vm2418_vm3, %v2393_v19, 0.0  ;;  %v3142_v48 = vpop.eup %3141  ;;  %3149 = vpow2.f32 %v2130_v45  ;;  %v2267_v14 = vadd.f32 %v2213_v8, %v2011_v28 }
 0x3e3   :  { %v1593_v52 = vpop.permute.xlu1 %1592  ;;  %v2052_v9 = vand.u32 2147483647, %v4408_v55  ;;  %v2362_v6 = vmul.f32 2.0, %v2330_v56  ;;  %2441 = vadd.xlane.f32.xlu0 %v2440_v16  ;;  %v2012_v40 = vmax.f32 %v4333_v46, 0.0  ;;  %v2215_v50 = vmul.f32 0.6931472, %v3140_v15 }
 0x3e4   :  { %v4414_v27 = vadd.f32 %v1593_v52, %v3974_v61  ;;  %v2132_v36 = vmul.f32 1.442695, %v2083_v60  ;;  %v3144_v52 = vpop.eup %3143  ;;  %v2175_v12 = vadd.f32 1.0, %v3142_v48  ;;  %v2331_v56 = vsub.f32 %v2299_v29, %v2267_v14 }
 0x3e5   :  { %v2394_v38 = vmax.f32 %v2362_v6, -18.420681  ;;  %v2084_v26 = vsub.f32 0.0, %v2052_v9  ;;  %v2300_v32 = vsub.f32 0.6931472, %v4328_v17  ;;  %v2268_v45 = vadd.f32 %v2215_v50, %v2012_v40 }
 0x3e6   :  { %v1595_v57 = vpop.permute.xlu0 %1594  ;;  %v4420_v61 = vmul.f32 -2.0, %v4414_v27  ;;  %3151 = vpow2.f32 %v2132_v36  ;;  %v2363_v6 = vmul.f32 2.0, %v2331_v56  ;;  %v2176_v15 = vadd.f32 1.0, %v3144_v52 }
 0x3e7   :  { %v2443_v60 = vsel %vm2418_vm3, %v2394_v38, 0.0  ;;  %v4425_v2 = vadd.f32 %v1595_v57, %v3982_v1  ;;  %3153 = vlog2.f32 %v2174_v21  ;;  %v2134_v9 = vmul.f32 1.442695, %v2084_v26 }
 0x3e8   :  { %2444 = vadd.xlane.f32.xlu1 %v2443_v60  ;;  %v2053_v19 = vand.u32 2147483647, %v4420_v61  ;;  %v3146_v16 = vpop.eup %3145  ;;  %v2332_v8 = vsub.f32 %v2300_v32, %v2268_v45  ;;  %v2395_v48 = vmax.f32 %v2363_v6, -18.420681  ;;  %3155 = vlog2.f32 %v2175_v12 }
 0x3e9   :  { %v4430_v36 = vmul.f32 -2.0, %v4425_v2  ;;  %3157 = vpow2.f32 %v2134_v9  ;;  %v2301_v14 = vsub.f32 0.6931472, %v4338_v4  ;;  %v2177_v40 = vadd.f32 1.0, %v3146_v16 }
 0x3ea   :  { %v3148_v1 = vpop.eup %3147  ;;  %v2364_v38 = vmul.f32 2.0, %v2332_v8  ;;  %v2085_v57 = vsub.f32 0.0, %v2053_v19  ;;  %v2446_v26 = vsel %vm2418_vm3, %v2395_v48, 0.0  ;;  %3159 = vlog2.f32 %v2176_v15 }
 0x3eb   :  { %v1597_v46 = vpop.permute.xlu1 %1596  ;;  %2447 = vadd.xlane.f32.xlu0 %v2446_v26  ;;  %v2013_v12 = vmax.f32 %v4342_v3, 0.0  ;;  %v2217_v56 = vmul.f32 0.6931472, %v3148_v1  ;;  %v2302_v32 = vsub.f32 0.6931472, %v4346_v39  ;;  %3161 = vlog2.f32 %v2177_v40 }
 0x3ec   :  { %v4433_v29 = vadd.f32 %v1597_v46, %v3986_v24  ;;  %v2396_v60 = vmax.f32 %v2364_v38, -18.420681  ;;  %v3150_v52 = vpop.eup %3149  ;;  %v2054_v24 = vand.u32 2147483647, %v4430_v36  ;;  %v2014_v46 = vmax.f32 %v4354_v49, 0.0 }
 0x3ed   :  { %v2303_v3 = vsub.f32 0.6931472, %v4357_v22  ;;  %v2269_v16 = vadd.f32 %v2217_v56, %v2013_v12  ;;  %v2304_v8 = vsub.f32 0.6931472, %v4365_v0  ;;  %v2178_v48 = vadd.f32 1.0, %v3150_v52 }
 0x3ee   :  { %v1599_v28 = vpop.permute.xlu0 %1598  ;;  %v4447_v45 = vmul.f32 -2.0, %v4433_v29  ;;  %v2449_v9 = vsel %vm2418_vm3, %v2396_v60, 0.0  ;;  %v2086_v38 = vsub.f32 0.0, %v2054_v24 }
 0x3ef   :  { %v4436_v21 = vadd.f32 %v1599_v28, %v3994_v51  ;;  %v2136_v28 = vmul.f32 1.442695, %v2085_v57  ;;  %2450 = vadd.xlane.f32.xlu1 %v2449_v9  ;;  %v2333_v26 = vsub.f32 %v2301_v14, %v2269_v16  ;;  %v2016_v57 = vmax.f32 %v4370_v25, 0.0 }
 0x3f0   :  { %v3152_v6 = vpop.eup %3151  ;;  %v2055_v12 = vand.u32 2147483647, %v4447_v45 }
 0x3f1   :  { %v4451_v19 = vmul.f32 -2.0, %v4436_v21  ;;  %v3154_v15 = vpop.eup %3153  ;;  %v2179_v52 = vadd.f32 1.0, %v3152_v6  ;;  %3163 = vpow2.f32 %v2136_v28 }
 0x3f2   :  { %v2219_v49 = vmul.f32 0.6931472, %v3154_v15  ;;  %v3156_v9 = vpop.eup %3155  ;;  %3165 = vlog2.f32 %v2178_v48  ;;  %v2138_v15 = vmul.f32 1.442695, %v2086_v38  ;;  %v2087_v4 = vsub.f32 0.0, %v2055_v12 }
 0x3f3   :  { %v1601_v50 = vpop.permute.xlu1 %1600  ;;  %v2056_v56 = vand.u32 2147483647, %v4451_v19  ;;  %v2221_v24 = vmul.f32 0.6931472, %v3156_v9  ;;  %3167 = vlog2.f32 %v2179_v52 }
 0x3f4   :  { %v4443_v51 = vadd.f32 %v1601_v50, %v3998_v62  ;;  %v2015_v50 = vmax.f32 %v4362_v18, 0.0  ;;  %v3158_v18 = vpop.eup %3157  ;;  %3169 = vpow2.f32 %v2138_v15 }
 0x3f5   :  { %v3160_v39 = vpop.eup %3159  ;;  %v2088_v6 = vsub.f32 0.0, %v2056_v56  ;;  %v2180_v48 = vadd.f32 1.0, %v3158_v18 }
 0x3f6   :  { %v1603_v62 = vpop.permute.xlu0 %1602  ;;  %v4460_v60 = vmul.f32 -2.0, %v4443_v51  ;;  %v2271_v28 = vadd.f32 %v2221_v24, %v2015_v50  ;;  %v2223_v40 = vmul.f32 0.6931472, %v3160_v39  ;;  %v2140_v39 = vmul.f32 1.442695, %v2087_v4 }
 0x3f7   :  { %v4457_v1 = vadd.f32 %v1603_v62, %v4006_v63  ;;  %v2365_v63 = vmul.f32 2.0, %v2333_v26  ;;  %v2270_v62 = vadd.f32 %v2219_v49, %v2014_v46  ;;  %v2142_v24 = vmul.f32 1.442695, %v2088_v6 }
 0x3f8   :  { %v2057_v0 = vand.u32 2147483647, %v4460_v60  ;;  %v2272_v50 = vadd.f32 %v2223_v40, %v2016_v57  ;;  %3171 = vlog2.f32 %v2180_v48 }
 0x3f9   :  { %v4468_v14 = vmul.f32 -2.0, %v4457_v1  ;;  %v2397_v25 = vmax.f32 %v2365_v63, -18.420681  ;;  %v2334_v22 = vsub.f32 %v2302_v32, %v2270_v62  ;;  %v2335_v63 = vsub.f32 %v2303_v3, %v2271_v28  ;;  %v3162_v62 = vpop.eup %3161 }
 0x3fa   :  { %v2089_v12 = vsub.f32 0.0, %v2057_v0  ;;  %v2336_v18 = vsub.f32 %v2304_v8, %v2272_v50  ;;  %v2017_v28 = vmax.f32 %v4380_v37, 0.0  ;;  %3173 = vpow2.f32 %v2140_v39 }
 0x3fb   :  { %v1605_v16 = vpop.permute.xlu1 %1604  ;;  %v2452_v26 = vsel %vm2418_vm3, %v2397_v25, 0.0  ;;  %v2366_v49 = vmul.f32 2.0, %v2334_v22  ;;  %v2058_v38 = vand.u32 2147483647, %v4468_v14  ;;  %v2306_v22 = vsub.f32 0.6931472, %v4384_v23  ;;  %v3164_v40 = vpop.eup %3163 }
 0x3fc   :  { %v4472_v46 = vadd.f32 %v1605_v16, %v4010_v7  ;;  %2453 = vadd.xlane.f32.xlu0 %v2452_v26  ;;  %v2367_v52 = vmul.f32 2.0, %v2335_v63  ;;  %v2144_v15 = vmul.f32 1.442695, %v2089_v12  ;;  %v2368_v4 = vmul.f32 2.0, %v2336_v18  ;;  %v3166_v6 = vpop.eup %3165 }
 0x3fd   :  { %v2398_v56 = vmax.f32 %v2366_v49, -18.420681  ;;  %v2090_v25 = vsub.f32 0.0, %v2058_v38  ;;  %v2225_v26 = vmul.f32 0.6931472, %v3162_v62  ;;  %v2018_v63 = vmax.f32 %v4389_v13, 0.0 }
 0x3fe   :  { %v1607_v9 = vpop.permute.xlu0 %1606  ;;  %v4477_v32 = vmul.f32 -2.0, %v4472_v46  ;;  %v2399_v0 = vmax.f32 %v2367_v52, -18.420681  ;;  %v2227_v50 = vmul.f32 0.6931472, %v3166_v6  ;;  %3175 = vpow2.f32 %v2142_v24 }
 0x3ff   :  { %v4480_v7 = vadd.f32 %v1607_v9, %v4018_v33  ;;  %v2455_v16 = vsel %vm2418_vm3, %v2398_v56, 0.0  ;;  %v2400_v56 = vmax.f32 %v2368_v4, -18.420681  ;;  %v2273_v48 = vadd.f32 %v2225_v26, %v2017_v28 }
 0x400   :  { %v2059_v3 = vand.u32 2147483647, %v4477_v32  ;;  %2456 = vadd.xlane.f32.xlu1 %v2455_v16  ;;  %v2458_v49 = vsel %vm2418_vm3, %v2399_v0, 0.0  ;;  %v2146_v37 = vmul.f32 1.442695, %v2090_v25  ;;  %v3168_v16 = vpop.eup %3167  ;;  %v2274_v0 = vadd.f32 %v2227_v50, %v2018_v63 }
 0x401   :  { %4990 = vst [vmem:[#allocation38_spill] sm:$0xff] %v4480_v7  ;;  %v4486_v57 = vmul.f32 -2.0, %v4480_v7  ;;  %2459 = vadd.xlane.f32.xlu0 %v2458_v49  ;;  %3177 = vpow2.f32 %v2144_v15  ;;  %v3170_v24 = vpop.eup %3169  ;;  %v2019_v63 = vmax.f32 %v4399_v44, 0.0  ;;  %v2307_v15 = vsub.f32 0.6931472, %v4394_v58 }
 0x402   :  { %v2091_v9 = vsub.f32 0.0, %v2059_v3  ;;  %v2461_v3 = vsel %vm2418_vm3, %v2400_v56, 0.0  ;;  %v2338_v28 = vsub.f32 %v2306_v22, %v2274_v0  ;;  %3179 = vpow2.f32 %v2146_v37 }
 0x403   :  { %v1609_v33 = vpop.permute.xlu1 %1608  ;;  %v2060_v8 = vand.u32 2147483647, %v4486_v57  ;;  %v2181_v50 = vadd.f32 1.0, %v3164_v40  ;;  %v2020_v44 = vmax.f32 %v4408_v55, 0.0 }
 0x404   :  { %v4492_v38 = vadd.f32 %v1609_v33, %v4022_v41  ;;  %v4992_v41 = vsub.f32 0.6931472, %v4376_v47  ;;  %v2148_v33 = vmul.f32 1.442695, %v2091_v9  ;;  %2462 = vadd.xlane.f32.xlu1 %v2461_v3  ;;  %v2370_v56 = vmul.f32 2.0, %v2338_v28 }
 0x405   :  { %v2092_v12 = vsub.f32 0.0, %v2060_v8  ;;  %v2229_v8 = vmul.f32 0.6931472, %v3168_v16  ;;  %v2308_v28 = vsub.f32 0.6931472, %v4402_v54 }
 0x406   :  { %4991 = vst [vmem:[#allocation39_spill] sm:$0xff] %v4492_v38  ;;  %v4496_v62 = vmul.f32 -2.0, %v4492_v38  ;;  %v1611_v52 = vpop.permute.xlu0 %1610  ;;  %v2337_v18 = vsub.f32 %v4992_v41, %v2273_v48  ;;  %v3172_v48 = vpop.eup %3171  ;;  %3181 = vpow2.f32 %v2148_v33  ;;  %v2402_v37 = vmax.f32 %v2370_v56, -18.420681 }
 0x407   :  { %v4503_v4 = vadd.f32 %v1611_v52, %v4030_v11  ;;  %v2150_v6 = vmul.f32 1.442695, %v2092_v12  ;;  %v2275_v3 = vadd.f32 %v2229_v8, %v2019_v63  ;;  %v2231_v0 = vmul.f32 0.6931472, %v3172_v48 }
 0x408   :  { %v1613_v13 = vpop.permute.xlu1 %1612  ;;  %v2061_v39 = vand.u32 2147483647, %v4496_v62  ;;  %v2369_v25 = vmul.f32 2.0, %v2337_v18  ;;  %v2467_v41 = vsel %vm2418_vm3, %v2402_v37, 0.0 }
 0x409   :  { %4993 = vst [vmem:[#allocation40_spill] sm:$0xff] %v4503_v4  ;;  %v4506_v26 = vadd.f32 %v1613_v13, %v4034_v59  ;;  %v4511_v11 = vmul.f32 -2.0, %v4503_v4  ;;  %v2182_v59 = vadd.f32 1.0, %v3170_v24  ;;  %3183 = vpow2.f32 %v2150_v6  ;;  %v3174_v13 = vpop.eup %3173  ;;  %2468 = vadd.xlane.f32.xlu1 %v2467_v41 }
 0x40a   :  { %v2093_v49 = vsub.f32 0.0, %v2061_v39  ;;  %v2401_v9 = vmax.f32 %v2369_v25, -18.420681  ;;  %v2339_v39 = vsub.f32 %v2307_v15, %v2275_v3  ;;  %v3176_v55 = vpop.eup %3175  ;;  %v2276_v6 = vadd.f32 %v2231_v0, %v2020_v44 }
 0x40b   :  { %v4515_v12 = vmul.f32 -2.0, %v4506_v26  ;;  %v2062_v16 = vand.u32 2147483647, %v4511_v11  ;;  %v2184_v37 = vadd.f32 1.0, %v3176_v55 }
 0x40c   :  { %v2152_v22 = vmul.f32 1.442695, %v2093_v49  ;;  %v2464_v52 = vsel %vm2418_vm3, %v2401_v9, 0.0  ;;  %v3178_v49 = vpop.eup %3177  ;;  %v2371_v63 = vmul.f32 2.0, %v2339_v39  ;;  %v2340_v48 = vsub.f32 %v2308_v28, %v2276_v6 }
 0x40d   :  { %2465 = vadd.xlane.f32.xlu0 %v2464_v52  ;;  %v2063_v18 = vand.u32 2147483647, %v4515_v12  ;;  %v2094_v33 = vsub.f32 0.0, %v2062_v16  ;;  %v3180_v15 = vpop.eup %3179  ;;  %v2183_v52 = vadd.f32 1.0, %v3174_v13  ;;  %v2185_v16 = vadd.f32 1.0, %v3178_v49 }
 0x40e   :  { %3185 = vpow2.f32 %v2152_v22  ;;  %v2372_v44 = vmul.f32 2.0, %v2340_v48  ;;  %v2021_v28 = vmax.f32 %v4420_v61, 0.0  ;;  %v2022_v48 = vmax.f32 %v4430_v36, 0.0 }
 0x40f   :  { %v1615_v40 = vpop.permute.xlu0 %1614  ;;  %3187 = vlog2.f32 %v2181_v50  ;;  %v2095_v24 = vsub.f32 0.0, %v2063_v18  ;;  %v2154_v8 = vmul.f32 1.442695, %v2094_v33  ;;  %v2186_v18 = vadd.f32 1.0, %v3180_v15 }
 0x410   :  { %v4522_v25 = vadd.f32 %v1615_v40, %v4042_v20  ;;  %3189 = vlog2.f32 %v2182_v59  ;;  %v2403_v20 = vmax.f32 %v2371_v63, -18.420681  ;;  %v3182_v59 = vpop.eup %3181  ;;  %v2404_v0 = vmax.f32 %v2372_v44, -18.420681 }
 0x411   :  { %v2156_v56 = vmul.f32 1.442695, %v2095_v24  ;;  %3191 = vpow2.f32 %v2154_v8  ;;  %v2309_v33 = vsub.f32 0.6931472, %v4414_v27  ;;  %v2187_v24 = vadd.f32 1.0, %v3182_v59 }
 0x412   :  { %v4526_v22 = vmul.f32 -2.0, %v4522_v25  ;;  %v2470_v3 = vsel %vm2418_vm3, %v2403_v20, 0.0  ;;  %v2473_v6 = vsel %vm2418_vm3, %v2404_v0, 0.0  ;;  %v2310_v8 = vsub.f32 0.6931472, %v4425_v2 }
 0x413   :  { %v1617_v9 = vpop.permute.xlu1 %1616  ;;  %3193 = vpow2.f32 %v2156_v56  ;;  %2471 = vadd.xlane.f32.xlu0 %v2470_v3  ;;  %v3184_v13 = vpop.eup %3183  ;;  %2474 = vadd.xlane.f32.xlu1 %v2473_v6  ;;  %v2023_v59 = vmax.f32 %v4447_v45, 0.0  ;;  %v2024_v0 = vmax.f32 %v4451_v19, 0.0 }
 0x414   :  { %v4529_v50 = vadd.f32 %v1617_v9, %v4047_v34  ;;  %v2064_v40 = vand.u32 2147483647, %v4526_v22  ;;  %3195 = vlog2.f32 %v2183_v52  ;;  %v2188_v15 = vadd.f32 1.0, %v3184_v13 }
 0x415   :  { %3197 = vlog2.f32 %v2184_v37  ;;  %v2311_v37 = vsub.f32 0.6931472, %v4433_v29 }
 0x416   :  { %v4534_v41 = vmul.f32 -2.0, %v4529_v50  ;;  %v2096_v34 = vsub.f32 0.0, %v2064_v40  ;;  %3199 = vlog2.f32 %v2185_v16  ;;  %v2312_v16 = vsub.f32 0.6931472, %v4436_v21 }
 0x417   :  { %3201 = vlog2.f32 %v2186_v18  ;;  %v2313_v18 = vsub.f32 0.6931472, %v4443_v51 }
 0x418   :  { %v2065_v39 = vand.u32 2147483647, %v4534_v41  ;;  %v3186_v55 = vpop.eup %3185  ;;  %v2158_v63 = vmul.f32 1.442695, %v2096_v34 }
 0x419   :  { %v3188_v49 = vpop.eup %3187  ;;  %v2189_v52 = vadd.f32 1.0, %v3186_v55  ;;  %v2025_v55 = vmax.f32 %v4460_v60, 0.0  ;;  %v2028_v60 = vmax.f32 %v4486_v57, 0.0 }
 0x41a   :  { %v2097_v9 = vsub.f32 0.0, %v2065_v39  ;;  %v3190_v56 = vpop.eup %3189  ;;  %v2233_v20 = vmul.f32 0.6931472, %v3188_v49  ;;  %3203 = vpow2.f32 %v2158_v63  ;;  %v2315_v63 = vsub.f32 0.6931472, %v4472_v46 }
 0x41b   :  { %v2235_v44 = vmul.f32 0.6931472, %v3190_v56  ;;  %3205 = vlog2.f32 %v2187_v24  ;;  %v3192_v40 = vpop.eup %3191  ;;  %v2314_v24 = vsub.f32 0.6931472, %v4457_v1 }
 0x41c   :  { %v2160_v61 = vmul.f32 1.442695, %v2097_v9  ;;  %v2277_v3 = vadd.f32 %v2233_v20, %v2021_v28  ;;  %v2190_v34 = vadd.f32 1.0, %v3192_v40  ;;  %v2026_v28 = vmax.f32 %v4468_v14, 0.0 }
 0x41d   :  { %v2278_v36 = vadd.f32 %v2235_v44, %v2022_v48  ;;  %v3194_v13 = vpop.eup %3193  ;;  %v2316_v9 = vsub.f32 0.6931472, %v4480_v7  ;;  %v2027_v48 = vmax.f32 %v4477_v32, 0.0  ;;  %v2317_v14 = vsub.f32 0.6931472, %v4492_v38 }
 0x41e   :  { %3207 = vpow2.f32 %v2160_v61  ;;  %v2341_v39 = vsub.f32 %v2309_v33, %v2277_v3  ;;  %v2191_v45 = vadd.f32 1.0, %v3194_v13  ;;  %v3196_v49 = vpop.eup %3195  ;;  %v2029_v3 = vmax.f32 %v4496_v62, 0.0 }
 0x41f   :  { %3209 = vlog2.f32 %v2188_v15  ;;  %v2342_v6 = vsub.f32 %v2310_v8, %v2278_v36  ;;  %v3198_v33 = vpop.eup %3197  ;;  %v2237_v15 = vmul.f32 0.6931472, %v3196_v49 }
 0x420   :  { %3211 = vlog2.f32 %v2189_v52  ;;  %v2373_v19 = vmul.f32 2.0, %v2341_v39  ;;  %v3200_v20 = vpop.eup %3199  ;;  %v2239_v61 = vmul.f32 0.6931472, %v3198_v33  ;;  %v2318_v39 = vsub.f32 0.6931472, %v4503_v4 }
 0x421   :  { %3213 = vlog2.f32 %v2190_v34  ;;  %v2374_v56 = vmul.f32 2.0, %v2342_v6  ;;  %v3202_v44 = vpop.eup %3201  ;;  %v2279_v36 = vadd.f32 %v2237_v15, %v2023_v59  ;;  %v2241_v13 = vmul.f32 0.6931472, %v3200_v20 }
 0x422   :  { %3215 = vlog2.f32 %v2191_v45  ;;  %v2405_v8 = vmax.f32 %v2373_v19, -18.420681  ;;  %v2280_v57 = vadd.f32 %v2239_v61, %v2024_v0  ;;  %v2243_v45 = vmul.f32 0.6931472, %v3202_v44 }
 0x423   :  { %v2406_v52 = vmax.f32 %v2374_v56, -18.420681  ;;  %v2030_v19 = vmax.f32 %v4511_v11, 0.0  ;;  %v2343_v56 = vsub.f32 %v2311_v37, %v2279_v36  ;;  %v2281_v33 = vadd.f32 %v2241_v13, %v2025_v55 }
 0x424   :  { %v2476_v40 = vsel %vm2418_vm3, %v2405_v8, 0.0  ;;  %v3204_v34 = vpop.eup %3203  ;;  %v2031_v8 = vmax.f32 %v4515_v12, 0.0  ;;  %v2344_v59 = vsub.f32 %v2312_v16, %v2280_v57  ;;  %v2282_v15 = vadd.f32 %v2243_v45, %v2026_v28 }
 0x425   :  { %2477 = vadd.xlane.f32.xlu0 %v2476_v40  ;;  %v2479_v32 = vsel %vm2418_vm3, %v2406_v52, 0.0  ;;  %v3206_v6 = vpop.eup %3205  ;;  %v2192_v49 = vadd.f32 1.0, %v3204_v34  ;;  %v2375_v40 = vmul.f32 2.0, %v2343_v56  ;;  %v2345_v7 = vsub.f32 %v2313_v18, %v2281_v33 }
 0x426   :  { %2480 = vadd.xlane.f32.xlu1 %v2479_v32  ;;  %v2245_v20 = vmul.f32 0.6931472, %v3206_v6  ;;  %v2376_v52 = vmul.f32 2.0, %v2344_v59  ;;  %v2346_v61 = vsub.f32 %v2314_v24, %v2282_v15  ;;  %v2319_v59 = vsub.f32 0.6931472, %v4506_v26 }
 0x427   :  { %3217 = vlog2.f32 %v2192_v49  ;;  %v2407_v32 = vmax.f32 %v2375_v40, -18.420681  ;;  %v2377_v37 = vmul.f32 2.0, %v2345_v7 }
 0x428   :  { %v3208_v62 = vpop.eup %3207  ;;  %v2283_v44 = vadd.f32 %v2245_v20, %v2027_v48  ;;  %v2408_v12 = vmax.f32 %v2376_v52, -18.420681  ;;  %v2378_v16 = vmul.f32 2.0, %v2346_v61 }
 0x429   :  { %v3210_v38 = vpop.eup %3209  ;;  %v2193_v4 = vadd.f32 1.0, %v3208_v62  ;;  %v2482_v57 = vsel %vm2418_vm3, %v2407_v32, 0.0  ;;  %v2409_v45 = vmax.f32 %v2377_v37, -18.420681 }
 0x42a   :  { %v3212_v0 = vpop.eup %3211  ;;  %v2247_v11 = vmul.f32 0.6931472, %v3210_v38  ;;  %v2347_v28 = vsub.f32 %v2315_v63, %v2283_v44  ;;  %2483 = vadd.xlane.f32.xlu0 %v2482_v57  ;;  %v2485_v24 = vsel %vm2418_vm3, %v2408_v12, 0.0  ;;  %v2410_v48 = vmax.f32 %v2378_v16, -18.420681 }
 0x42b   :  { %v3214_v34 = vpop.eup %3213  ;;  %v2249_v55 = vmul.f32 0.6931472, %v3212_v0  ;;  %3219 = vlog2.f32 %v2193_v4  ;;  %2486 = vadd.xlane.f32.xlu1 %v2485_v24  ;;  %v2488_v7 = vsel %vm2418_vm3, %v2409_v45, 0.0 }
 0x42c   :  { %v3216_v36 = vpop.eup %3215  ;;  %v2284_v13 = vadd.f32 %v2247_v11, %v2028_v60  ;;  %v2251_v6 = vmul.f32 0.6931472, %v3214_v34  ;;  %v2379_v38 = vmul.f32 2.0, %v2347_v28  ;;  %v2491_v63 = vsel %vm2418_vm3, %v2410_v48, 0.0 }
 0x42d   :  { %v2285_v18 = vadd.f32 %v2249_v55, %v2029_v3  ;;  %v2253_v33 = vmul.f32 0.6931472, %v3216_v36  ;;  %v2321_v28 = vsub.f32 0.6931472, %v4529_v50 }
 0x42e   :  { %v2348_v49 = vsub.f32 %v2316_v9, %v2284_v13  ;;  %v2286_v56 = vadd.f32 %v2251_v6, %v2030_v19  ;;  %v2411_v60 = vmax.f32 %v2379_v38, -18.420681  ;;  %2489 = vadd.xlane.f32.xlu0 %v2488_v7  ;;  %v2032_v19 = vmax.f32 %v4526_v22, 0.0  ;;  %v3317_v7 = vld [vmem:[%s4934_s0] sm:$0xff] }
 0x42f   :  { %v2349_v4 = vsub.f32 %v2317_v14, %v2285_v18  ;;  %v2287_v20 = vadd.f32 %v2253_v33, %v2031_v8  ;;  %2492 = vadd.xlane.f32.xlu1 %v2491_v63  ;;  %v2033_v8 = vmax.f32 %v4534_v41, 0.0  ;;  %v3318_v33 = vld [vmem:[%s4934_s0 + $0x8] sm:$0xff] }
 0x430   :  { %v2380_v62 = vmul.f32 2.0, %v2348_v49  ;;  %v2350_v15 = vsub.f32 %v2318_v39, %v2286_v56  ;;  %v2494_v9 = vsel %vm2418_vm3, %v2411_v60, 0.0  ;;  %v2320_v39 = vsub.f32 0.6931472, %v4522_v25 }
 0x431   :  { %v2381_v3 = vmul.f32 2.0, %v2349_v4  ;;  %v3218_v0 = vpop.eup %3217  ;;  %v2351_v14 = vsub.f32 %v2319_v59, %v2287_v20  ;;  %v1714_v4 = vmul.f32 -0.5, %v3317_v7  ;;  %v1715_v63 = vmul.f32 -0.5, %v3318_v33  ;;  %v3319_v59 = vld [vmem:[%s4934_s0 + $0x10] sm:$0xff] }
 0x432   :  { %v2412_v40 = vmax.f32 %v2380_v62, -18.420681  ;;  %v2382_v61 = vmul.f32 2.0, %v2350_v15  ;;  %v2255_v11 = vmul.f32 0.6931472, %v3218_v0  ;;  %2495 = vadd.xlane.f32.xlu0 %v2494_v9  ;;  %v4587_v15 = vpop.permute.xlu0 %1870  ;;  %v4590_v9 = vpop.permute.xlu1 %1872 }
 0x433   :  { %v2413_v52 = vmax.f32 %v2381_v3, -18.420681  ;;  %v2383_v37 = vmul.f32 2.0, %v2351_v14  ;;  %v1746_v56 = vmul.f32 %v3317_v7, %v1714_v4  ;;  %v1747_v62 = vmul.f32 %v3318_v33, %v1715_v63 }
 0x434   :  { %v2497_v44 = vsel %vm2418_vm3, %v2412_v40, 0.0  ;;  %v2414_v32 = vmax.f32 %v2382_v61, -18.420681  ;;  %v2288_v55 = vadd.f32 %v2255_v11, %v2032_v19  ;;  %v1716_v3 = vmul.f32 -0.5, %v3319_v59  ;;  %v3320_v61 = vld [vmem:[%s4934_s0 + $0x18] sm:$0xff] }
 0x435   :  { %v3220_v34 = vpop.eup %3219  ;;  %2498 = vadd.xlane.f32.xlu1 %v2497_v44  ;;  %v2500_v12 = vsel %vm2418_vm3, %v2413_v52, 0.0  ;;  %v2415_v16 = vmax.f32 %v2383_v37, -18.420681  ;;  %v1906_v60 = vsub.f32 %v1746_v56, %v4053_v43  ;;  %v1907_v40 = vsub.f32 %v1747_v62, %v4063_v30  ;;  %v3321_v30 = vld [vmem:[%s4934_s0 + $0x20] sm:$0xff]  ;;  %v3324_v56 = vld [vmem:[%s4934_s0 + $0x38] sm:$0xff]  ;;  %v4996_v62 = vld [vmem:[#allocation4_spill] sm:$0xff] }
 0x436   :  { %v2257_v36 = vmul.f32 0.6931472, %v3220_v34  ;;  %v2503_v22 = vsel %vm2418_vm3, %v2414_v32, 0.0  ;;  %v2352_v13 = vsub.f32 %v2320_v39, %v2288_v55  ;;  %2501 = vadd.xlane.f32.xlu0 %v2500_v12  ;;  %v1748_v0 = vmul.f32 %v3319_v59, %v1716_v3  ;;  %v3325_v3 = vld [vmem:[%s4934_s0 + $0x40] sm:$0xff] }
 0x437   :  { %v2506_v6 = vsel %vm2418_vm3, %v2415_v16, 0.0  ;;  %v2811_v20 = vadd.f32 -0.9189385, %v1906_v60  ;;  %v1717_v43 = vmul.f32 -0.5, %v3320_v61  ;;  %v2812_v19 = vadd.f32 -0.9189385, %v1907_v40 }
 0x438   :  { %v2289_v57 = vadd.f32 %v2257_v36, %v2033_v8  ;;  %v2384_v45 = vmul.f32 2.0, %v2352_v13  ;;  %v1908_v44 = vsub.f32 %v1748_v0, %v4060_v31  ;;  %v1718_v11 = vmul.f32 -0.5, %v3321_v30  ;;  %v3322_v31 = vld [vmem:[%s4934_s0 + $0x28] sm:$0xff] }
 0x439   :  { %2504 = vadd.xlane.f32.xlu1 %v2503_v22  ;;  %v1749_v32 = vmul.f32 %v3320_v61, %v1717_v43  ;;  %v1719_v12 = vmul.f32 -0.5, %v3322_v31  ;;  %v1721_v33 = vmul.f32 -0.5, %v3324_v56  ;;  %v4997_v61 = vld [vmem:[#allocation5_spill] sm:$0xff] }
 0x43a   :  { %v2353_v18 = vsub.f32 %v2321_v28, %v2289_v57  ;;  %v2416_v41 = vmax.f32 %v2384_v45, -18.420681  ;;  %2507 = vadd.xlane.f32.xlu0 %v2506_v6  ;;  %v2813_v39 = vadd.f32 -0.9189385, %v1908_v44  ;;  %v1750_v8 = vmul.f32 %v3321_v30, %v1718_v11  ;;  %v4994_v28 = vld [vmem:[#allocation3_spill] sm:$0xff]  ;;  %v4998_v11 = vld [vmem:[#allocation6_spill] sm:$0xff] }
 0x43b   :  { %v1909_v36 = vsub.f32 %v1749_v32, %v4067_v42  ;;  %v1751_v57 = vmul.f32 %v3322_v31, %v1719_v12  ;;  %v1753_v40 = vmul.f32 %v3324_v56, %v1721_v33  ;;  %v3326_v44 = vld [vmem:[%s4934_s0 + $0x48] sm:$0xff] }
 0x43c   :  { %v2385_v24 = vmul.f32 2.0, %v2353_v18  ;;  %v2509_v48 = vsel %vm2418_vm3, %v2416_v41, 0.0  ;;  %v1910_v22 = vsub.f32 %v1750_v8, %v4994_v28  ;;  %v3323_v41 = vld [vmem:[%s4934_s0 + $0x30] sm:$0xff]  ;;  %v1723_v30 = vmul.f32 -0.5, %v3326_v44  ;;  %v3330_v33 = vld [vmem:[%s4934_s0 + $0x68] sm:$0xff] }
 0x43d   :  { %2510 = vadd.xlane.f32.xlu1 %v2509_v48  ;;  %v2814_v13 = vadd.f32 -0.9189385, %v1909_v36  ;;  %v1720_v42 = vmul.f32 -0.5, %v3323_v41  ;;  %v1913_v43 = vsub.f32 %v1753_v40, %v4997_v61 }
 0x43e   :  { %v2417_v38 = vmax.f32 %v2385_v24, -18.420681  ;;  %v2815_v6 = vadd.f32 -0.9189385, %v1910_v22  ;;  %v4995_v24 = vld [vmem:[#allocation2_spill] sm:$0xff]  ;;  %v4999_v22 = vld [vmem:[#allocation7_spill] sm:$0xff] }
 0x43f   :  { %v1911_v48 = vsub.f32 %v1751_v57, %v4995_v24  ;;  %v1752_v7 = vmul.f32 %v3323_v41, %v1720_v42  ;;  %v2818_v32 = vadd.f32 -0.9189385, %v1913_v43  ;;  %v5000_v57 = vld [vmem:[#allocation8_spill] sm:$0xff] }
 0x440   :  { %v2512_v49 = vsel %vm2418_vm3, %v2417_v38, 0.0 }
 0x441   :  { %2513 = vadd.xlane.f32.xlu0 %v2512_v49  ;;  %v2816_v4 = vadd.f32 -0.9189385, %v1911_v48  ;;  %v1912_v59 = vsub.f32 %v1752_v7, %v4996_v62 }
 0x443   :  { %v2817_v0 = vadd.f32 -0.9189385, %v1912_v59 }
 0x453   :  { %v2421_v52 = vpop.xlane.xlu0 %2420 }
 0x454   :  { %v2515_v14 = vsub.f32 %v2811_v20, %v2421_v52  ;;  %v1722_v20 = vmul.f32 -0.5, %v3325_v3 }
 0x456   :  { %2579 = vrot.lane.b32.xlu1 %v2515_v14, %s3353_s13  ;;  %v2424_v34 = vpop.xlane.xlu1 %2423  ;;  %v1754_v52 = vmul.f32 %v3325_v3, %v1722_v20  ;;  %v3331_v3 = vld [vmem:[%s4934_s0 + $0x70] sm:$0xff] }
 0x457   :  { %v2516_v37 = vsub.f32 %v2812_v19, %v2424_v34  ;;  %v1728_v20 = vmul.f32 -0.5, %v3331_v3 }
 0x458   :  { %v1914_v34 = vsub.f32 %v1754_v52, %v4998_v11  ;;  %v5002_v52 = vld [vmem:[#allocation10_spill] sm:$0xff] }
 0x459   :  { %2581 = vrot.lane.b32.xlu0 %v2516_v37, %s3353_s13  ;;  %v3327_v37 = vld [vmem:[%s4934_s0 + $0x50] sm:$0xff] }
 0x45a   :  { %v2427_v55 = vpop.xlane.xlu0 %2426  ;;  %v2819_v31 = vadd.f32 -0.9189385, %v1914_v34  ;;  %v3332_v34 = vld [vmem:[%s4934_s0 + $0x78] sm:$0xff] }
 0x45b   :  { %v2517_v16 = vsub.f32 %v2813_v39, %v2427_v55  ;;  %v1724_v39 = vmul.f32 -0.5, %v3327_v37  ;;  %v1755_v55 = vmul.f32 %v3326_v44, %v1723_v30  ;;  %v5003_v44 = vld [vmem:[#allocation11_spill] sm:$0xff] }
 0x45d   :  { %2583 = vrot.lane.b32.xlu1 %v2517_v16, %s3353_s13  ;;  %v1756_v16 = vmul.f32 %v3327_v37, %v1724_v39  ;;  %v5004_v39 = vld [vmem:[#allocation12_spill] sm:$0xff] }
 0x45e   :  { %v2430_v45 = vpop.xlane.xlu0 %2429 }
 0x45f   :  { %v2518_v18 = vsub.f32 %v2814_v13, %v2430_v45  ;;  %v1915_v13 = vsub.f32 %v1755_v55, %v4999_v22  ;;  %v1916_v45 = vsub.f32 %v1756_v16, %v5000_v57  ;;  %v3333_v55 = vld [vmem:[%s4934_s0 + $0x80] sm:$0xff] }
 0x461   :  { %v2433_v38 = vpop.xlane.xlu1 %2432  ;;  %2585 = vrot.lane.b32.xlu1 %v2518_v18, %s3353_s13  ;;  %v2820_v18 = vadd.f32 -0.9189385, %v1915_v13  ;;  %v2821_v48 = vadd.f32 -0.9189385, %v1916_v45 }
 0x462   :  { %v2519_v49 = vsub.f32 %v2815_v6, %v2433_v38  ;;  %v3328_v6 = vld [vmem:[%s4934_s0 + $0x58] sm:$0xff] }
 0x463   :  { %v1725_v41 = vmul.f32 -0.5, %v3328_v6 }
 0x464   :  { %2587 = vrot.lane.b32.xlu0 %v2519_v49, %s3353_s13  ;;  %v3329_v49 = vld [vmem:[%s4934_s0 + $0x60] sm:$0xff] }
 0x465   :  { %v1757_v38 = vmul.f32 %v3328_v6, %v1725_v41  ;;  %v1726_v7 = vmul.f32 -0.5, %v3329_v49 }
 0x466   :  { %v2436_v63 = vpop.xlane.xlu0 %2435 }
 0x467   :  { %v2520_v60 = vsub.f32 %v2816_v4, %v2436_v63  ;;  %v1727_v63 = vmul.f32 -0.5, %v3330_v33  ;;  %v1758_v59 = vmul.f32 %v3329_v49, %v1726_v7  ;;  %v3335_v7 = vld [vmem:[%s4934_s0 + $0x90] sm:$0xff] }
 0x469   :  { %2589 = vrot.lane.b32.xlu1 %v2520_v60, %s3353_s13  ;;  %v5001_v60 = vld [vmem:[#allocation9_spill] sm:$0xff]  ;;  %v1759_v40 = vmul.f32 %v3330_v33, %v1727_v63  ;;  %v1918_v61 = vsub.f32 %v1758_v59, %v5002_v52 }
 0x46a   :  { %v1917_v62 = vsub.f32 %v1757_v38, %v5001_v60 }
 0x46b   :  { %v1919_v30 = vsub.f32 %v1759_v40, %v5003_v44  ;;  %v2823_v11 = vadd.f32 -0.9189385, %v1918_v61  ;;  %v3336_v44 = vld [vmem:[%s4934_s0 + $0x98] sm:$0xff] }
 0x46d   :  { %v2439_v14 = vpop.xlane.xlu1 %2438 }
 0x46e   :  { %v2521_v19 = vsub.f32 %v2817_v0, %v2439_v14  ;;  %v2822_v0 = vadd.f32 -0.9189385, %v1917_v62  ;;  %v1760_v14 = vmul.f32 %v3331_v3, %v1728_v20  ;;  %v5007_v20 = vld [vmem:[#allocation15_spill] sm:$0xff] }
 0x470   :  { %2591 = vrot.lane.b32.xlu0 %v2521_v19, %s3353_s13  ;;  %v2442_v8 = vpop.xlane.xlu0 %2441 }
 0x471   :  { %v2522_v36 = vsub.f32 %v2818_v32, %v2442_v8  ;;  %v1729_v32 = vmul.f32 -0.5, %v3332_v34  ;;  %v1920_v8 = vsub.f32 %v1760_v14, %v5004_v39 }
 0x473   :  { %2593 = vrot.lane.b32.xlu1 %v2522_v36, %s3353_s13  ;;  %v1730_v36 = vmul.f32 -0.5, %v3333_v55  ;;  %v1761_v16 = vmul.f32 %v3332_v34, %v1729_v32  ;;  %v2825_v13 = vadd.f32 -0.9189385, %v1920_v8 }
 0x475   :  { %v2445_v12 = vpop.xlane.xlu1 %2444  ;;  %v1762_v57 = vmul.f32 %v3333_v55, %v1730_v36  ;;  %v5009_v55 = vld [vmem:[#allocation17_spill] sm:$0xff] }
 0x476   :  { %v2523_v28 = vsub.f32 %v2819_v31, %v2445_v12  ;;  %v2824_v12 = vadd.f32 -0.9189385, %v1919_v30  ;;  %v1733_v30 = vmul.f32 -0.5, %v3336_v44 }
 0x478   :  { %2595 = vrot.lane.b32.xlu0 %v2523_v28, %s3353_s13  ;;  %v2448_v42 = vpop.xlane.xlu0 %2447  ;;  %v1765_v39 = vmul.f32 %v3336_v44, %v1733_v30 }
 0x479   :  { %v2524_v24 = vsub.f32 %v2820_v18, %v2448_v42  ;;  %v5005_v18 = vld [vmem:[#allocation13_spill] sm:$0xff]  ;;  %v3334_v42 = vld [vmem:[%s4934_s0 + $0x88] sm:$0xff] }
 0x47a   :  { %v1921_v6 = vsub.f32 %v1761_v16, %v5005_v18  ;;  %v1925_v36 = vsub.f32 %v1765_v39, %v5009_v55  ;;  %v5010_v16 = vld [vmem:[#allocation18_spill] sm:$0xff]  ;;  %v3340_v18 = vld [vmem:[%s4934_s0 + $0xb8] sm:$0xff] }
 0x47b   :  { %2597 = vrot.lane.b32.xlu1 %v2524_v24, %s3353_s13  ;;  %v1731_v24 = vmul.f32 -0.5, %v3334_v42 }
 0x47c   :  { %v2451_v4 = vpop.xlane.xlu1 %2450  ;;  %v2826_v49 = vadd.f32 -0.9189385, %v1921_v6  ;;  %v1737_v6 = vmul.f32 -0.5, %v3340_v18 }
 0x47d   :  { %v2525_v56 = vsub.f32 %v2821_v48, %v2451_v4  ;;  %v5006_v48 = vld [vmem:[#allocation14_spill] sm:$0xff]  ;;  %v1732_v4 = vmul.f32 -0.5, %v3335_v7 }
 0x47e   :  { %v1922_v38 = vsub.f32 %v1762_v57, %v5006_v48  ;;  %v2830_v57 = vadd.f32 -0.9189385, %v1925_v36 }
 0x47f   :  { %2599 = vrot.lane.b32.xlu0 %v2525_v56, %s3353_s13  ;;  %v1763_v56 = vmul.f32 %v3334_v42, %v1731_v24  ;;  %v1764_v59 = vmul.f32 %v3335_v7, %v1732_v4  ;;  %v3341_v24 = vld [vmem:[%s4934_s0 + $0xc0] sm:$0xff] }
 0x480   :  { %v2827_v63 = vadd.f32 -0.9189385, %v1922_v38  ;;  %v1738_v48 = vmul.f32 -0.5, %v3341_v24 }
 0x481   :  { %v1923_v40 = vsub.f32 %v1763_v56, %v5007_v20  ;;  %v5011_v56 = vld [vmem:[#allocation19_spill] sm:$0xff] }
 0x482   :  { %v1770_v20 = vmul.f32 %v3341_v24, %v1738_v48 }
 0x483   :  { %v2828_v61 = vadd.f32 -0.9189385, %v1923_v40  ;;  %v3343_v40 = vld [vmem:[%s4934_s0 + $0xd0] sm:$0xff] }
 0x489   :  { %v2454_v43 = vpop.xlane.xlu0 %2453 }
 0x48a   :  { %v2526_v19 = vsub.f32 %v2822_v0, %v2454_v43  ;;  %v5008_v0 = vld [vmem:[#allocation16_spill] sm:$0xff] }
 0x48b   :  { %v1924_v52 = vsub.f32 %v1764_v59, %v5008_v0  ;;  %v5012_v59 = vld [vmem:[#allocation20_spill] sm:$0xff]  ;;  %v1740_v0 = vmul.f32 -0.5, %v3343_v40 }
 0x48c   :  { %2601 = vrot.lane.b32.xlu1 %v2526_v19, %s3353_s13 }
 0x48d   :  { %v2457_v37 = vpop.xlane.xlu1 %2456  ;;  %v2829_v19 = vadd.f32 -0.9189385, %v1924_v52 }
 0x48e   :  { %v2527_v31 = vsub.f32 %v2823_v11, %v2457_v37  ;;  %v2460_v28 = vpop.xlane.xlu0 %2459  ;;  %v3337_v11 = vld [vmem:[%s4934_s0 + $0xa0] sm:$0xff] }
 0x48f   :  { %v2528_v22 = vsub.f32 %v2824_v12, %v2460_v28  ;;  %v1734_v34 = vmul.f32 -0.5, %v3337_v11 }
 0x490   :  { %2603 = vrot.lane.b32.xlu0 %v2527_v31, %s3353_s13  ;;  %v3338_v31 = vld [vmem:[%s4934_s0 + $0xa8] sm:$0xff] }
 0x491   :  { %v2463_v45 = vpop.xlane.xlu1 %2462  ;;  %2605 = vrot.lane.b32.xlu1 %v2528_v22, %s3353_s13  ;;  %v1766_v8 = vmul.f32 %v3337_v11, %v1734_v34  ;;  %v1735_v12 = vmul.f32 -0.5, %v3338_v31  ;;  %v3339_v22 = vld [vmem:[%s4934_s0 + $0xb0] sm:$0xff]  ;;  %v5014_v11 = vld [vmem:[#allocation22_spill] sm:$0xff] }
 0x492   :  { %v2529_v41 = vsub.f32 %v2825_v13, %v2463_v45  ;;  %v1736_v13 = vmul.f32 -0.5, %v3339_v22  ;;  %v1930_v34 = vsub.f32 %v1770_v20, %v5014_v11 }
 0x493   :  { %v1926_v28 = vsub.f32 %v1766_v8, %v5010_v16  ;;  %v1767_v45 = vmul.f32 %v3338_v31, %v1735_v12  ;;  %v5015_v16 = vld [vmem:[#allocation23_spill] sm:$0xff] }
 0x494   :  { %2607 = vrot.lane.b32.xlu0 %v2529_v41, %s3353_s13  ;;  %v1768_v42 = vmul.f32 %v3339_v22, %v1736_v13  ;;  %v3346_v13 = vld [vmem:[%s4934_s0 + $0xe8] sm:$0xff] }
 0x495   :  { %v2831_v41 = vadd.f32 -0.9189385, %v1926_v28 }
 0x496   :  { %v2469_v62 = vpop.xlane.xlu1 %2468 }
 0x497   :  { %v2531_v3 = vsub.f32 %v2827_v63, %v2469_v62  ;;  %v1769_v63 = vmul.f32 %v3340_v18, %v1737_v6  ;;  %v5016_v18 = vld [vmem:[#allocation24_spill] sm:$0xff] }
 0x499   :  { %2611 = vrot.lane.b32.xlu0 %v2531_v3, %s3353_s13  ;;  %v1928_v3 = vsub.f32 %v1768_v42, %v5012_v59  ;;  %v3347_v42 = vld [vmem:[%s4934_s0 + $0xf0] sm:$0xff] }
 0x49a   :  { %v2466_v33 = vpop.xlane.xlu0 %2465  ;;  %v1744_v24 = vmul.f32 -0.5, %v3347_v42 }
 0x49b   :  { %v2530_v60 = vsub.f32 %v2826_v49, %v2466_v33  ;;  %v1927_v33 = vsub.f32 %v1767_v45, %v5011_v56  ;;  %v2833_v30 = vadd.f32 -0.9189385, %v1928_v3  ;;  %v2835_v45 = vadd.f32 -0.9189385, %v1930_v34  ;;  %v5017_v56 = vld [vmem:[#allocation25_spill] sm:$0xff]  ;;  %v5018_v3 = vld [vmem:[#allocation26_spill] sm:$0xff] }
 0x49d   :  { %2609 = vrot.lane.b32.xlu1 %v2530_v60, %s3353_s13  ;;  %v3342_v60 = vld [vmem:[%s4934_s0 + $0xc8] sm:$0xff]  ;;  %v2832_v52 = vadd.f32 -0.9189385, %v1927_v33 }
 0x49e   :  { %v1739_v62 = vmul.f32 -0.5, %v3342_v60 }
 0x4a0   :  { %v2472_v43 = vpop.xlane.xlu0 %2471  ;;  %v2475_v32 = vpop.xlane.xlu1 %2474 }
 0x4a1   :  { %v2532_v14 = vsub.f32 %v2828_v61, %v2472_v43  ;;  %v2533_v37 = vsub.f32 %v2829_v19, %v2475_v32  ;;  %v5013_v61 = vld [vmem:[#allocation21_spill] sm:$0xff]  ;;  %v1772_v32 = vmul.f32 %v3343_v40, %v1740_v0  ;;  %v1776_v40 = vmul.f32 %v3347_v42, %v1744_v24 }
 0x4a2   :  { %v1929_v43 = vsub.f32 %v1769_v63, %v5013_v61  ;;  %v3344_v19 = vld [vmem:[%s4934_s0 + $0xd8] sm:$0xff] }
 0x4a3   :  { %2613 = vrot.lane.b32.xlu1 %v2532_v14, %s3353_s13  ;;  %2615 = vrot.lane.b32.xlu0 %v2533_v37, %s3353_s13  ;;  %v1771_v14 = vmul.f32 %v3342_v60, %v1739_v62  ;;  %v1741_v44 = vmul.f32 -0.5, %v3344_v19  ;;  %v3345_v37 = vld [vmem:[%s4934_s0 + $0xe0] sm:$0xff]  ;;  %v1932_v6 = vsub.f32 %v1772_v32, %v5016_v18  ;;  %v3348_v60 = vld [vmem:[%s4934_s0 + $0xf8] sm:$0xff]  ;;  %v1936_v32 = vsub.f32 %v1776_v40, %v4587_v15 }
 0x4a4   :  { %v1742_v39 = vmul.f32 -0.5, %v3345_v37  ;;  %v2834_v12 = vadd.f32 -0.9189385, %v1929_v43  ;;  %v1745_v62 = vmul.f32 -0.5, %v3348_v60 }
 0x4a5   :  { %v1931_v28 = vsub.f32 %v1771_v14, %v5015_v16  ;;  %v1773_v22 = vmul.f32 %v3344_v19, %v1741_v44  ;;  %v2837_v59 = vadd.f32 -0.9189385, %v1932_v6  ;;  %v5019_v19 = vld [vmem:[#allocation27_spill] sm:$0xff]  ;;  %v2841_v16 = vadd.f32 -0.9189385, %v1936_v32 }
 0x4a6   :  { %v1777_v11 = vmul.f32 %v3348_v60, %v1745_v62 }
 0x4a7   :  { %v1933_v33 = vsub.f32 %v1773_v22, %v5017_v56 }
 0x4a9   :  { %v2838_v14 = vadd.f32 -0.9189385, %v1933_v33 }
 0x4b2   :  { %v2478_v38 = vpop.xlane.xlu0 %2477 }
 0x4b3   :  { %v2534_v49 = vsub.f32 %v2830_v57, %v2478_v38  ;;  %v2481_v7 = vpop.xlane.xlu1 %2480  ;;  %v1743_v57 = vmul.f32 -0.5, %v3346_v13 }
 0x4b4   :  { %v2535_v4 = vsub.f32 %v2831_v41, %v2481_v7  ;;  %v1774_v41 = vmul.f32 %v3345_v37, %v1742_v39 }
 0x4b5   :  { %2617 = vrot.lane.b32.xlu1 %v2534_v49, %s3353_s13  ;;  %v1775_v63 = vmul.f32 %v3346_v13, %v1743_v57 }
 0x4b6   :  { %2619 = vrot.lane.b32.xlu0 %v2535_v4, %s3353_s13  ;;  %v2836_v4 = vadd.f32 -0.9189385, %v1931_v28  ;;  %v1934_v20 = vsub.f32 %v1774_v41, %v5018_v3 }
 0x4b7   :  { %v2484_v8 = vpop.xlane.xlu0 %2483  ;;  %v1935_v44 = vsub.f32 %v1775_v63, %v5019_v19 }
 0x4b8   :  { %v2536_v55 = vsub.f32 %v2832_v52, %v2484_v8  ;;  %v2487_v36 = vpop.xlane.xlu1 %2486  ;;  %v2839_v34 = vadd.f32 -0.9189385, %v1934_v20 }
 0x4b9   :  { %v2537_v31 = vsub.f32 %v2833_v30, %v2487_v36  ;;  %v5020_v30 = vld [vmem:[#allocation28_spill] sm:$0xff] }
 0x4ba   :  { %2621 = vrot.lane.b32.xlu1 %v2536_v55, %s3353_s13  ;;  %3221 = vtanh.f32 %v5020_v30  ;;  %v5021_v55 = vld [vmem:[#allocation29_spill] sm:$0xff] }
 0x4bb   :  { %2623 = vrot.lane.b32.xlu0 %v2537_v31, %s3353_s13  ;;  %v2490_v48 = vpop.xlane.xlu0 %2489  ;;  %3223 = vtanh.f32 %v5021_v55  ;;  %v2840_v31 = vadd.f32 -0.9189385, %v1935_v44  ;;  %v5027_v55 = vld [vmem:[#allocation35_spill] sm:$0xff] }
 0x4bc   :  { %v2538_v38 = vsub.f32 %v2834_v12, %v2490_v48  ;;  %v2493_v49 = vpop.xlane.xlu1 %2492  ;;  %3225 = vtanh.f32 %v4265_v10  ;;  %v1937_v12 = vsub.f32 %v1777_v11, %v4590_v9  ;;  %v5023_v48 = vld [vmem:[#allocation31_spill] sm:$0xff] }
 0x4bd   :  { %v2539_v7 = vsub.f32 %v2835_v45, %v2493_v49  ;;  %3227 = vtanh.f32 %v4275_v35  ;;  %v5022_v45 = vld [vmem:[#allocation30_spill] sm:$0xff] }
 0x4be   :  { %2625 = vrot.lane.b32.xlu1 %v2538_v38, %s3353_s13  ;;  %v2842_v57 = vadd.f32 -0.9189385, %v1937_v12  ;;  %3229 = vtanh.f32 %v5022_v45  ;;  %v5029_v12 = vld [vmem:[#allocation37_spill] sm:$0xff] }
 0x4bf   :  { %2627 = vrot.lane.b32.xlu0 %v2539_v7, %s3353_s13  ;;  %v2496_v0 = vpop.xlane.xlu0 %2495  ;;  %3231 = vtanh.f32 %v5023_v48 }
 0x4c0   :  { %v2540_v52 = vsub.f32 %v2836_v4, %v2496_v0  ;;  %v5025_v0 = vld [vmem:[#allocation33_spill] sm:$0xff] }
 0x4c2   :  { %v2499_v61 = vpop.xlane.xlu1 %2498  ;;  %2629 = vrot.lane.b32.xlu1 %v2540_v52, %s3353_s13 }
 0x4c3   :  { %v2541_v43 = vsub.f32 %v2837_v59, %v2499_v61  ;;  %v2502_v37 = vpop.xlane.xlu0 %2501  ;;  %v5024_v59 = vld [vmem:[#allocation32_spill] sm:$0xff] }
 0x4c4   :  { %v2542_v39 = vsub.f32 %v2838_v14, %v2502_v37  ;;  %v3222_v9 = vpop.eup %3221  ;;  %3233 = vtanh.f32 %v5024_v59  ;;  %v5026_v37 = vld [vmem:[#allocation34_spill] sm:$0xff] }
 0x4c5   :  { %2631 = vrot.lane.b32.xlu0 %v2541_v43, %s3353_s13  ;;  %v3224_v35 = vpop.eup %3223  ;;  %3235 = vtanh.f32 %v5025_v0 }
 0x4c6   :  { %v2505_v8 = vpop.xlane.xlu1 %2504  ;;  %2633 = vrot.lane.b32.xlu1 %v2542_v39, %s3353_s13  ;;  %v3226_v24 = vpop.eup %3225  ;;  %3237 = vtanh.f32 %v4311_v5 }
 0x4c7   :  { %v2543_v36 = vsub.f32 %v2839_v34, %v2505_v8  ;;  %v2508_v28 = vpop.xlane.xlu0 %2507  ;;  %v3228_v4 = vpop.eup %3227  ;;  %3239 = vtanh.f32 %v4320_v53 }
 0x4c8   :  { %v2544_v15 = vsub.f32 %v2840_v31, %v2508_v28  ;;  %v3230_v33 = vpop.eup %3229  ;;  %3241 = vtanh.f32 %v4328_v17 }
 0x4c9   :  { %2635 = vrot.lane.b32.xlu0 %v2543_v36, %s3353_s13  ;;  %v3232_v3 = vpop.eup %3231  ;;  %3243 = vtanh.f32 %v5026_v37  ;;  %v5028_v36 = vld [vmem:[#allocation36_spill] sm:$0xff] }
 0x4ca   :  { %v2511_v22 = vpop.xlane.xlu1 %2510  ;;  %2637 = vrot.lane.b32.xlu1 %v2544_v15, %s3353_s13  ;;  %3245 = vtanh.f32 %v5027_v55 }
 0x4cb   :  { %v2545_v13 = vsub.f32 %v2841_v16, %v2511_v22  ;;  %3247 = vtanh.f32 %v5028_v36 }
 0x4cc   :  { %3249 = vtanh.f32 %v5029_v12 }
 0x4cd   :  { %2639 = vrot.lane.b32.xlu0 %v2545_v13, %s3353_s13  ;;  %3251 = vtanh.f32 %v4376_v47 }
 0x4ce   :  { %v2514_v10 = vpop.xlane.xlu0 %2513  ;;  %v2580_v18 = vpop.permute.xlu1 %2579  ;;  %3253 = vtanh.f32 %v4384_v23 }
 0x4cf   :  { %v2546_v6 = vsub.f32 %v2842_v57, %v2514_v10  ;;  %v2675_v41 = vsel %vm2418_vm3, %v3222_v9, %v2580_v18  ;;  %v3234_v52 = vpop.eup %3233  ;;  %3255 = vtanh.f32 %v4394_v58 }
 0x4d0   :  { %2708 = vst.msk [vmem:[%s4940_s7] sm:$0xff] %vm2707_vm4, %v2675_v41  ;;  %v3236_v14 = vpop.eup %3235  ;;  %3257 = vtanh.f32 %v4402_v54 }
 0x4d1   :  { %2641 = vrot.lane.b32.xlu1 %v2546_v6, %s3353_s13  ;;  %v3238_v5 = vpop.eup %3237  ;;  %3259 = vtanh.f32 %v4414_v27 }
 0x4d2   :  { %v2582_v42 = vpop.permute.xlu0 %2581  ;;  %v2584_v38 = vpop.permute.xlu1 %2583  ;;  %3261 = vtanh.f32 %v4425_v2  ;;  %v5030_v2 = vld [vmem:[#allocation38_spill] sm:$0xff] }
 0x4d3   :  { %v2676_v49 = vsel %vm2418_vm3, %v3224_v35, %v2582_v42  ;;  %v2677_v7 = vsel %vm2418_vm3, %v3226_v24, %v2584_v38  ;;  %v3240_v53 = vpop.eup %3239  ;;  %3263 = vtanh.f32 %v4433_v29 }
 0x4d4   :  { %2709 = vst.msk [vmem:[%s4940_s7 + $0x8] sm:$0xff] %vm2707_vm4, %v2676_v49  ;;  %2710 = vst.msk [vmem:[%s4940_s7 + $0x10] sm:$0xff] %vm2707_vm4, %v2677_v7  ;;  %v3242_v17 = vpop.eup %3241  ;;  %3265 = vtanh.f32 %v4436_v21 }
 0x4d5   :  { %v3244_v31 = vpop.eup %3243  ;;  %3267 = vtanh.f32 %v4443_v51 }
 0x4d6   :  { %v2586_v56 = vpop.permute.xlu1 %2585  ;;  %v2588_v60 = vpop.permute.xlu0 %2587  ;;  %3269 = vtanh.f32 %v4457_v1 }
 0x4d7   :  { %v2678_v63 = vsel %vm2418_vm3, %v3228_v4, %v2586_v56  ;;  %v2679_v62 = vsel %vm2418_vm3, %v3230_v33, %v2588_v60  ;;  %v3246_v15 = vpop.eup %3245  ;;  %3271 = vtanh.f32 %v4472_v46 }
 0x4d8   :  { %2711 = vst.msk [vmem:[%s4940_s7 + $0x18] sm:$0xff] %vm2707_vm4, %v2678_v63  ;;  %2712 = vst.msk [vmem:[%s4940_s7 + $0x20] sm:$0xff] %vm2707_vm4, %v2679_v62  ;;  %v3248_v57 = vpop.eup %3247  ;;  %3273 = vtanh.f32 %v5030_v2 }
 0x4d9   :  { %v3250_v9 = vpop.eup %3249 }
 0x4da   :  { %v3252_v6 = vpop.eup %3251 }
 0x4db   :  { %v2590_v20 = vpop.permute.xlu1 %2589  ;;  %v3254_v35 = vpop.eup %3253 }
 0x4dc   :  { %v2680_v40 = vsel %vm2418_vm3, %v3232_v3, %v2590_v20  ;;  %v3256_v58 = vpop.eup %3255  ;;  %v5031_v3 = vld [vmem:[#allocation39_spill] sm:$0xff]  ;;  %v5032_v20 = vld [vmem:[#allocation40_spill] sm:$0xff] }
 0x4dd   :  { %2713 = vst.msk [vmem:[%s4940_s7 + $0x28] sm:$0xff] %vm2707_vm4, %v2680_v40  ;;  %v3258_v54 = vpop.eup %3257  ;;  %3275 = vtanh.f32 %v5031_v3 }
 0x4de   :  { %v3260_v4 = vpop.eup %3259  ;;  %3277 = vtanh.f32 %v5032_v20 }
 0x4df   :  { %v3262_v33 = vpop.eup %3261  ;;  %3279 = vtanh.f32 %v4506_v26 }
 0x4e0   :  { %v3264_v29 = vpop.eup %3263  ;;  %3281 = vtanh.f32 %v4522_v25 }
 0x4e1   :  { %v3266_v51 = vpop.eup %3265  ;;  %3283 = vtanh.f32 %v4529_v50 }
 0x4e2   :  { %v2592_v61 = vpop.permute.xlu0 %2591  ;;  %v3268_v46 = vpop.eup %3267 }
 0x4e3   :  { %v2681_v43 = vsel %vm2418_vm3, %v3234_v52, %v2592_v61  ;;  %v3270_v0 = vpop.eup %3269 }
 0x4e4   :  { %2714 = vst.msk [vmem:[%s4940_s7 + $0x30] sm:$0xff] %vm2707_vm4, %v2681_v43 }
 0x4e5   :  { %v2594_v19 = vpop.permute.xlu1 %2593 }
 0x4e6   :  { %v2682_v44 = vsel %vm2418_vm3, %v3236_v14, %v2594_v19  ;;  %v3272_v14 = vpop.eup %3271 }
 0x4e7   :  { %2715 = vst.msk [vmem:[%s4940_s7 + $0x38] sm:$0xff] %vm2707_vm4, %v2682_v44  ;;  %v3274_v44 = vpop.eup %3273 }
 0x4ea   :  { %v2596_v30 = vpop.permute.xlu0 %2595 }
 0x4eb   :  { %v2683_v11 = vsel %vm2418_vm3, %v3238_v5, %v2596_v30  ;;  %v3276_v30 = vpop.eup %3275 }
 0x4ec   :  { %2716 = vst.msk [vmem:[%s4940_s7 + $0x40] sm:$0xff] %vm2707_vm4, %v2683_v11 }
 0x4ed   :  { %v2598_v34 = vpop.permute.xlu1 %2597 }
 0x4ee   :  { %v2684_v32 = vsel %vm2418_vm3, %v3240_v53, %v2598_v34  ;;  %v3278_v53 = vpop.eup %3277 }
 0x4ef   :  { %2717 = vst.msk [vmem:[%s4940_s7 + $0x48] sm:$0xff] %vm2707_vm4, %v2684_v32  ;;  %v3280_v37 = vpop.eup %3279 }
 0x4f1   :  { %v2600_v39 = vpop.permute.xlu0 %2599 }
 0x4f2   :  { %v2685_v8 = vsel %vm2418_vm3, %v3242_v17, %v2600_v39  ;;  %v3282_v39 = vpop.eup %3281 }
 0x4f3   :  { %2718 = vst.msk [vmem:[%s4940_s7 + $0x50] sm:$0xff] %vm2707_vm4, %v2685_v8 }
 0x4fe   :  { %v2602_v16 = vpop.permute.xlu1 %2601 }
 0x4ff   :  { %v2686_v28 = vsel %vm2418_vm3, %v3244_v31, %v2602_v16  ;;  %v3284_v31 = vpop.eup %3283 }
 0x500   :  { %2719 = vst.msk [vmem:[%s4940_s7 + $0x58] sm:$0xff] %vm2707_vm4, %v2686_v28 }
 0x502   :  { %v2604_v22 = vpop.permute.xlu0 %2603 }
 0x503   :  { %v2687_v13 = vsel %vm2418_vm3, %v3246_v15, %v2604_v22  ;;  %v2606_v45 = vpop.permute.xlu1 %2605 }
 0x504   :  { %2720 = vst.msk [vmem:[%s4940_s7 + $0x60] sm:$0xff] %vm2707_vm4, %v2687_v13  ;;  %v2688_v10 = vsel %vm2418_vm3, %v3248_v57, %v2606_v45 }
 0x505   :  { %2721 = vst.msk [vmem:[%s4940_s7 + $0x68] sm:$0xff] %vm2707_vm4, %v2688_v10 }
 0x506   :  { %v2608_v18 = vpop.permute.xlu0 %2607 }
 0x507   :  { %v2689_v47 = vsel %vm2418_vm3, %v3250_v9, %v2608_v18 }
 0x508   :  { %2722 = vst.msk [vmem:[%s4940_s7 + $0x70] sm:$0xff] %vm2707_vm4, %v2689_v47 }
 0x50b   :  { %v2612_v42 = vpop.permute.xlu0 %2611 }
 0x50c   :  { %v2691_v24 = vsel %vm2418_vm3, %v3254_v35, %v2612_v42 }
 0x50d   :  { %2724 = vst.msk [vmem:[%s4940_s7 + $0x80] sm:$0xff] %vm2707_vm4, %v2691_v24 }
 0x50f   :  { %v2610_v23 = vpop.permute.xlu1 %2609 }
 0x510   :  { %v2690_v41 = vsel %vm2418_vm3, %v3252_v6, %v2610_v23 }
 0x511   :  { %2723 = vst.msk [vmem:[%s4940_s7 + $0x78] sm:$0xff] %vm2707_vm4, %v2690_v41 }
 0x515   :  { %v2614_v48 = vpop.permute.xlu1 %2613  ;;  %v2616_v49 = vpop.permute.xlu0 %2615 }
 0x516   :  { %v2692_v38 = vsel %vm2418_vm3, %v3256_v58, %v2614_v48  ;;  %v2693_v7 = vsel %vm2418_vm3, %v3258_v54, %v2616_v49 }
 0x517   :  { %2725 = vst.msk [vmem:[%s4940_s7 + $0x88] sm:$0xff] %vm2707_vm4, %v2692_v38  ;;  %2726 = vst.msk [vmem:[%s4940_s7 + $0x90] sm:$0xff] %vm2707_vm4, %v2693_v7 }
 0x527   :  { %v2618_v56 = vpop.permute.xlu1 %2617 }
 0x528   :  { %v2694_v63 = vsel %vm2418_vm3, %v3260_v4, %v2618_v56  ;;  %v2620_v60 = vpop.permute.xlu0 %2619 }
 0x529   :  { %2727 = vst.msk [vmem:[%s4940_s7 + $0x98] sm:$0xff] %vm2707_vm4, %v2694_v63  ;;  %v2695_v27 = vsel %vm2418_vm3, %v3262_v33, %v2620_v60 }
 0x52a   :  { %2728 = vst.msk [vmem:[%s4940_s7 + $0xa0] sm:$0xff] %vm2707_vm4, %v2695_v27 }
 0x52c   :  { %v2622_v21 = vpop.permute.xlu1 %2621 }
 0x52d   :  { %v2696_v62 = vsel %vm2418_vm3, %v3264_v29, %v2622_v21  ;;  %v2624_v59 = vpop.permute.xlu0 %2623 }
 0x52e   :  { %2729 = vst.msk [vmem:[%s4940_s7 + $0xa8] sm:$0xff] %vm2707_vm4, %v2696_v62  ;;  %v2697_v1 = vsel %vm2418_vm3, %v3266_v51, %v2624_v59 }
 0x52f   :  { %2730 = vst.msk [vmem:[%s4940_s7 + $0xb0] sm:$0xff] %vm2707_vm4, %v2697_v1 }
 0x530   :  { %v2626_v40 = vpop.permute.xlu1 %2625 }
 0x531   :  { %v2698_v52 = vsel %vm2418_vm3, %v3268_v46, %v2626_v40  ;;  %v2628_v61 = vpop.permute.xlu0 %2627 }
 0x532   :  { %2731 = vst.msk [vmem:[%s4940_s7 + $0xb8] sm:$0xff] %vm2707_vm4, %v2698_v52  ;;  %v2699_v43 = vsel %vm2418_vm3, %v3270_v0, %v2628_v61 }
 0x533   :  { %2732 = vst.msk [vmem:[%s4940_s7 + $0xc0] sm:$0xff] %vm2707_vm4, %v2699_v43 }
 0x534   :  { %v2630_v19 = vpop.permute.xlu1 %2629 }
 0x535   :  { %v2700_v5 = vsel %vm2418_vm3, %v3272_v14, %v2630_v19 }
 0x536   :  { %2733 = vst.msk [vmem:[%s4940_s7 + $0xc8] sm:$0xff] %vm2707_vm4, %v2700_v5 }
 0x537   :  { %v2632_v26 = vpop.permute.xlu0 %2631 }
 0x538   :  { %v2701_v25 = vsel %vm2418_vm3, %v3274_v44, %v2632_v26  ;;  %v2634_v11 = vpop.permute.xlu1 %2633 }
 0x539   :  { %2734 = vst.msk [vmem:[%s4940_s7 + $0xd0] sm:$0xff] %vm2707_vm4, %v2701_v25  ;;  %v2702_v34 = vsel %vm2418_vm3, %v3276_v30, %v2634_v11 }
 0x53a   :  { %2735 = vst.msk [vmem:[%s4940_s7 + $0xd8] sm:$0xff] %vm2707_vm4, %v2702_v34 }
 0x53b   :  { %v2636_v32 = vpop.permute.xlu0 %2635 }
 0x53c   :  { %v2703_v50 = vsel %vm2418_vm3, %v3278_v53, %v2636_v32  ;;  %v2638_v17 = vpop.permute.xlu1 %2637 }
 0x53d   :  { %2736 = vst.msk [vmem:[%s4940_s7 + $0xe0] sm:$0xff] %vm2707_vm4, %v2703_v50  ;;  %v2704_v8 = vsel %vm2418_vm3, %v3280_v37, %v2638_v17 }
 0x53e   :  { %2737 = vst.msk [vmem:[%s4940_s7 + $0xe8] sm:$0xff] %vm2707_vm4, %v2704_v8 }
 0x53f   :  { %v2640_v55 = vpop.permute.xlu0 %2639 }
 0x540   :  { %v2705_v36 = vsel %vm2418_vm3, %v3282_v39, %v2640_v55 }
 0x541   :  { %2738 = vst.msk [vmem:[%s4940_s7 + $0xf0] sm:$0xff] %vm2707_vm4, %v2705_v36 }
 0x543   :  { %v2642_v12 = vpop.permute.xlu1 %2641 }
 0x544   :  { %v2706_v16 = vsel %vm2418_vm3, %v3284_v31, %v2642_v12 }
 0x545   :  { %2739 = vst.msk [vmem:[%s4940_s7 + $0xf8] sm:$0xff] %vm2707_vm4, %v2706_v16 }

</bundles_post_ra>
